<compile_context>
chip_gen: v7x
topology: tpu7x:2x2x1
jax: 0.10.0
libtpu: 0.0.40
codegen_flags: <defaults>
</compile_context>

<pallas_src>
import functools

import numpy as np
import jax
import jax.numpy as jnp
from jax import lax
from jax.experimental import pallas as pl
from jax.experimental.pallas import tpu as pltpu

COMPUTE_DTYPE = jnp.bfloat16  # MXU operand dtype for the big matmuls (f32 accumulation)


# ----------------------------------------------------------------------------
# Host-side construction of the (tiny) pooling / bilinear-upsample operators
# ----------------------------------------------------------------------------
def adaptive_pool_matrix(out_size, in_size):
    """(out_size, in_size) row-stochastic matrix of PyTorch AdaptiveAvgPool1d."""
    P = np.zeros((out_size, in_size), np.float32)
    for i in range(out_size):
        lo = (i * in_size) // out_size
        hi = -(-((i + 1) * in_size) // out_size)  # ceil
        P[i, lo:hi] = 1.0 / (hi - lo)
    return P


def bilinear_upsample_matrix(out_size, in_size):
    """(out_size, in_size) weights of F.interpolate(bilinear, align_corners=False)."""
    A = np.zeros((out_size, in_size), np.float32)
    scale = in_size / out_size
    for h in range(out_size):
        src = max((h + 0.5) * scale - 0.5, 0.0)
        i0 = min(int(np.floor(src)), in_size - 1)
        i1 = min(i0 + 1, in_size - 1)
        w1 = src - i0
        A[h, i0] += 1.0 - w1
        A[h, i1] += w1
    return A


# ----------------------------------------------------------------------------
# Fused Pallas kernel (per batch element)
# ----------------------------------------------------------------------------
def _ppm_fused_kernel(x_ref, *refs, num_scales, in_ch, branch_ch, out_ch, H, W, Wp):
    """identity || per-scale(pool->1x1conv+BN->upsample->ReLU)  ->  3x3 conv+BN+ReLU.

    refs layout:
      [P2t_0, Wb_0, A2padT_0, ..., P2t_{S-1}, Wb_{S-1}, A2padT_{S-1},
       bias_br(K,S), mask(1,Mp), spad(HW,Mp), w_last(9,O,Ccat), b_last(O,1),
       out(1,O,H*Wp), cat_scratch(Ccat,Mp)]
    """
    base = 3 * num_scales
    bias_ref = refs[base]          # (branch_ch, num_scales) f32
    mask_ref = refs[base + 1]      # (1, Mp) f32 : 1 on interior padded positions
    spad_ref = refs[base + 2]      # (HW, Mp) f32 : 0/1 scatter image -> padded slab
    wl_ref = refs[base + 3]        # (9, out_ch, cat_ch) bf16 : 3x3 conv, BN folded
    bl_ref = refs[base + 4]        # (out_ch, 1) f32
    out_ref = refs[base + 5]       # (1, out_ch, H*Wp)
    cat_ref = refs[base + 6]       # (cat_ch, Mp) bf16 VMEM scratch (padded concat slab)

    x = x_ref[0]                                                   # (C, HW) f32

    # identity branch -> rows [0, C) of the padded slab (zero border built in)
    ident = jnp.dot(x, spad_ref[...], preferred_element_type=jnp.float32)   # (C, Mp)
    cat_ref[0:in_ch, :] = ident.astype(cat_ref.dtype)

    mask = mask_ref[...]                                           # (1, Mp)
    for si in range(num_scales):
        p2t = refs[3 * si]                                         # (HW, s2p)
        wb = refs[3 * si + 1]                                      # (K, C)  BN scale folded
        a2pt = refs[3 * si + 2]                                    # (s2p, Mp)
        pooled = jnp.dot(x, p2t[...], preferred_element_type=jnp.float32)    # (C, s2p)
        t1 = jnp.dot(wb[...], pooled, preferred_element_type=jnp.float32)    # (K, s2p)
        up = jnp.dot(t1, a2pt[...], preferred_element_type=jnp.float32)      # (K, Mp)
        # bias + ReLU on interior only; mask keeps the conv zero-padding exact.
        y = jnp.maximum(up + bias_ref[:, si:si + 1], 0.0) * mask
        off = in_ch + si * branch_ch
        cat_ref[off:off + branch_ch, :] = y.astype(cat_ref.dtype)

    # ppm_last_conv: 3x3 conv (pad=1) + folded BN + ReLU via 9 shifted-window matmuls.
    M = H * Wp
    acc = jnp.zeros((out_ch, M), jnp.float32)
    for ki in range(3):
        for kj in range(3):
            off = ki * Wp + kj
            xs = cat_ref[:, off:off + M]                           # (cat_ch, M) bf16
            acc = acc + jnp.dot(wl_ref[ki * 3 + kj], xs,
                                preferred_element_type=jnp.float32)
    out_ref[0] = jnp.maximum(acc + bl_ref[...], 0.0).astype(out_ref.dtype)


# ----------------------------------------------------------------------------
# Forward pass
# ----------------------------------------------------------------------------
def ppm_forward(x_nchw, params):
    pool_scales = params["pool_scales"]
    branch_ch = params["branch_ch"]
    out_ch = params["out_ch"]
    cdt = params.get("compute_dtype", COMPUTE_DTYPE)

    N, C, H, W = x_nchw.shape
    HW = H * W
    n_scales = len(pool_scales)
    cat_ch = C + n_scales * branch_ch
    Wp = W + 2                       # conv zero-padding columns
    Hp = H + 3                       # +1 slack row so shifted-window slices stay in bounds
    Mp = Hp * Wp

    # NCHW -> (N, C, HW): plain reshape, no transpose / dtype pass.
    x3 = x_nchw.reshape(N, C, HW).astype(jnp.float32)

    # -- padded-slab interior positions (host-side, tiny numpy) ---------------
    hh, ww = np.meshgrid(np.arange(H), np.arange(W), indexing="ij")
    interior = ((1 + hh) * Wp + (1 + ww)).reshape(-1)              # (HW,) flat padded idx

    mask_np = np.zeros((1, Mp), np.float32)
    mask_np[0, interior] = 1.0
    spad_np = np.zeros((HW, Mp), np.float32)
    spad_np[np.arange(HW), interior] = 1.0

    p2t_list, wb_list, a2pt_list, bias_list = [], [], [], []
    for s, p in zip(pool_scales, params["branches"]):
        s2 = s * s
        s2p = -(-s2 // 8) * 8                                      # pad pooled axis to x8
        P2 = np.kron(adaptive_pool_matrix(s, H), adaptive_pool_matrix(s, W))    # (s2, HW)
        p2t = np.zeros((HW, s2p), np.float32)
        p2t[:, :s2] = P2.T
        A2 = np.kron(bilinear_upsample_matrix(H, s),
                     bilinear_upsample_matrix(W, s))                            # (HW, s2)
        a2pt = np.zeros((s2p, Mp), np.float32)
        a2pt[:s2, interior] = A2.T                                 # upsample into padded slab
        p2t_list.append(jnp.asarray(p2t))
        a2pt_list.append(jnp.asarray(a2pt))
        scale, bias = p["bn"]                                      # eval-mode BN folded
        wb_list.append((p["w"] * scale[None, :]).T.astype(jnp.float32))         # (K, C)
        bias_list.append(bias.astype(jnp.float32))
    bias_all = jnp.stack(bias_list, axis=1)                                     # (K, S)

    scale_l, bias_l = params["last_bn"]
    wl = params["last_w"] * scale_l[None, None, None, :]                        # HWIO, folded
    wl = jnp.transpose(wl, (0, 1, 3, 2)).reshape(9, out_ch, cat_ch).astype(cdt)
    bl = bias_l.reshape(out_ch, 1).astype(jnp.float32)

    # -- single fused pallas_call --------------------------------------------
    args = [x3]
    in_specs = [pl.BlockSpec((1, C, HW), lambda n: (n, 0, 0))]
    for si in range(n_scales):
        args += [p2t_list[si], wb_list[si], a2pt_list[si]]
        in_specs += [
            pl.BlockSpec(p2t_list[si].shape, lambda n: (0, 0)),
            pl.BlockSpec(wb_list[si].shape, lambda n: (0, 0)),
            pl.BlockSpec(a2pt_list[si].shape, lambda n: (0, 0)),
        ]
    args += [bias_all, jnp.asarray(mask_np), jnp.asarray(spad_np), wl, bl]
    in_specs += [
        pl.BlockSpec(bias_all.shape, lambda n: (0, 0)),
        pl.BlockSpec((1, Mp), lambda n: (0, 0)),
        pl.BlockSpec((HW, Mp), lambda n: (0, 0)),
        pl.BlockSpec((9, out_ch, cat_ch), lambda n: (0, 0, 0)),
        pl.BlockSpec((out_ch, 1), lambda n: (0, 0)),
    ]

    kernel = functools.partial(
        _ppm_fused_kernel, num_scales=n_scales, in_ch=C, branch_ch=branch_ch,
        out_ch=out_ch, H=H, W=W, Wp=Wp)

    out_flat = pl.pallas_call(
        kernel,
        out_shape=jax.ShapeDtypeStruct((N, out_ch, H * Wp), jnp.float32),
        grid=(N,),
        in_specs=in_specs,
        out_specs=pl.BlockSpec((1, out_ch, H * Wp), lambda n: (n, 0, 0)),
        scratch_shapes=[pltpu.VMEM((cat_ch, Mp), cdt)],
        compiler_params=pltpu.CompilerParams(dimension_semantics=("parallel",)),
    )(*args)

    # crop the (Wp - W) garbage columns of the shifted-window conv; already NCHW.
    return out_flat.reshape(N, out_ch, H, Wp)[:, :, :, :W]


# ----------------------------------------------------------------------------
# Parameter construction (deterministic, synthetic)
# ----------------------------------------------------------------------------
def conv_w(key, shape, fan_in):
    return (jax.random.normal(key, shape, jnp.float32)
            * np.sqrt(2.0 / fan_in)).astype(jnp.float32)


def bn_params(key, c, eps=1e-5):
    k1, k2, k3, k4 = jax.random.split(key, 4)
    gamma = 1.0 + 0.1 * jax.random.normal(k1, (c,), jnp.float32)
    beta = 0.1 * jax.random.normal(k2, (c,), jnp.float32)
    mean = 0.05 * jax.random.normal(k3, (c,), jnp.float32)
    var = 1.0 + 0.1 * jax.random.uniform(k4, (c,), jnp.float32)
    scale = gamma / jnp.sqrt(var + eps)
    bias = beta - mean * scale
    return scale, bias


def make_ppm_params(key, in_ch, branch_ch, out_ch, pool_scales):
    n = len(pool_scales)
    keys = jax.random.split(key, 2 * n + 2)
    branches = []
    for i in range(n):
        branches.append({
            "w": conv_w(keys[2 * i], (in_ch, branch_ch), in_ch),     # 1x1 conv (Cin, Cout)
            "bn": bn_params(keys[2 * i + 1], branch_ch),
        })
    cat_ch = in_ch + n * branch_ch
    return {
        "branches": branches,
        "last_w": conv_w(keys[2 * n], (3, 3, cat_ch, out_ch), 9 * cat_ch),   # HWIO
        "last_bn": bn_params(keys[2 * n + 1], out_ch),
        "pool_scales": tuple(pool_scales),
        "branch_ch": branch_ch,
        "out_ch": out_ch,
        "compute_dtype": COMPUTE_DTYPE,
    }


# ----------------------------------------------------------------------------
# Pure-JAX reference (f32, HIGHEST precision) for numeric sanity check
# ----------------------------------------------------------------------------
def ppm_reference(x_nchw, params):
    pool_scales = params["pool_scales"]
    x = jnp.transpose(x_nchw, (0, 2, 3, 1)).astype(jnp.float32)
    N, H, W, C = x.shape
    outs = [x]
    for s, p in zip(pool_scales, params["branches"]):
        pooled = x.reshape(N, s, H // s, s, W // s, C).mean(axis=(2, 4))
        A_h = jnp.asarray(bilinear_upsample_matrix(H, s))
        A_w = jnp.asarray(bilinear_upsample_matrix(W, s))
        up = jnp.einsum("hi,wj,nijc->nhwc", A_h, A_w, pooled,
                        precision=lax.Precision.HIGHEST)
        scale, bias = p["bn"]
        y = jnp.einsum("nhwc,ck->nhwk", up, p["w"], precision=lax.Precision.HIGHEST)
        outs.append(jnp.maximum(y * scale + bias, 0.0))
    cat = jnp.concatenate(outs, axis=-1)
    scale_l, bias_l = params["last_bn"]
    y = lax.conv_general_dilated(cat, params["last_w"], (1, 1), [(1, 1), (1, 1)],
                                 dimension_numbers=("NHWC", "HWIO", "NHWC"),
                                 precision=lax.Precision.HIGHEST)
    y = jnp.maximum(y * scale_l + bias_l, 0.0)
    return jnp.transpose(y, (0, 3, 1, 2))


# ----------------------------------------------------------------------------
if __name__ == "__main__":
    key = jax.random.PRNGKey(0)
    k_params, k_input = jax.random.split(key)

    N, C, H, W = 2, 64, 12, 12                    # fc_dim=64, 12x12 feature map
    pool_scales = (1, 2, 3, 6)
    params = make_ppm_params(k_params, in_ch=C, branch_ch=32, out_ch=64,
                             pool_scales=pool_scales)
    x = jax.random.normal(k_input, (N, C, H, W), jnp.float32)   # NCHW like PyTorch

    fwd = jax.jit(functools.partial(ppm_forward, params=params))
    out = jax.block_until_ready(fwd(x))

    assert out.shape == (N, params["out_ch"], H, W), out.shape
    assert np.all(np.isfinite(np.asarray(out)))

    ref = jax.block_until_ready(ppm_reference(x, params))
    err = float(np.max(np.abs(np.asarray(out) - np.asarray(ref))))
    assert np.allclose(np.asarray(out), np.asarray(ref), rtol=5e-2, atol=5e-2), err

    print("KERNEL_OK")
</pallas_src>

<mosaic_0001>
module attributes {stable_mosaic.version = 11 : i64} {
  func.func @_ppm_fused_kernel(%arg0: i32, %arg1: memref<1x64x144xf32, #tpu.memory_space<vmem>>, %arg2: memref<144x8xf32, #tpu.memory_space<vmem>>, %arg3: memref<32x64xf32, #tpu.memory_space<vmem>>, %arg4: memref<8x210xf32, #tpu.memory_space<vmem>>, %arg5: memref<144x8xf32, #tpu.memory_space<vmem>>, %arg6: memref<32x64xf32, #tpu.memory_space<vmem>>, %arg7: memref<8x210xf32, #tpu.memory_space<vmem>>, %arg8: memref<144x16xf32, #tpu.memory_space<vmem>>, %arg9: memref<32x64xf32, #tpu.memory_space<vmem>>, %arg10: memref<16x210xf32, #tpu.memory_space<vmem>>, %arg11: memref<144x40xf32, #tpu.memory_space<vmem>>, %arg12: memref<32x64xf32, #tpu.memory_space<vmem>>, %arg13: memref<40x210xf32, #tpu.memory_space<vmem>>, %arg14: memref<32x4xf32, #tpu.memory_space<vmem>>, %arg15: memref<1x210xf32, #tpu.memory_space<vmem>>, %arg16: memref<144x210xf32, #tpu.memory_space<vmem>>, %arg17: memref<9x64x192xbf16, #tpu.memory_space<vmem>>, %arg18: memref<64x1xf32, #tpu.memory_space<vmem>>, %arg19: memref<1x64x168xf32, #tpu.memory_space<vmem>>, %arg20: memref<192x210xbf16, #tpu.memory_space<vmem>>) attributes {dimension_semantics = [#tpu.dimension_semantics<parallel>], iteration_bounds = array<i64: 2>, scalar_prefetch = 0 : i64, scratch_operands = 1 : i64, tpu.core_type = #tpu.core_type<tc>, window_params = [{transform_indices = @transform_0, window_bounds = array<i64: 1, 64, 144>}, {pipeline_mode = #tpu.pipeline_mode<synchronous>, transform_indices = @transform_1, window_bounds = array<i64: 144, 8>}, {pipeline_mode = #tpu.pipeline_mode<synchronous>, transform_indices = @transform_2, window_bounds = array<i64: 32, 64>}, {pipeline_mode = #tpu.pipeline_mode<synchronous>, transform_indices = @transform_3, window_bounds = array<i64: 8, 210>}, {pipeline_mode = #tpu.pipeline_mode<synchronous>, transform_indices = @transform_4, window_bounds = array<i64: 144, 8>}, {pipeline_mode = #tpu.pipeline_mode<synchronous>, transform_indices = @transform_5, window_bounds = array<i64: 32, 64>}, {pipeline_mode = #tpu.pipeline_mode<synchronous>, transform_indices = @transform_6, window_bounds = array<i64: 8, 210>}, {pipeline_mode = #tpu.pipeline_mode<synchronous>, transform_indices = @transform_7, window_bounds = array<i64: 144, 16>}, {pipeline_mode = #tpu.pipeline_mode<synchronous>, transform_indices = @transform_8, window_bounds = array<i64: 32, 64>}, {pipeline_mode = #tpu.pipeline_mode<synchronous>, transform_indices = @transform_9, window_bounds = array<i64: 16, 210>}, {pipeline_mode = #tpu.pipeline_mode<synchronous>, transform_indices = @transform_10, window_bounds = array<i64: 144, 40>}, {pipeline_mode = #tpu.pipeline_mode<synchronous>, transform_indices = @transform_11, window_bounds = array<i64: 32, 64>}, {pipeline_mode = #tpu.pipeline_mode<synchronous>, transform_indices = @transform_12, window_bounds = array<i64: 40, 210>}, {pipeline_mode = #tpu.pipeline_mode<synchronous>, transform_indices = @transform_13, window_bounds = array<i64: 32, 4>}, {pipeline_mode = #tpu.pipeline_mode<synchronous>, transform_indices = @transform_14, window_bounds = array<i64: 1, 210>}, {pipeline_mode = #tpu.pipeline_mode<synchronous>, transform_indices = @transform_15, window_bounds = array<i64: 144, 210>}, {pipeline_mode = #tpu.pipeline_mode<synchronous>, transform_indices = @transform_16, window_bounds = array<i64: 9, 64, 192>}, {pipeline_mode = #tpu.pipeline_mode<synchronous>, transform_indices = @transform_17, window_bounds = array<i64: 64, 1>}, {transform_indices = @transform_18, window_bounds = array<i64: 1, 64, 168>}]} {
    %c0 = arith.constant 0 : index
    %c0_0 = arith.constant 0 : index
    %c0_1 = arith.constant 0 : index
    %0 = vector.load %arg1[%c0, %c0_0, %c0_1] : memref<1x64x144xf32, #tpu.memory_space<vmem>>, vector<1x64x144xf32>
    %1 = vector.shape_cast %0 : vector<1x64x144xf32> to vector<64x144xf32>
    %c0_2 = arith.constant 0 : index
    %c0_3 = arith.constant 0 : index
    %2 = vector.load %arg16[%c0_2, %c0_3] : memref<144x210xf32, #tpu.memory_space<vmem>>, vector<144x210xf32>
    %cst = arith.constant dense<0.000000e+00> : vector<64x210xf32>
    %3 = tpu.matmul %1, %2, %cst {dimension_numbers = #tpu.dot_dimension_numbers<[1], [0], [0], [1], [0, 0, 1, 1], [], []>} : vector<64x144xf32>, vector<144x210xf32>, vector<64x210xf32> -> vector<64x210xf32>
    %4 = arith.truncf %3 : vector<64x210xf32> to vector<64x210xbf16>
    %c0_4 = arith.constant 0 : index
    %c0_5 = arith.constant 0 : index
    %5 = vector.load %arg20[%c0_4, %c0_5] : memref<192x210xbf16, #tpu.memory_space<vmem>>, vector<64x210xbf16>
    tpu.vector_store %arg20[%c0_4, %c0_5], %4 {strides = array<i32>} : memref<192x210xbf16, #tpu.memory_space<vmem>>, vector<64x210xbf16>,
    %c0_6 = arith.constant 0 : index
    %c0_7 = arith.constant 0 : index
    %6 = vector.load %arg15[%c0_6, %c0_7] : memref<1x210xf32, #tpu.memory_space<vmem>>, vector<1x210xf32>
    %c0_8 = arith.constant 0 : index
    %c0_9 = arith.constant 0 : index
    %7 = vector.load %arg2[%c0_8, %c0_9] : memref<144x8xf32, #tpu.memory_space<vmem>>, vector<144x8xf32>
    %cst_10 = arith.constant dense<0.000000e+00> : vector<64x8xf32>
    %8 = tpu.matmul %1, %7, %cst_10 {dimension_numbers = #tpu.dot_dimension_numbers<[1], [0], [0], [1], [0, 0, 1, 1], [], []>} : vector<64x144xf32>, vector<144x8xf32>, vector<64x8xf32> -> vector<64x8xf32>
    %c0_11 = arith.constant 0 : index
    %c0_12 = arith.constant 0 : index
    %9 = vector.load %arg3[%c0_11, %c0_12] : memref<32x64xf32, #tpu.memory_space<vmem>>, vector<32x64xf32>
    %cst_13 = arith.constant dense<0.000000e+00> : vector<32x8xf32>
    %10 = tpu.matmul %9, %8, %cst_13 {dimension_numbers = #tpu.dot_dimension_numbers<[1], [0], [0], [1], [0, 0, 1, 1], [], []>} : vector<32x64xf32>, vector<64x8xf32>, vector<32x8xf32> -> vector<32x8xf32>
    %c0_14 = arith.constant 0 : index
    %c0_15 = arith.constant 0 : index
    %11 = vector.load %arg4[%c0_14, %c0_15] : memref<8x210xf32, #tpu.memory_space<vmem>>, vector<8x210xf32>
    %cst_16 = arith.constant dense<0.000000e+00> : vector<32x210xf32>
    %12 = tpu.matmul %10, %11, %cst_16 {dimension_numbers = #tpu.dot_dimension_numbers<[1], [0], [0], [1], [0, 0, 1, 1], [], []>} : vector<32x8xf32>, vector<8x210xf32>, vector<32x210xf32> -> vector<32x210xf32>
    %c0_17 = arith.constant 0 : index
    %c0_18 = arith.constant 0 : index
    %13 = vector.load %arg14[%c0_17, %c0_18] : memref<32x4xf32, #tpu.memory_space<vmem>>, vector<32x1xf32>
    %14 = vector.broadcast %13 : vector<32x1xf32> to vector<32x210xf32>
    %15 = arith.addf %12, %14 : vector<32x210xf32>
    %cst_19 = arith.constant 0.000000e+00 : f32
    %16 = vector.broadcast %cst_19 : f32 to vector<32x210xf32>
    %17 = arith.maximumf %15, %16 : vector<32x210xf32>
    %18 = vector.broadcast %6 : vector<1x210xf32> to vector<32x210xf32>
    %19 = arith.mulf %17, %18 : vector<32x210xf32>
    %20 = arith.truncf %19 : vector<32x210xf32> to vector<32x210xbf16>
    %c64 = arith.constant 64 : index
    %c0_20 = arith.constant 0 : index
    %21 = vector.load %arg20[%c64, %c0_20] : memref<192x210xbf16, #tpu.memory_space<vmem>>, vector<32x210xbf16>
    tpu.vector_store %arg20[%c64, %c0_20], %20 {strides = array<i32>} : memref<192x210xbf16, #tpu.memory_space<vmem>>, vector<32x210xbf16>,
    %c0_21 = arith.constant 0 : index
    %c0_22 = arith.constant 0 : index
    %22 = vector.load %arg5[%c0_21, %c0_22] : memref<144x8xf32, #tpu.memory_space<vmem>>, vector<144x8xf32>
    %cst_23 = arith.constant dense<0.000000e+00> : vector<64x8xf32>
    %23 = tpu.matmul %1, %22, %cst_23 {dimension_numbers = #tpu.dot_dimension_numbers<[1], [0], [0], [1], [0, 0, 1, 1], [], []>} : vector<64x144xf32>, vector<144x8xf32>, vector<64x8xf32> -> vector<64x8xf32>
    %c0_24 = arith.constant 0 : index
    %c0_25 = arith.constant 0 : index
    %24 = vector.load %arg6[%c0_24, %c0_25] : memref<32x64xf32, #tpu.memory_space<vmem>>, vector<32x64xf32>
    %cst_26 = arith.constant dense<0.000000e+00> : vector<32x8xf32>
    %25 = tpu.matmul %24, %23, %cst_26 {dimension_numbers = #tpu.dot_dimension_numbers<[1], [0], [0], [1], [0, 0, 1, 1], [], []>} : vector<32x64xf32>, vector<64x8xf32>, vector<32x8xf32> -> vector<32x8xf32>
    %c0_27 = arith.constant 0 : index
    %c0_28 = arith.constant 0 : index
    %26 = vector.load %arg7[%c0_27, %c0_28] : memref<8x210xf32, #tpu.memory_space<vmem>>, vector<8x210xf32>
    %cst_29 = arith.constant dense<0.000000e+00> : vector<32x210xf32>
    %27 = tpu.matmul %25, %26, %cst_29 {dimension_numbers = #tpu.dot_dimension_numbers<[1], [0], [0], [1], [0, 0, 1, 1], [], []>} : vector<32x8xf32>, vector<8x210xf32>, vector<32x210xf32> -> vector<32x210xf32>
    %c0_30 = arith.constant 0 : index
    %c1 = arith.constant 1 : index
    %28 = vector.load %arg14[%c0_30, %c1] : memref<32x4xf32, #tpu.memory_space<vmem>>, vector<32x1xf32>
    %29 = vector.broadcast %28 : vector<32x1xf32> to vector<32x210xf32>
    %30 = arith.addf %27, %29 : vector<32x210xf32>
    %cst_31 = arith.constant 0.000000e+00 : f32
    %31 = vector.broadcast %cst_31 : f32 to vector<32x210xf32>
    %32 = arith.maximumf %30, %31 : vector<32x210xf32>
    %33 = vector.broadcast %6 : vector<1x210xf32> to vector<32x210xf32>
    %34 = arith.mulf %32, %33 : vector<32x210xf32>
    %35 = arith.truncf %34 : vector<32x210xf32> to vector<32x210xbf16>
    %c96 = arith.constant 96 : index
    %c0_32 = arith.constant 0 : index
    %36 = vector.load %arg20[%c96, %c0_32] : memref<192x210xbf16, #tpu.memory_space<vmem>>, vector<32x210xbf16>
    tpu.vector_store %arg20[%c96, %c0_32], %35 {strides = array<i32>} : memref<192x210xbf16, #tpu.memory_space<vmem>>, vector<32x210xbf16>,
    %c0_33 = arith.constant 0 : index
    %c0_34 = arith.constant 0 : index
    %37 = vector.load %arg8[%c0_33, %c0_34] : memref<144x16xf32, #tpu.memory_space<vmem>>, vector<144x16xf32>
    %cst_35 = arith.constant dense<0.000000e+00> : vector<64x16xf32>
    %38 = tpu.matmul %1, %37, %cst_35 {dimension_numbers = #tpu.dot_dimension_numbers<[1], [0], [0], [1], [0, 0, 1, 1], [], []>} : vector<64x144xf32>, vector<144x16xf32>, vector<64x16xf32> -> vector<64x16xf32>
    %c0_36 = arith.constant 0 : index
    %c0_37 = arith.constant 0 : index
    %39 = vector.load %arg9[%c0_36, %c0_37] : memref<32x64xf32, #tpu.memory_space<vmem>>, vector<32x64xf32>
    %cst_38 = arith.constant dense<0.000000e+00> : vector<32x16xf32>
    %40 = tpu.matmul %39, %38, %cst_38 {dimension_numbers = #tpu.dot_dimension_numbers<[1], [0], [0], [1], [0, 0, 1, 1], [], []>} : vector<32x64xf32>, vector<64x16xf32>, vector<32x16xf32> -> vector<32x16xf32>
    %c0_39 = arith.constant 0 : index
    %c0_40 = arith.constant 0 : index
    %41 = vector.load %arg10[%c0_39, %c0_40] : memref<16x210xf32, #tpu.memory_space<vmem>>, vector<16x210xf32>
    %cst_41 = arith.constant dense<0.000000e+00> : vector<32x210xf32>
    %42 = tpu.matmul %40, %41, %cst_41 {dimension_numbers = #tpu.dot_dimension_numbers<[1], [0], [0], [1], [0, 0, 1, 1], [], []>} : vector<32x16xf32>, vector<16x210xf32>, vector<32x210xf32> -> vector<32x210xf32>
    %c0_42 = arith.constant 0 : index
    %c2 = arith.constant 2 : index
    %43 = vector.load %arg14[%c0_42, %c2] : memref<32x4xf32, #tpu.memory_space<vmem>>, vector<32x1xf32>
    %44 = vector.broadcast %43 : vector<32x1xf32> to vector<32x210xf32>
    %45 = arith.addf %42, %44 : vector<32x210xf32>
    %cst_43 = arith.constant 0.000000e+00 : f32
    %46 = vector.broadcast %cst_43 : f32 to vector<32x210xf32>
    %47 = arith.maximumf %45, %46 : vector<32x210xf32>
    %48 = vector.broadcast %6 : vector<1x210xf32> to vector<32x210xf32>
    %49 = arith.mulf %47, %48 : vector<32x210xf32>
    %50 = arith.truncf %49 : vector<32x210xf32> to vector<32x210xbf16>
    %c128 = arith.constant 128 : index
    %c0_44 = arith.constant 0 : index
    %51 = vector.load %arg20[%c128, %c0_44] : memref<192x210xbf16, #tpu.memory_space<vmem>>, vector<32x210xbf16>
    tpu.vector_store %arg20[%c128, %c0_44], %50 {strides = array<i32>} : memref<192x210xbf16, #tpu.memory_space<vmem>>, vector<32x210xbf16>,
    %c0_45 = arith.constant 0 : index
    %c0_46 = arith.constant 0 : index
    %52 = vector.load %arg11[%c0_45, %c0_46] : memref<144x40xf32, #tpu.memory_space<vmem>>, vector<144x40xf32>
    %cst_47 = arith.constant dense<0.000000e+00> : vector<64x40xf32>
    %53 = tpu.matmul %1, %52, %cst_47 {dimension_numbers = #tpu.dot_dimension_numbers<[1], [0], [0], [1], [0, 0, 1, 1], [], []>} : vector<64x144xf32>, vector<144x40xf32>, vector<64x40xf32> -> vector<64x40xf32>
    %c0_48 = arith.constant 0 : index
    %c0_49 = arith.constant 0 : index
    %54 = vector.load %arg12[%c0_48, %c0_49] : memref<32x64xf32, #tpu.memory_space<vmem>>, vector<32x64xf32>
    %cst_50 = arith.constant dense<0.000000e+00> : vector<32x40xf32>
    %55 = tpu.matmul %54, %53, %cst_50 {dimension_numbers = #tpu.dot_dimension_numbers<[1], [0], [0], [1], [0, 0, 1, 1], [], []>} : vector<32x64xf32>, vector<64x40xf32>, vector<32x40xf32> -> vector<32x40xf32>
    %c0_51 = arith.constant 0 : index
    %c0_52 = arith.constant 0 : index
    %56 = vector.load %arg13[%c0_51, %c0_52] : memref<40x210xf32, #tpu.memory_space<vmem>>, vector<40x210xf32>
    %cst_53 = arith.constant dense<0.000000e+00> : vector<32x210xf32>
    %57 = tpu.matmul %55, %56, %cst_53 {dimension_numbers = #tpu.dot_dimension_numbers<[1], [0], [0], [1], [0, 0, 1, 1], [], []>} : vector<32x40xf32>, vector<40x210xf32>, vector<32x210xf32> -> vector<32x210xf32>
    %c0_54 = arith.constant 0 : index
    %c3 = arith.constant 3 : index
    %58 = vector.load %arg14[%c0_54, %c3] : memref<32x4xf32, #tpu.memory_space<vmem>>, vector<32x1xf32>
    %59 = vector.broadcast %58 : vector<32x1xf32> to vector<32x210xf32>
    %60 = arith.addf %57, %59 : vector<32x210xf32>
    %cst_55 = arith.constant 0.000000e+00 : f32
    %61 = vector.broadcast %cst_55 : f32 to vector<32x210xf32>
    %62 = arith.maximumf %60, %61 : vector<32x210xf32>
    %63 = vector.broadcast %6 : vector<1x210xf32> to vector<32x210xf32>
    %64 = arith.mulf %62, %63 : vector<32x210xf32>
    %65 = arith.truncf %64 : vector<32x210xf32> to vector<32x210xbf16>
    %c160 = arith.constant 160 : index
    %c0_56 = arith.constant 0 : index
    %66 = vector.load %arg20[%c160, %c0_56] : memref<192x210xbf16, #tpu.memory_space<vmem>>, vector<32x210xbf16>
    tpu.vector_store %arg20[%c160, %c0_56], %65 {strides = array<i32>} : memref<192x210xbf16, #tpu.memory_space<vmem>>, vector<32x210xbf16>,
    %cst_57 = arith.constant 0.000000e+00 : f32
    %67 = vector.broadcast %cst_57 : f32 to vector<64x168xf32>
    %c0_58 = arith.constant 0 : index
    %c0_59 = arith.constant 0 : index
    %68 = vector.load %arg20[%c0_58, %c0_59] : memref<192x210xbf16, #tpu.memory_space<vmem>>, vector<192x168xbf16>
    %c0_60 = arith.constant 0 : index
    %c0_61 = arith.constant 0 : index
    %c0_62 = arith.constant 0 : index
    %69 = vector.load %arg17[%c0_60, %c0_61, %c0_62] : memref<9x64x192xbf16, #tpu.memory_space<vmem>>, vector<1x64x192xbf16>
    %70 = vector.shape_cast %69 : vector<1x64x192xbf16> to vector<64x192xbf16>
    %cst_63 = arith.constant dense<0.000000e+00> : vector<64x168xf32>
    %71 = tpu.matmul %70, %68, %cst_63 {dimension_numbers = #tpu.dot_dimension_numbers<[1], [0], [0], [1], [0, 0, 1, 1], [], []>} : vector<64x192xbf16>, vector<192x168xbf16>, vector<64x168xf32> -> vector<64x168xf32>
    %72 = arith.addf %67, %71 : vector<64x168xf32>
    %c0_64 = arith.constant 0 : index
    %c1_65 = arith.constant 1 : index
    %73 = vector.load %arg20[%c0_64, %c1_65] : memref<192x210xbf16, #tpu.memory_space<vmem>>, vector<192x168xbf16>
    %c1_66 = arith.constant 1 : index
    %c0_67 = arith.constant 0 : index
    %c0_68 = arith.constant 0 : index
    %74 = vector.load %arg17[%c1_66, %c0_67, %c0_68] : memref<9x64x192xbf16, #tpu.memory_space<vmem>>, vector<1x64x192xbf16>
    %75 = vector.shape_cast %74 : vector<1x64x192xbf16> to vector<64x192xbf16>
    %cst_69 = arith.constant dense<0.000000e+00> : vector<64x168xf32>
    %76 = tpu.matmul %75, %73, %cst_69 {dimension_numbers = #tpu.dot_dimension_numbers<[1], [0], [0], [1], [0, 0, 1, 1], [], []>} : vector<64x192xbf16>, vector<192x168xbf16>, vector<64x168xf32> -> vector<64x168xf32>
    %77 = arith.addf %72, %76 : vector<64x168xf32>
    %c0_70 = arith.constant 0 : index
    %c2_71 = arith.constant 2 : index
    %78 = vector.load %arg20[%c0_70, %c2_71] : memref<192x210xbf16, #tpu.memory_space<vmem>>, vector<192x168xbf16>
    %c2_72 = arith.constant 2 : index
    %c0_73 = arith.constant 0 : index
    %c0_74 = arith.constant 0 : index
    %79 = vector.load %arg17[%c2_72, %c0_73, %c0_74] : memref<9x64x192xbf16, #tpu.memory_space<vmem>>, vector<1x64x192xbf16>
    %80 = vector.shape_cast %79 : vector<1x64x192xbf16> to vector<64x192xbf16>
    %cst_75 = arith.constant dense<0.000000e+00> : vector<64x168xf32>
    %81 = tpu.matmul %80, %78, %cst_75 {dimension_numbers = #tpu.dot_dimension_numbers<[1], [0], [0], [1], [0, 0, 1, 1], [], []>} : vector<64x192xbf16>, vector<192x168xbf16>, vector<64x168xf32> -> vector<64x168xf32>
    %82 = arith.addf %77, %81 : vector<64x168xf32>
    %c0_76 = arith.constant 0 : index
    %c14 = arith.constant 14 : index
    %83 = vector.load %arg20[%c0_76, %c14] : memref<192x210xbf16, #tpu.memory_space<vmem>>, vector<192x168xbf16>
    %c3_77 = arith.constant 3 : index
    %c0_78 = arith.constant 0 : index
    %c0_79 = arith.constant 0 : index
    %84 = vector.load %arg17[%c3_77, %c0_78, %c0_79] : memref<9x64x192xbf16, #tpu.memory_space<vmem>>, vector<1x64x192xbf16>
    %85 = vector.shape_cast %84 : vector<1x64x192xbf16> to vector<64x192xbf16>
    %cst_80 = arith.constant dense<0.000000e+00> : vector<64x168xf32>
    %86 = tpu.matmul %85, %83, %cst_80 {dimension_numbers = #tpu.dot_dimension_numbers<[1], [0], [0], [1], [0, 0, 1, 1], [], []>} : vector<64x192xbf16>, vector<192x168xbf16>, vector<64x168xf32> -> vector<64x168xf32>
    %87 = arith.addf %82, %86 : vector<64x168xf32>
    %c0_81 = arith.constant 0 : index
    %c15 = arith.constant 15 : index
    %88 = vector.load %arg20[%c0_81, %c15] : memref<192x210xbf16, #tpu.memory_space<vmem>>, vector<192x168xbf16>
    %c4 = arith.constant 4 : index
    %c0_82 = arith.constant 0 : index
    %c0_83 = arith.constant 0 : index
    %89 = vector.load %arg17[%c4, %c0_82, %c0_83] : memref<9x64x192xbf16, #tpu.memory_space<vmem>>, vector<1x64x192xbf16>
    %90 = vector.shape_cast %89 : vector<1x64x192xbf16> to vector<64x192xbf16>
    %cst_84 = arith.constant dense<0.000000e+00> : vector<64x168xf32>
    %91 = tpu.matmul %90, %88, %cst_84 {dimension_numbers = #tpu.dot_dimension_numbers<[1], [0], [0], [1], [0, 0, 1, 1], [], []>} : vector<64x192xbf16>, vector<192x168xbf16>, vector<64x168xf32> -> vector<64x168xf32>
    %92 = arith.addf %87, %91 : vector<64x168xf32>
    %c0_85 = arith.constant 0 : index
    %c16 = arith.constant 16 : index
    %93 = vector.load %arg20[%c0_85, %c16] : memref<192x210xbf16, #tpu.memory_space<vmem>>, vector<192x168xbf16>
    %c5 = arith.constant 5 : index
    %c0_86 = arith.constant 0 : index
    %c0_87 = arith.constant 0 : index
    %94 = vector.load %arg17[%c5, %c0_86, %c0_87] : memref<9x64x192xbf16, #tpu.memory_space<vmem>>, vector<1x64x192xbf16>
    %95 = vector.shape_cast %94 : vector<1x64x192xbf16> to vector<64x192xbf16>
    %cst_88 = arith.constant dense<0.000000e+00> : vector<64x168xf32>
    %96 = tpu.matmul %95, %93, %cst_88 {dimension_numbers = #tpu.dot_dimension_numbers<[1], [0], [0], [1], [0, 0, 1, 1], [], []>} : vector<64x192xbf16>, vector<192x168xbf16>, vector<64x168xf32> -> vector<64x168xf32>
    %97 = arith.addf %92, %96 : vector<64x168xf32>
    %c0_89 = arith.constant 0 : index
    %c28 = arith.constant 28 : index
    %98 = vector.load %arg20[%c0_89, %c28] : memref<192x210xbf16, #tpu.memory_space<vmem>>, vector<192x168xbf16>
    %c6 = arith.constant 6 : index
    %c0_90 = arith.constant 0 : index
    %c0_91 = arith.constant 0 : index
    %99 = vector.load %arg17[%c6, %c0_90, %c0_91] : memref<9x64x192xbf16, #tpu.memory_space<vmem>>, vector<1x64x192xbf16>
    %100 = vector.shape_cast %99 : vector<1x64x192xbf16> to vector<64x192xbf16>
    %cst_92 = arith.constant dense<0.000000e+00> : vector<64x168xf32>
    %101 = tpu.matmul %100, %98, %cst_92 {dimension_numbers = #tpu.dot_dimension_numbers<[1], [0], [0], [1], [0, 0, 1, 1], [], []>} : vector<64x192xbf16>, vector<192x168xbf16>, vector<64x168xf32> -> vector<64x168xf32>
    %102 = arith.addf %97, %101 : vector<64x168xf32>
    %c0_93 = arith.constant 0 : index
    %c29 = arith.constant 29 : index
    %103 = vector.load %arg20[%c0_93, %c29] : memref<192x210xbf16, #tpu.memory_space<vmem>>, vector<192x168xbf16>
    %c7 = arith.constant 7 : index
    %c0_94 = arith.constant 0 : index
    %c0_95 = arith.constant 0 : index
    %104 = vector.load %arg17[%c7, %c0_94, %c0_95] : memref<9x64x192xbf16, #tpu.memory_space<vmem>>, vector<1x64x192xbf16>
    %105 = vector.shape_cast %104 : vector<1x64x192xbf16> to vector<64x192xbf16>
    %cst_96 = arith.constant dense<0.000000e+00> : vector<64x168xf32>
    %106 = tpu.matmul %105, %103, %cst_96 {dimension_numbers = #tpu.dot_dimension_numbers<[1], [0], [0], [1], [0, 0, 1, 1], [], []>} : vector<64x192xbf16>, vector<192x168xbf16>, vector<64x168xf32> -> vector<64x168xf32>
    %107 = arith.addf %102, %106 : vector<64x168xf32>
    %c0_97 = arith.constant 0 : index
    %c30 = arith.constant 30 : index
    %108 = vector.load %arg20[%c0_97, %c30] : memref<192x210xbf16, #tpu.memory_space<vmem>>, vector<192x168xbf16>
    %c8 = arith.constant 8 : index
    %c0_98 = arith.constant 0 : index
    %c0_99 = arith.constant 0 : index
    %109 = vector.load %arg17[%c8, %c0_98, %c0_99] : memref<9x64x192xbf16, #tpu.memory_space<vmem>>, vector<1x64x192xbf16>
    %110 = vector.shape_cast %109 : vector<1x64x192xbf16> to vector<64x192xbf16>
    %cst_100 = arith.constant dense<0.000000e+00> : vector<64x168xf32>
    %111 = tpu.matmul %110, %108, %cst_100 {dimension_numbers = #tpu.dot_dimension_numbers<[1], [0], [0], [1], [0, 0, 1, 1], [], []>} : vector<64x192xbf16>, vector<192x168xbf16>, vector<64x168xf32> -> vector<64x168xf32>
    %112 = arith.addf %107, %111 : vector<64x168xf32>
    %c0_101 = arith.constant 0 : index
    %c0_102 = arith.constant 0 : index
    %113 = vector.load %arg18[%c0_101, %c0_102] : memref<64x1xf32, #tpu.memory_space<vmem>>, vector<64x1xf32>
    %114 = vector.broadcast %113 : vector<64x1xf32> to vector<64x168xf32>
    %115 = arith.addf %112, %114 : vector<64x168xf32>
    %cst_103 = arith.constant 0.000000e+00 : f32
    %116 = vector.broadcast %cst_103 : f32 to vector<64x168xf32>
    %117 = arith.maximumf %115, %116 : vector<64x168xf32>
    %c0_104 = arith.constant 0 : index
    %c0_105 = arith.constant 0 : index
    %c0_106 = arith.constant 0 : index
    %118 = vector.load %arg19[%c0_104, %c0_105, %c0_106] : memref<1x64x168xf32, #tpu.memory_space<vmem>>, vector<1x64x168xf32>
    %119 = vector.shape_cast %118 : vector<1x64x168xf32> to vector<64x168xf32>
    %120 = vector.shape_cast %117 : vector<64x168xf32> to vector<1x64x168xf32>
    tpu.vector_store %arg19[%c0_104, %c0_105, %c0_106], %120 {strides = array<i32>} : memref<1x64x168xf32, #tpu.memory_space<vmem>>, vector<1x64x168xf32>,
    return
  }
  func.func @transform_0(%arg0: i32) -> (i32, i32, i32) {
    %c0_i32 = arith.constant 0 : i32
    %c0_i32_0 = arith.constant 0 : i32
    %c0_i32_1 = arith.constant 0 : i32
    return %arg0, %c0_i32, %c0_i32_0 : i32, i32, i32
  }
  func.func @transform_1(%arg0: i32) -> (i32, i32) {
    %c0_i32 = arith.constant 0 : i32
    %c0_i32_0 = arith.constant 0 : i32
    %c0_i32_1 = arith.constant 0 : i32
    return %c0_i32, %c0_i32_0 : i32, i32
  }
  func.func @transform_2(%arg0: i32) -> (i32, i32) {
    %c0_i32 = arith.constant 0 : i32
    %c0_i32_0 = arith.constant 0 : i32
    %c0_i32_1 = arith.constant 0 : i32
    return %c0_i32, %c0_i32_0 : i32, i32
  }
  func.func @transform_3(%arg0: i32) -> (i32, i32) {
    %c0_i32 = arith.constant 0 : i32
    %c0_i32_0 = arith.constant 0 : i32
    %c0_i32_1 = arith.constant 0 : i32
    return %c0_i32, %c0_i32_0 : i32, i32
  }
  func.func @transform_4(%arg0: i32) -> (i32, i32) {
    %c0_i32 = arith.constant 0 : i32
    %c0_i32_0 = arith.constant 0 : i32
    %c0_i32_1 = arith.constant 0 : i32
    return %c0_i32, %c0_i32_0 : i32, i32
  }
  func.func @transform_5(%arg0: i32) -> (i32, i32) {
    %c0_i32 = arith.constant 0 : i32
    %c0_i32_0 = arith.constant 0 : i32
    %c0_i32_1 = arith.constant 0 : i32
    return %c0_i32, %c0_i32_0 : i32, i32
  }
  func.func @transform_6(%arg0: i32) -> (i32, i32) {
    %c0_i32 = arith.constant 0 : i32
    %c0_i32_0 = arith.constant 0 : i32
    %c0_i32_1 = arith.constant 0 : i32
    return %c0_i32, %c0_i32_0 : i32, i32
  }
  func.func @transform_7(%arg0: i32) -> (i32, i32) {
    %c0_i32 = arith.constant 0 : i32
    %c0_i32_0 = arith.constant 0 : i32
    %c0_i32_1 = arith.constant 0 : i32
    return %c0_i32, %c0_i32_0 : i32, i32
  }
  func.func @transform_8(%arg0: i32) -> (i32, i32) {
    %c0_i32 = arith.constant 0 : i32
    %c0_i32_0 = arith.constant 0 : i32
    %c0_i32_1 = arith.constant 0 : i32
    return %c0_i32, %c0_i32_0 : i32, i32
  }
  func.func @transform_9(%arg0: i32) -> (i32, i32) {
    %c0_i32 = arith.constant 0 : i32
    %c0_i32_0 = arith.constant 0 : i32
    %c0_i32_1 = arith.constant 0 : i32
    return %c0_i32, %c0_i32_0 : i32, i32
  }
  func.func @transform_10(%arg0: i32) -> (i32, i32) {
    %c0_i32 = arith.constant 0 : i32
    %c0_i32_0 = arith.constant 0 : i32
    %c0_i32_1 = arith.constant 0 : i32
    return %c0_i32, %c0_i32_0 : i32, i32
  }
  func.func @transform_11(%arg0: i32) -> (i32, i32) {
    %c0_i32 = arith.constant 0 : i32
    %c0_i32_0 = arith.constant 0 : i32
    %c0_i32_1 = arith.constant 0 : i32
    return %c0_i32, %c0_i32_0 : i32, i32
  }
  func.func @transform_12(%arg0: i32) -> (i32, i32) {
    %c0_i32 = arith.constant 0 : i32
    %c0_i32_0 = arith.constant 0 : i32
    %c0_i32_1 = arith.constant 0 : i32
    return %c0_i32, %c0_i32_0 : i32, i32
  }
  func.func @transform_13(%arg0: i32) -> (i32, i32) {
    %c0_i32 = arith.constant 0 : i32
    %c0_i32_0 = arith.constant 0 : i32
    %c0_i32_1 = arith.constant 0 : i32
    return %c0_i32, %c0_i32_0 : i32, i32
  }
  func.func @transform_14(%arg0: i32) -> (i32, i32) {
    %c0_i32 = arith.constant 0 : i32
    %c0_i32_0 = arith.constant 0 : i32
    %c0_i32_1 = arith.constant 0 : i32
    return %c0_i32, %c0_i32_0 : i32, i32
  }
  func.func @transform_15(%arg0: i32) -> (i32, i32) {
    %c0_i32 = arith.constant 0 : i32
    %c0_i32_0 = arith.constant 0 : i32
    %c0_i32_1 = arith.constant 0 : i32
    return %c0_i32, %c0_i32_0 : i32, i32
  }
  func.func @transform_16(%arg0: i32) -> (i32, i32, i32) {
    %c0_i32 = arith.constant 0 : i32
    %c0_i32_0 = arith.constant 0 : i32
    %c0_i32_1 = arith.constant 0 : i32
    %c0_i32_2 = arith.constant 0 : i32
    return %c0_i32, %c0_i32_0, %c0_i32_1 : i32, i32, i32
  }
  func.func @transform_17(%arg0: i32) -> (i32, i32) {
    %c0_i32 = arith.constant 0 : i32
    %c0_i32_0 = arith.constant 0 : i32
    %c0_i32_1 = arith.constant 0 : i32
    return %c0_i32, %c0_i32_0 : i32, i32
  }
  func.func @transform_18(%arg0: i32) -> (i32, i32, i32) {
    %c0_i32 = arith.constant 0 : i32
    %c0_i32_0 = arith.constant 0 : i32
    %c0_i32_1 = arith.constant 0 : i32
    return %arg0, %c0_i32, %c0_i32_0 : i32, i32, i32
  }
}

</mosaic_0001>

<bundles_post_ra>
// kernel: ppm_forward.1
= control target key start
LH: loop header
LB: loop body
LE: loop exit
PB: predicated region body
PF: predicated region fallthrough
CT: control target
= control target key end

     0   :  { %s7843_s0 = inlined_call_operand.vmem [shape: f32[2,64,144], index: 0, kind: input, shape index: {}]   ;;  %s7844_s1 = inlined_call_operand.vmem [shape: f32[144,8], index: 1, kind: input, shape index: {}]   ;;  %s7845_s2 = inlined_call_operand.vmem [shape: f32[32,64], index: 2, kind: input, shape index: {}]   ;;  %s7846_s3 = inlined_call_operand.hbm [shape: f32[8,210], index: 3, kind: input, shape index: {}]   ;;  %s7847_s4 = inlined_call_operand.vmem [shape: f32[144,8], index: 4, kind: input, shape index: {}]   ;;  %s7848_s5 = inlined_call_operand.vmem [shape: f32[32,64], index: 5, kind: input, shape index: {}]   ;;  %s7849_s6 = inlined_call_operand.vmem [shape: f32[8,210], index: 6, kind: input, shape index: {}]   ;;  %s7850_s7 = inlined_call_operand.vmem [shape: f32[144,16], index: 7, kind: input, shape index: {}]   ;;  %s7851_s8 = inlined_call_operand.vmem [shape: f32[32,64], index: 8, kind: input, shape index: {}]   ;;  %s7852_s9 = inlined_call_operand.vmem [shape: f32[16,210], index: 9, kind: input, shape index: {}]   ;;  %s7853_s10 = inlined_call_operand.vmem [shape: f32[144,40], index: 10, kind: input, shape index: {}]   ;;  %s7854_s11 = inlined_call_operand.vmem [shape: f32[32,64], index: 11, kind: input, shape index: {}]   ;;  %s7855_s12 = inlined_call_operand.vmem [shape: f32[40,210], index: 12, kind: input, shape index: {}]   ;;  %s7856_s13 = inlined_call_operand.hbm [shape: f32[32,4], index: 13, kind: input, shape index: {}]   ;;  %s7857_s14 = inlined_call_operand.vmem [shape: f32[1,210], index: 14, kind: input, shape index: {}]   ;;  %s7858_s15 = inlined_call_operand.vmem [shape: f32[144,210], index: 15, kind: input, shape index: {}]   ;;  %s7859_s16 = inlined_call_operand.vmem [shape: bf16[9,64,192], index: 16, kind: input, shape index: {}]   ;;  %s7860_s17 = inlined_call_operand.vmem [shape: f32[64,1], index: 17, kind: input, shape index: {}]   ;;  %s7861_s18 = inlined_call_operand.vmem [shape: f32[2,64,168], index: 18, kind: output, shape index: {}]  }
   0x1   :  { %7884 = sst [smem:[#allocation23_spill]] %s7843_s0 }
   0x2   :  { %7885 = sst [smem:[#allocation24_spill]] %s7844_s1 }
   0x3   :  { %7886 = sst [smem:[#allocation25_spill]] %s7845_s2 }
   0x4   :  { %7887 = sst [smem:[#allocation26_spill]] %s7846_s3 }
   0x5   :  { %23 = vsyncpa [#allocation4], 0 }
   0x6   :  { %24 = vsyncpa [#allocation6], 0  ;;  %s5651_s27 = smov 0  }
   0x7 LB: > { %s5657_s28 = sadd.s32 4294967295, %s5536_s27   ;;  %p4521_p0 = scmp.ge.s32.totalorder %s5536_s27, 1  ;;  %s5536_s27 = sphi %s5651_s27, %s30_s27  }
   0x8   : > { %p444_p1 = scmp.lt.s32.totalorder %s5536_s27, 3  ;;  %p7864_p2 = scmp.eq.s32.totalorder %s5657_s28, 0 }
   0x9   : > { %s5538_s29 = smov [#allocation3]   ;;  %s5539_s19 = smov [#allocation5]  }
   0xa   : > { %s463_s30 = sshll.u32 %s5538_s29, 4  ;;  %p5662_p3 = pnand %p4521_p0, %p444_p1  ;;  %s464_s30 = int_to_ptr.vmem [resolvable:$true] %s463_s30 }
   0xb   : > { %s500_s1 = sshll.u32 %s5539_s19, 4  ;;  %s7890_s3 = sld [smem:[#allocation26_spill]]  ;;  %s5674_s1 = int_to_ptr.vmem [resolvable:$true] %s500_s1 }
   0xc   : > { %s7888_s0 = scalar_select %p5662_p3, 1, 0 }
   0xd   : > { %p5272_p4 = pneg %p5662_p3 }
   0xf   : > { %p5670_p5 = pnand %p7864_p2, %p5272_p4 }
  0x11   : > { %s5466_s2 = scalar_lea.hbm %s7890_s3, 256  ;;  %p5468_p7 = pneg %p5670_p5 }
  0x12   : > { %p5467_p6 = scmp.ne.s32.totalorder %s7890_s3, %s5466_s2  ;;  %p5473_p10 = scmp.lt.u32.totalorder %s5466_s2, %s7890_s3 }
  0x14   : > { %p5469_p8 = pnand %p5468_p7, %p5467_p6 }
  0x16   : > { %p5470_p9 = pneg %p5469_p8 }
  0x18   : > { %p5475_p11 = pnand %p5473_p10, %p5470_p9 }
  0x1a   : > { %5478 = shalt.err (!%p5475_p11)
}
  0x1b   : > { %s5479_s29 = scalar_lea.vmem %s464_s30, 256  ;;  %p5487_p1 = scmp.lt.s32.totalorder %s464_s30, %s464_s30 }
  0x1c   : > { %p5480_p12 = scmp.ne.s32.totalorder %s464_s30, %s5479_s29  ;;  %p5488_p4 = scmp.lt.s32.totalorder %s5479_s29, %s5479_s29 }
  0x1e   : > { %p5482_p13 = pnand %p5480_p12, %p5468_p7  ;;  %p5489_p2 = por %p5488_p4, %p5487_p1 }
  0x20   : > { %p5483_p0 = pneg %p5482_p13 }
  0x22   : > { %p5490_p3 = pnand %p5489_p2, %p5483_p0 }
  0x24   : > { %5493 = shalt.err (!%p5490_p3)
}
  0x25   : > { %5275 = dma.hbm_to_vmem [thread:$0]  (!%p5670_p5), %s7890_s3, 256, %s464_s30, [#allocation4]  }
  0x26   : > { %s5494_s23 = scalar_lea.hbm %s7856_s13, 512 }
  0x27   : > { %p5495_p6 = scmp.ne.s32.totalorder %s7856_s13, %s5494_s23  ;;  %p5501_p3 = scmp.lt.u32.totalorder %s5494_s23, %s7856_s13 }
  0x29   : > { %p5497_p8 = pnand %p5495_p6, %p5468_p7 }
  0x2b   : > { %p5498_p2 = pneg %p5497_p8 }
  0x2d   : > { %p5503_p9 = pnand %p5501_p3, %p5498_p2 }
  0x2f   : > { %5506 = shalt.err (!%p5503_p9)
}
  0x30   : > { %s5507_s30 = scalar_lea.vmem %s5674_s1, 512  ;;  %p5515_p13 = scmp.lt.s32.totalorder %s5674_s1, %s5674_s1 }
  0x31   : > { %p5508_p10 = scmp.ne.s32.totalorder %s5674_s1, %s5507_s30  ;;  %p5516_p0 = scmp.lt.s32.totalorder %s5507_s30, %s5507_s30 }
  0x33   : > { %p5510_p11 = pnand %p5508_p10, %p5468_p7  ;;  %p5517_p1 = por %p5516_p0, %p5515_p13 }
  0x35   : > { %p5511_p12 = pneg %p5510_p11 }
  0x37   : > { %p5518_p4 = pnand %p5517_p1, %p5511_p12 }
  0x39   : > { %5521 = shalt.err (!%p5518_p4)
}
  0x3a   : > { %s5540_s19 = smov 128   ;;  %s5541_s21 = smov 8  }
  0x3b   : > { %5278 = dma.hbm_to_vmem [thread:$0]  (!%p5670_p5), %s7856_s13, 512, %s5674_s1, [#allocation6], %s5540_s19, %s5540_s19, %s5541_s21  }
  0x3c   : > { %p7891_p6 = scmp.ne.s32.totalorder %s7888_s0, 0 }
  0x3e   : > { %536 = sbr.rel (%p7891_p6) target bundleno = 2679 (0xa77), region = 92 }
  0x45   : > { %p7892_p7 = scmp.eq.s32.totalorder %s5657_s28, 0 }
  0x47   : > { %5527 = dma.done.wait (%p7892_p7), [#allocation4], 256   ;;  %p7893_p8 = pmov %p7892_p7 }
  0x48   : > { %p7894_p2 = pmov %p7892_p7 }
  0x49   : > { %5529 = vsyncadd (%p7893_p8), [#allocation4], 4294967040 }
  0x4a   : > { %5531 = dma.done.wait (%p7894_p2), [#allocation6], 512   ;;  %p7895_p3 = pmov %p7894_p2 }
  0x4b   : > { %v5542_v0 = vmov 0   ;;  %v5543_v1 = vmov 1   ;;  %p594_p5 = scmp.lt.s32.totalorder %s5657_s28, 1  ;;  %v622_v2 = vld [vmem:[%s7858_s15 + $0x8] sm:$0xff]  ;;  %v624_v3 = vld [vmem:[%s7858_s15 + $0x18] sm:$0xff]  ;;  %v621_v4 = vld [vmem:[%s7858_s15] sm:$0xff] }
  0x4c   : > { %5533 = vsyncadd (%p7895_p3), [#allocation6], 4294966784  ;;  %5309 = vset.pattern.permute.xlu1 %v5542_v0  ;;  %5310 = vset.pattern.permute.xlu0 %v5543_v1  ;;  %v4916_v5 = vpack.c.bf16 %v624_v3, %v622_v2  ;;  %v623_v6 = vld [vmem:[%s7858_s15 + $0x10] sm:$0xff]  ;;  %v626_v7 = vld [vmem:[%s7858_s15 + $0x28] sm:$0xff]  ;;  %s7896_s19 = sld [smem:[#allocation23_spill]]  ;;  %vm657_vm0 = vcmask 130048  }
  0x4d   : > { %v628_v8 = vld [vmem:[%s7858_s15 + $0x38] sm:$0xff]  ;;  %v4918_v9 = vpack.c.bf16 %v623_v6, %v621_v4  ;;  %v625_v11 = vld [vmem:[%s7858_s15 + $0x20] sm:$0xff]  ;;  %v627_v12 = vld [vmem:[%s7858_s15 + $0x30] sm:$0xff]  ;;  %s7934_s28 = smov (!%p594_p5, %s5657_s28), 1  ;;  %s7897_s26 = sld [smem:[#allocation24_spill]]  ;;  %v5544_v2 = vmov 2  }
  0x4e   : > { %v4920_v10 = vpack.c.bf16 %v628_v8, %v626_v7  ;;  %v630_v13 = vld [vmem:[%s7858_s15 + $0x48] sm:$0xff]  ;;  %4917 = vmatprep.subr.bf16.mxu0 %v4916_v5  ;;  %v632_v14 = vld [vmem:[%s7858_s15 + $0x58] sm:$0xff]  ;;  %v4922_v15 = vpack.c.bf16 %v627_v12, %v625_v11  ;;  %v629_v17 = vld [vmem:[%s7858_s15 + $0x40] sm:$0xff]  ;;  %s7866_s20 = sshll.u32 %s7934_s28, 7  ;;  %v5545_v6 = vmov 0.0|0.0   ;;  %v5546_v11 = vmov 3  }
  0x4f   : > { %4919 = vmatpush1.bf16.msra.mxu0 %v4918_v9  ;;  %v4924_v16 = vpack.c.bf16 %v632_v14, %v630_v13  ;;  %v631_v18 = vld [vmem:[%s7858_s15 + $0x50] sm:$0xff]  ;;  %v634_v19 = vld [vmem:[%s7858_s15 + $0x68] sm:$0xff]  ;;  %v636_v20 = vld [vmem:[%s7858_s15 + $0x78] sm:$0xff]  ;;  %s7898_s22 = sld [smem:[#allocation25_spill]]  ;;  %vm940_vm1 = vcmask 523264   ;;  %vm804_vm2 = vcmask 670720  }
  0x50   : > { %4921 = vmatprep.subr.bf16.mxu0 %v4920_v10  ;;  %v4926_v21 = vpack.c.bf16 %v631_v18, %v629_v17  ;;  %v4928_v22 = vpack.c.bf16 %v636_v20, %v634_v19  ;;  %v633_v23 = vld [vmem:[%s7858_s15 + $0x60] sm:$0xff]  ;;  %v635_v24 = vld [vmem:[%s7858_s15 + $0x70] sm:$0xff]  ;;  %v638_v25 = vld [vmem:[%s7858_s15 + $0x88] sm:$0xff]  ;;  %s7875_s2 = smov 114   ;;  %s7871_s0 = smov 112   ;;  %vm1064_vm3 = vcmask 64512  }
  0x51   : > { %v640_v26 = vld [vmem:[%s7858_s15 + $0x98] sm:$0xff]  ;;  %v4930_v27 = vpack.c.bf16 %v635_v24, %v633_v23  ;;  %v637_v30 = vld [vmem:[%s7858_s15 + $0x80] sm:$0xff]  ;;  %v639_v31 = vld [vmem:[%s7858_s15 + $0x90] sm:$0xff]  ;;  %s7869_s1 = smov 127   ;;  %s7867_s23 = smov 100   ;;  %vm3053_vm4 = vcmask 932864  }
  0x52   : > { %s5793_s21 = scalar_lea.vmem %s7896_s19, %s7866_s20  ;;  %v4932_v29 = vpack.c.bf16 %v640_v26, %v638_v25  ;;  %v642_v32 = vld [vmem:[%s7858_s15 + $0xa8] sm:$0xff]  ;;  %v644_v33 = vld [vmem:[%s7858_s15 + $0xb8] sm:$0xff]  ;;  %v4934_v34 = vpack.c.bf16 %v639_v31, %v637_v30  ;;  %v641_v36 = vld [vmem:[%s7858_s15 + $0xa0] sm:$0xff]  ;;  %s7873_s20 = smov 113   ;;  %vm2211_vm5 = vcmask 326656   ;;  %vm2486_vm6 = vcmask 1039360  }
  0x53   : > { %4923 = vmatpush1.bf16.msra.mxu0 %v4922_v15  ;;  %v5802_v28 = vld [vmem:[%s5793_s21 + $0x8] sm:$0xff]  ;;  %v4936_v35 = vpack.c.bf16 %v644_v33, %v642_v32  ;;  %v643_v37 = vld [vmem:[%s7858_s15 + $0xb0] sm:$0xff]  ;;  %v648_v39 = vld [vmem:[%s7858_s15 + $0xd8] sm:$0xff]  ;;  %s7899_s24 = smov 112   ;;  %vm3284_vm7 = vcmask 924672   ;;  %s5554_s29 = smov 126  }
  0x54   : > { %4925 = vmatprep.subr.bf16.mxu0 %v4924_v16  ;;  %4532 = vmatprep.mubr.msk.f32.mxu0 %vm657_vm0, %v5802_v28  ;;  %v646_v38 = vld [vmem:[%s7858_s15 + $0xc8] sm:$0xff]  ;;  %v4938_v40 = vpack.c.bf16 %v643_v37, %v641_v36  ;;  %v645_v42 = vld [vmem:[%s7858_s15 + $0xc0] sm:$0xff]  ;;  %v647_v43 = vld [vmem:[%s7858_s15 + $0xd0] sm:$0xff]  ;;  %vm3515_vm8 = vcmask 916480   ;;  %vm3746_vm9 = vcmask 818176   ;;  %vm3977_vm10 = vcmask 809984  }
  0x55   : > { %v4940_v41 = vpack.c.bf16 %v648_v39, %v646_v38  ;;  %v650_v44 = vld [vmem:[%s7858_s15 + $0xe8] sm:$0xff]  ;;  %v652_v45 = vld [vmem:[%s7858_s15 + $0xf8] sm:$0xff]  ;;  %v649_v46 = vld [vmem:[%s7858_s15 + $0xe0] sm:$0xff]  ;;  %v4942_v49 = vpack.c.bf16 %v647_v43, %v645_v42  ;;  %vm2822_vm11 = vcmask 1031168   ;;  %vm4208_vm12 = vcmask 801792  }
  0x56   : > { %v651_v47 = vld [vmem:[%s7858_s15 + $0xf0] sm:$0xff]  ;;  %v5848_v48 = vld [vmem:[#allocation5 + $0x10] sm:$0xff]  ;;  %v654_v50 = vld [vmem:[%s7858_s15 + $0x108] sm:$0xff]  ;;  %v4944_v54 = vpack.c.bf16 %v652_v45, %v650_v44 }
  0x57   : > { %4927 = vmatpush1.bf16.msra.mxu0 %v4926_v21  ;;  %v656_v51 = vld [vmem:[%s7858_s15 + $0x118] sm:$0xff]  ;;  %1056 = vperm.xlu1 %5309, %v5848_v48   ;;  %v5857_v52 = vld [vmem:[#allocation5 + $0x18] sm:$0xff]  ;;  %v5859_v53 = vld [vmem:[#allocation5] sm:$0xff]  ;;  %v4946_v57 = vpack.c.bf16 %v651_v47, %v649_v46 }
  0x58   : > { %4929 = vmatprep.subr.bf16.mxu0 %v4928_v22  ;;  %1433 = vperm.xlu0 %5310, %v5859_v53   ;;  %v653_v55 = vld [vmem:[%s7858_s15 + $0x100] sm:$0xff]  ;;  %v655_v56 = vld [vmem:[%s7858_s15 + $0x110] sm:$0xff]  ;;  %v5869_v58 = vld [vmem:[#allocation5 + $0x8] sm:$0xff]  ;;  %v4948_v59 = vpack.c.bf16 %v656_v51, %v654_v50 }
  0x59   : > { %v813_v60 = vld [vmem:[%s7897_s26] sm:$0xff]  ;;  %v814_v61 = vld [vmem:[%s7897_s26 + $0x8] sm:$0xff]  ;;  %v4950_v62 = vpack.c.bf16 %v655_v56, %v653_v55  ;;  %v5884_v3 = vld [vmem:[%s5793_s21 + $0x18] sm:$0xff] }
  0x5a   : > { %v5881_v63 = vld [vmem:[%s5793_s21] sm:$0xff]  ;;  %v815_v4 = vld [vmem:[%s7897_s26 + $0x10] sm:$0xff]  ;;  %v816_v5 = vld [vmem:[%s7897_s26 + $0x18] sm:$0xff] }
  0x5b   : > { %4931 = vmatpush1.bf16.msra.mxu0 %v4930_v27  ;;  %1061 = vperm.xlu1 %5309, %v5857_v52   ;;  %v5896_v7 = vld [vmem:[%s5793_s21 + $0x10] sm:$0xff]  ;;  %v5900_v8 = vld [vmem:[%s5793_s21 + $0x28] sm:$0xff]  ;;  %v817_v9 = vld [vmem:[%s7897_s26 + $0x20] sm:$0xff]  ;;  %v4956_v12 = vpack.c.bf16 %v816_v5, %v815_v4 }
  0x5c   : > { %4933 = vmatprep.subr.bf16.mxu0 %v4932_v29  ;;  %1448 = vperm.xlu0 %5310, %v5857_v52   ;;  %v818_v10 = vld [vmem:[%s7897_s26 + $0x28] sm:$0xff]  ;;  %v5912_v13 = vld [vmem:[%s5793_s21 + $0x20] sm:$0xff]  ;;  %v5918_v14 = vld [vmem:[%s5793_s21 + $0x38] sm:$0xff] }
  0x5d   : > { %v819_v15 = vld [vmem:[%s7897_s26 + $0x30] sm:$0xff]  ;;  %v820_v16 = vld [vmem:[%s7897_s26 + $0x38] sm:$0xff]  ;;  %v4959_v17 = vpack.c.bf16 %v818_v10, %v817_v9  ;;  %v5939_v20 = vld [vmem:[%s5793_s21 + $0x48] sm:$0xff] }
  0x5e   : > { %v5935_v18 = vld [vmem:[%s5793_s21 + $0x30] sm:$0xff]  ;;  %v4962_v19 = vpack.c.bf16 %v820_v16, %v819_v15  ;;  %v821_v21 = vld [vmem:[%s7897_s26 + $0x40] sm:$0xff]  ;;  %v822_v22 = vld [vmem:[%s7897_s26 + $0x48] sm:$0xff] }
  0x5f   : > { %4935 = vmatpush1.bf16.msra.mxu0 %v4934_v34  ;;  %5311 = vset.pattern.permute.xlu1 %v5543_v1  ;;  %v4953_v1 = vpack.c.bf16 %v814_v61, %v813_v60  ;;  %v5954_v23 = vld [vmem:[%s5793_s21 + $0x40] sm:$0xff]  ;;  %v4965_v24 = vpack.c.bf16 %v822_v22, %v821_v21  ;;  %v5958_v25 = vld [vmem:[%s5793_s21 + $0x58] sm:$0xff]  ;;  %v823_v26 = vld [vmem:[%s7897_s26 + $0x50] sm:$0xff] }
  0x60   : > { %4937 = vmatprep.subr.bf16.mxu0 %v4936_v35  ;;  %1438 = vperm.xlu1 %5311, %v5869_v58   ;;  %v824_v27 = vld [vmem:[%s7897_s26 + $0x58] sm:$0xff]  ;;  %v5971_v29 = vld [vmem:[%s5793_s21 + $0x50] sm:$0xff]  ;;  %v5975_v31 = vld [vmem:[%s5793_s21 + $0x68] sm:$0xff] }
  0x61   : > { %5313 = vset.pattern.permute.xlu0 %v5544_v2  ;;  %v4968_v30 = vpack.c.bf16 %v824_v27, %v823_v26  ;;  %v825_v32 = vld [vmem:[%s7897_s26 + $0x60] sm:$0xff]  ;;  %v826_v33 = vld [vmem:[%s7897_s26 + $0x68] sm:$0xff]  ;;  %v5993_v36 = vld [vmem:[%s5793_s21 + $0x78] sm:$0xff] }
  0x62   : > { %1815 = vperm.xlu0 %5313, %v5869_v58   ;;  %v5989_v34 = vld [vmem:[%s5793_s21 + $0x60] sm:$0xff]  ;;  %v4971_v35 = vpack.c.bf16 %v826_v33, %v825_v32  ;;  %v827_v37 = vld [vmem:[%s7897_s26 + $0x70] sm:$0xff]  ;;  %v828_v38 = vld [vmem:[%s7897_s26 + $0x78] sm:$0xff] }
  0x63   : > { %4939 = vmatpush1.bf16.msra.mxu0 %v4938_v40  ;;  %v6006_v39 = vld [vmem:[%s5793_s21 + $0x70] sm:$0xff]  ;;  %v4974_v40 = vpack.c.bf16 %v828_v38, %v827_v37  ;;  %v830_v42 = vld [vmem:[%s7897_s26 + $0x88] sm:$0xff]  ;;  %v936_v43 = vld [vmem:[%s7898_s22] sm:$0xff] }
  0x64   : > { %4941 = vmatprep.subr.bf16.mxu0 %v4940_v41  ;;  %1443 = vperm.xlu1 %5311, %v5848_v48   ;;  %v829_v41 = vld [vmem:[%s7897_s26 + $0x80] sm:$0xff] }
  0x66   : > { %5314 = vset.pattern.permute.xlu0 %v5546_v11 }
  0x67   : > { %4943 = vmatpush1.bf16.msra.mxu0 %v4942_v49  ;;  %2193 = vperm.xlu0 %5314, %v5859_v53  }
  0x68   : > { %4945 = vmatprep.subr.bf16.mxu0 %v4944_v54  ;;  %5312 = vset.pattern.permute.xlu1 %v5544_v2 }
  0x69   : > { %1810 = vperm.xlu1 %5312, %v5859_v53  }
  0x6b   : > { %4947 = vmatpush1.bf16.msra.mxu0 %v4946_v57  ;;  %2208 = vperm.xlu0 %5314, %v5857_v52  }
  0x6c   : > { %4949 = vmatprep.subr.bf16.mxu0 %v4948_v59 }
  0x6d   : > { %1820 = vperm.xlu1 %5312, %v5848_v48  }
  0x6f   : > { %4951 = vmatpush1.bf16.msra.mxu0 %v4950_v62  ;;  %5316 = vset.pattern.permute.xlu0 %v5542_v0 }
  0x70   : > { %4952 = vmatprep.subr.bf16.mxu0 %v5545_v6  ;;  %1046 = vperm.xlu0 %5316, %v5859_v53  }
  0x71   : > { %1825 = vperm.xlu1 %5312, %v5857_v52  }
  0x72   : > { %747 = vmatmul.mubr.f32.vlgmr.msra.gmra.mrb[0].mxu0 %v5881_v63 }
  0x73   : > { %4954 = vmatpush1.bf16.msra.mxu0 %v4953_v1  ;;  %4533 = vmatprep.mubr.msk.f32.mxu0 %vm657_vm0, %v5884_v3 }
  0x74   : > { %4955 = vmatprep.subr.bf16.mxu0 %v5545_v6  ;;  %1051 = vperm.xlu0 %5316, %v5869_v58  }
  0x75   : > { %5315 = vset.pattern.permute.xlu1 %v5546_v11 }
  0x76   : > { %753 = vmatmul.mubr.f32.gmra.mrb[2].mxu0 %v5896_v7  ;;  %2198 = vperm.xlu1 %5315, %v5869_v58  }
  0x77   : > { %4957 = vmatpush1.bf16.msra.mxu0 %v4956_v12  ;;  %4534 = vmatprep.mubr.msk.f32.mxu0 %vm657_vm0, %v5900_v8 }
  0x78   : > { %4958 = vmatprep.subr.bf16.mxu0 %v5545_v6 }
  0x7a   : > { %759 = vmatmul.mubr.f32.gmra.mrb[4].mxu0 %v5912_v13  ;;  %2203 = vperm.xlu1 %5315, %v5848_v48  }
  0x7b   : > { %4960 = vmatpush1.bf16.msra.mxu0 %v4959_v17  ;;  %4535 = vmatprep.mubr.msk.f32.mxu0 %vm657_vm0, %v5918_v14 }
  0x7c   : > { %4961 = vmatprep.subr.bf16.mxu0 %v5545_v6 }
  0x7e   : > { %765 = vmatmul.mubr.f32.gmra.mrb[6].mxu0 %v5935_v18  ;;  %5317 = vset.pattern.permute.xlu1 %v5542_v0  ;;  %v4977_v0 = vpack.c.bf16 %v830_v42, %v829_v41 }
  0x7f   : > { %4963 = vmatpush1.bf16.msra.mxu0 %v4962_v19  ;;  %4536 = vmatprep.mubr.msk.f32.mxu0 %vm657_vm0, %v5939_v20 }
  0x80   : > { %4964 = vmatprep.subr.bf16.mxu0 %v5545_v6 }
  0x82   : > { %771 = vmatmul.mubr.f32.gmra.mrb[8].mxu0 %v5954_v23 }
  0x83   : > { %4966 = vmatpush1.bf16.msra.mxu0 %v4965_v24  ;;  %4537 = vmatprep.mubr.msk.f32.mxu0 %vm657_vm0, %v5958_v25 }
  0x84   : > { %4967 = vmatprep.subr.bf16.mxu0 %v5545_v6 }
  0x86   : > { %777 = vmatmul.mubr.f32.gmra.mrb[10].mxu0 %v5971_v29 }
  0x87   : > { %4969 = vmatpush1.bf16.msra.mxu0 %v4968_v30  ;;  %4538 = vmatprep.mubr.msk.f32.mxu0 %vm657_vm0, %v5975_v31 }
  0x88   : > { %4970 = vmatprep.subr.bf16.mxu0 %v5545_v6 }
  0x8a   : > { %783 = vmatmul.mubr.f32.gmra.mrb[12].mxu0 %v5989_v34 }
  0x8b   : > { %4972 = vmatpush1.bf16.msra.mxu0 %v4971_v35  ;;  %4539 = vmatprep.mubr.msk.f32.mxu0 %vm657_vm0, %v5993_v36 }
  0x8c   : > { %4973 = vmatprep.subr.bf16.mxu0 %v5545_v6 }
  0x8e   : > { %789 = vmatmul.mubr.f32.gmra.mrb[14].mxu0 %v6006_v39 }
  0x8f   : > { %4975 = vmatpush1.bf16.msra.mxu0 %v4974_v40  ;;  %4540 = vmatprep.mubr.msk.f32.mxu0 %vm657_vm0, %v5802_v28 }
  0x90   : > { %4976 = vmatprep.subr.bf16.mxu0 %v5545_v6 }
  0x93   : > { %4978 = vmatpush1.bf16.msra.mxu0 %v4977_v0 }
  0x96   : > { %896 = vmatmul.mubr.f32.vlgmr.msra.gmra.mrb[16].mxu0 %v5881_v63 }
  0x97   : > { %4541 = vmatprep.mubr.msk.f32.mxu0 %vm657_vm0, %v5884_v3 }
  0x9a   : > { %901 = vmatmul.mubr.f32.gmra.mrb[18].mxu0 %v5896_v7 }
  0x9b   : > { %4542 = vmatprep.mubr.msk.f32.mxu0 %vm657_vm0, %v5900_v8 }
  0x9e   : > { %906 = vmatmul.mubr.f32.gmra.mrb[20].mxu0 %v5912_v13 }
  0x9f   : > { %4543 = vmatprep.mubr.msk.f32.mxu0 %vm657_vm0, %v5918_v14 }
  0xa2   : > { %911 = vmatmul.mubr.f32.gmra.mrb[22].mxu0 %v5935_v18 }
  0xa3   : > { %4544 = vmatprep.mubr.msk.f32.mxu0 %vm657_vm0, %v5939_v20 }
  0xa6   : > { %916 = vmatmul.mubr.f32.gmra.mrb[24].mxu0 %v5954_v23 }
  0xa7   : > { %4545 = vmatprep.mubr.msk.f32.mxu0 %vm657_vm0, %v5958_v25 }
  0xaa   : > { %921 = vmatmul.mubr.f32.gmra.mrb[26].mxu0 %v5971_v29 }
  0xab   : > { %4546 = vmatprep.mubr.msk.f32.mxu0 %vm657_vm0, %v5975_v31 }
  0xae   : > { %926 = vmatmul.mubr.f32.gmra.mrb[28].mxu0 %v5989_v34 }
  0xaf   : > { %4547 = vmatprep.mubr.msk.f32.mxu0 %vm657_vm0, %v5993_v36 }
  0xb2   : > { %931 = vmatmul.mubr.f32.gmra.mrb[30].mxu0 %v6006_v39 }
  0xb3   : > { %4844 = vmatprep.mubr.msk.f32.mxu0 %vm940_vm1, %v936_v43 }
 0x145   : > { %v748_v44 = vpop.f32.mrb[0].mxu0 }
 0x146   : > { %v750_v45 = vpop.f32.mrb[1].mxu0 }
 0x149   : > { %v754_v46 = vpop.f32.mrb[2].mxu0 }
 0x14a   : > { %v795_v47 = vpack.c.bf16 %v754_v46, %v748_v44  ;;  %v756_v48 = vpop.f32.mrb[3].mxu0  ;;  %v937_v46 = vld [vmem:[%s7898_s22 + $0x8] sm:$0xff] }
 0x14b   : > { %v796_v49 = vpack.c.bf16 %v756_v48, %v750_v45  ;;  %v1039_v45 = vld [vmem:[#allocation3 + $0x8] sm:$0xff]  ;;  %v1038_v48 = vld [vmem:[#allocation3] sm:$0xff] }
 0x14c   : > { %803 = vst [vmem:[#allocation2] sm:$0xff] %v795_v47  ;;  %3005 = vrot.lane.b32.xlu1 %v795_v47, %s7875_s2 }
 0x14d   : > { %805 = vst.msk [vmem:[#allocation2 + $0x8] sm:$0xff] %vm804_vm2, %v796_v49  ;;  %v760_v50 = vpop.f32.mrb[4].mxu0  ;;  %v939_v49 = vld [vmem:[%s7898_s22 + $0x18] sm:$0xff] }
 0x14e   : > { %v762_v51 = vpop.f32.mrb[5].mxu0 }
 0x150   : > { %3236 = vrot.lane.b32.xlu1 %v795_v47, %s7873_s20 }
 0x151   : > { %v766_v52 = vpop.f32.mrb[6].mxu0 }
 0x152   : > { %v797_v53 = vpack.c.bf16 %v766_v52, %v760_v50  ;;  %v768_v54 = vpop.f32.mrb[7].mxu0  ;;  %v5552_v50 = vmov 0.0   ;;  %v1202_v52 = vld [vmem:[%s7847_s4 + $0x8] sm:$0xff] }
 0x153   : > { %v798_v55 = vpack.c.bf16 %v768_v54, %v762_v51  ;;  %1527 = vmatprep.mubr.f32.mxu1 %v5552_v50  ;;  %v1201_v51 = vld [vmem:[%s7847_s4] sm:$0xff] }
 0x154   : > { %806 = vst [vmem:[#allocation2 + $0x10] sm:$0xff] %v797_v53  ;;  %v2338_v56 = vld [vmem:[#allocation2 + $0x8] sm:$0xff]  ;;  %3467 = vrot.lane.b32.xlu1 %v795_v47, %s7871_s0 }
 0x155   : > { %807 = vst.msk [vmem:[#allocation2 + $0x18] sm:$0xff] %vm804_vm2, %v798_v55  ;;  %3007 = vrot.lane.b32.xlu0 %v2338_v56, %s7875_s2  ;;  %v772_v57 = vpop.f32.mrb[8].mxu0  ;;  %v1203_v55 = vld [vmem:[%s7847_s4 + $0x10] sm:$0xff] }
 0x156   : > { %v774_v58 = vpop.f32.mrb[9].mxu0 }
 0x158   : > { %2438 = vrot.lane.b32.xlu1 %v795_v47, %s7869_s1 }
 0x159   : > { %3238 = vrot.lane.b32.xlu0 %v2338_v56, %s7873_s20  ;;  %v778_v59 = vpop.f32.mrb[10].mxu0 }
 0x15a   : > { %v799_v60 = vpack.c.bf16 %v778_v59, %v772_v57  ;;  %v780_v61 = vpop.f32.mrb[11].mxu0  ;;  %v1205_v59 = vld [vmem:[%s7847_s4 + $0x20] sm:$0xff] }
 0x15b   : > { %v800_v62 = vpack.c.bf16 %v780_v61, %v774_v58 }
 0x15c   : > { %808 = vst [vmem:[#allocation2 + $0x20] sm:$0xff] %v799_v60  ;;  %3698 = vrot.lane.b32.xlu1 %v795_v47, %s7867_s23  ;;  %v2340_v11 = vld [vmem:[#allocation2 + $0x18] sm:$0xff]  ;;  %v938_v47 = vld [vmem:[%s7898_s22 + $0x10] sm:$0xff] }
 0x15d   : > { %809 = vst.msk [vmem:[#allocation2 + $0x28] sm:$0xff] %vm804_vm2, %v800_v62  ;;  %3469 = vrot.lane.b32.xlu0 %v2338_v56, %s7871_s0  ;;  %v784_v2 = vpop.f32.mrb[12].mxu0 }
 0x15e   : > { %v786_v4 = vpop.f32.mrb[13].mxu0 }
 0x160   : > { %3009 = vrot.lane.b32.xlu1 %v797_v53, %s7875_s2 }
 0x161   : > { %2440 = vrot.lane.b32.xlu0 %v2338_v56, %s7869_s1  ;;  %v790_v5 = vpop.f32.mrb[14].mxu0 }
 0x162   : > { %v801_v1 = vpack.c.bf16 %v790_v5, %v784_v2  ;;  %v792_v9 = vpop.f32.mrb[15].mxu0  ;;  %v1208_v5 = vld [vmem:[%s7847_s4 + $0x38] sm:$0xff] }
 0x163   : > { %v802_v10 = vpack.c.bf16 %v792_v9, %v786_v4  ;;  %v1207_v4 = vld [vmem:[%s7847_s4 + $0x30] sm:$0xff]  ;;  %v1209_v9 = vld [vmem:[%s7847_s4 + $0x40] sm:$0xff] }
 0x164   : > { %810 = vst [vmem:[#allocation2 + $0x30] sm:$0xff] %v801_v1  ;;  %3240 = vrot.lane.b32.xlu1 %v797_v53, %s7873_s20  ;;  %v2342_v24 = vld [vmem:[#allocation2 + $0x28] sm:$0xff] }
 0x165   : > { %811 = vst.msk [vmem:[#allocation2 + $0x38] sm:$0xff] %vm804_vm2, %v802_v10  ;;  %3700 = vrot.lane.b32.xlu0 %v2338_v56, %s7867_s23  ;;  %v1204_v56 = vld [vmem:[%s7847_s4 + $0x18] sm:$0xff]  ;;  %v1210_v10 = vld [vmem:[%s7847_s4 + $0x48] sm:$0xff] }
 0x166   : > { %v4999_v58 = vpack.c.bf16 %v1204_v56, %v1203_v55 }
 0x168   : > { %3471 = vrot.lane.b32.xlu1 %v797_v53, %s7871_s0  ;;  %v4996_v53 = vpack.c.bf16 %v1202_v52, %v1201_v51 }
 0x169   : > { %3011 = vrot.lane.b32.xlu0 %v2340_v11, %s7875_s2  ;;  %v897_v12 = vpop.f32.mrb[16].mxu0 }
 0x16a   : > { %v899_v15 = vpop.f32.mrb[17].mxu0 }
 0x16b   : > { %v1212_v15 = vld [vmem:[%s7847_s4 + $0x58] sm:$0xff] }
 0x16c   : > { %3013 = vrot.lane.b32.xlu1 %v799_v60, %s7875_s2  ;;  %v2344_v40 = vld [vmem:[#allocation2 + $0x38] sm:$0xff] }
 0x16d   : > { %3242 = vrot.lane.b32.xlu0 %v2340_v11, %s7873_s20  ;;  %v902_v16 = vpop.f32.mrb[18].mxu0 }
 0x16e   : > { %v4979_v17 = vpack.c.bf16 %v902_v16, %v897_v12  ;;  %v904_v19 = vpop.f32.mrb[19].mxu0  ;;  %v1211_v12 = vld [vmem:[%s7847_s4 + $0x50] sm:$0xff] }
 0x16f   : > { %v5011_v16 = vpack.c.bf16 %v1212_v15, %v1211_v12 }
 0x170   : > { %4980 = vmatprep.subr.bf16.mxu0 %v4979_v17  ;;  %3244 = vrot.lane.b32.xlu1 %v799_v60, %s7873_s20 }
 0x171   : > { %3473 = vrot.lane.b32.xlu0 %v2340_v11, %s7871_s0  ;;  %v907_v21 = vpop.f32.mrb[20].mxu0  ;;  %4982 = vmatpush3.bf16.msra.mxu0 %v4979_v17  ;;  %v5008_v11 = vpack.c.bf16 %v1210_v10, %v1209_v9  ;;  %v1213_v17 = vld [vmem:[%s7847_s4 + $0x60] sm:$0xff] }
 0x172   : > { %v909_v22 = vpop.f32.mrb[21].mxu0 }
 0x173   : > { %v1216_v22 = vld [vmem:[%s7847_s4 + $0x78] sm:$0xff] }
 0x174   : > { %3475 = vrot.lane.b32.xlu1 %v799_v60, %s7871_s0  ;;  %v1206_v60 = vld [vmem:[%s7847_s4 + $0x28] sm:$0xff] }
 0x175   : > { %3015 = vrot.lane.b32.xlu0 %v2342_v24, %s7875_s2  ;;  %v912_v26 = vpop.f32.mrb[22].mxu0  ;;  %v5002_v2 = vpack.c.bf16 %v1206_v60, %v1205_v59 }
 0x176   : > { %v4983_v27 = vpack.c.bf16 %v912_v26, %v907_v21  ;;  %v914_v30 = vpop.f32.mrb[23].mxu0  ;;  %v1215_v21 = vld [vmem:[%s7847_s4 + $0x70] sm:$0xff]  ;;  %v1217_v26 = vld [vmem:[%s7847_s4 + $0x80] sm:$0xff] }
 0x178   : > { %4984 = vmatprep.subr.bf16.mxu0 %v4983_v27  ;;  %3017 = vrot.lane.b32.xlu1 %v801_v1, %s7875_s2 }
 0x179   : > { %3246 = vrot.lane.b32.xlu0 %v2342_v24, %s7873_s20  ;;  %v917_v32 = vpop.f32.mrb[24].mxu0  ;;  %4986 = vmatpush3.bf16.msra.mxu0 %v4983_v27  ;;  %v1218_v27 = vld [vmem:[%s7847_s4 + $0x88] sm:$0xff] }
 0x17a   : > { %v919_v33 = vpop.f32.mrb[25].mxu0  ;;  %v5020_v30 = vpack.c.bf16 %v1218_v27, %v1217_v26 }
 0x17c   : > { %3248 = vrot.lane.b32.xlu1 %v801_v1, %s7873_s20 }
 0x17d   : > { %3477 = vrot.lane.b32.xlu0 %v2342_v24, %s7871_s0  ;;  %v922_v35 = vpop.f32.mrb[26].mxu0  ;;  %v5017_v24 = vpack.c.bf16 %v1216_v22, %v1215_v21 }
 0x17e   : > { %v4987_v37 = vpack.c.bf16 %v922_v35, %v917_v32  ;;  %v924_v38 = vpop.f32.mrb[27].mxu0  ;;  %v1175_v35 = vlaneseq }
 0x180   : > { %4988 = vmatprep.subr.bf16.mxu0 %v4987_v37  ;;  %3479 = vrot.lane.b32.xlu1 %v801_v1, %s7871_s0  ;;  %v5005_v1 = vpack.c.bf16 %v1208_v5, %v1207_v4 }
 0x181   : > { %v927_v41 = vpop.f32.mrb[28].mxu0  ;;  %4990 = vmatpush3.bf16.msra.mxu0 %v4987_v37  ;;  %3019 = vrot.lane.b32.xlu0 %v2344_v40, %s7875_s2  ;;  %v1176_v37 = vshrl.u32 %v1175_v35, 7 }
 0x182   : > { %v929_v42 = vpop.f32.mrb[29].mxu0 }
 0x183   : > { %v1177_v42 = vsub.s32 0, %v1176_v37 }
 0x185   : > { %v932_v0 = vpop.f32.mrb[30].mxu0  ;;  %3250 = vrot.lane.b32.xlu0 %v2344_v40, %s7873_s20 }
 0x186   : > { %v4991_v43 = vpack.c.bf16 %v932_v0, %v927_v41  ;;  %v934_v44 = vpop.f32.mrb[31].mxu0 }
 0x188   : > { %4992 = vmatprep.subr.bf16.mxu0 %v4991_v43 }
 0x189   : > { %4994 = vmatpush3.bf16.msra.mxu0 %v4991_v43  ;;  %3481 = vrot.lane.b32.xlu0 %v2344_v40, %s7871_s0  ;;  %v812_v43 = vld [vmem:[%s7857_s14] sm:$0x3]  ;;  %s7913_s0 = smov 100  }
 0x18a   : > { %1077 = vmatprep.subr.mxu0 %v1039_v45  ;;  %v1181_v45 = vsub.s32 1, %v1176_v37 }
 0x18c   : > { %4845 = vmatmul.mubr.msk.f32.vlgmr.msra.gmra.mrb[32].mxu0 %vm940_vm1, %v937_v46  ;;  %v6204_v55 = vrot.slane %v812_v43, %v1181_v45 }
 0x18d   : > { %4847 = vmatprep.mubr.msk.f32.mxu0 %vm940_vm1, %v938_v47  ;;  %1078 = vmatpush1.msra.mxu0 %v1038_v48 }
 0x18e   : > { %4995 = vmatprep.subr.bf16.mxu0 %v5545_v6 }
 0x190   : > { %4848 = vmatmul.mubr.msk.f32.gmra.mrb[34].mxu0 %vm940_vm1, %v939_v49  ;;  %v6202_v49 = vrot.slane %v812_v43, %v1177_v42 }
 0x191   : > { %1141 = vmatprep.mubr.f32.mxu0 %v5552_v50 }
 0x25f   : > { %v4846_v54 = vpop.f32.mrb[32].mxu0 }
 0x260   : > { %v1019_v57 = vpop.f32.mrb[33].mxu0 }
 0x261   : > { %4552 = vmatmul.mubr.msk.f32.vlgmr.msra.gmra.mrb[36].mxu0 %vm1064_vm3, %v1019_v57 }
 0x262   : > { %4997 = vmatpush1.bf16.msra.mxu0 %v4996_v53  ;;  %1147 = vmatprep.mubr.f32.mxu0 %v5552_v50  ;;  %v1057_v53 = vpop.permute.xlu1 %1056 }
 0x263   : > { %4998 = vmatprep.subr.bf16.mxu0 %v5545_v6  ;;  %v4849_v61 = vpop.f32.mrb[34].mxu0 }
 0x264   : > { %v1029_v62 = vpop.f32.mrb[35].mxu0 }
 0x265   : > { %4553 = vmatmul.mubr.msk.f32.gmra.mrb[38].mxu0 %vm1064_vm3, %v4846_v54 }
 0x266   : > { %5000 = vmatpush1.bf16.msra.mxu0 %v4999_v58  ;;  %1153 = vmatprep.mubr.f32.mxu0 %v5552_v50 }
 0x267   : > { %5001 = vmatprep.subr.bf16.mxu0 %v5545_v6 }
 0x269   : > { %4554 = vmatmul.mubr.msk.f32.gmra.mrb[40].mxu0 %vm1064_vm3, %v1029_v62 }
 0x26a   : > { %5003 = vmatpush1.bf16.msra.mxu0 %v5002_v2  ;;  %1159 = vmatprep.mubr.f32.mxu0 %v5552_v50 }
 0x26b   : > { %5004 = vmatprep.subr.bf16.mxu0 %v5545_v6 }
 0x26d   : > { %4555 = vmatmul.mubr.msk.f32.gmra.mrb[42].mxu0 %vm1064_vm3, %v4849_v61 }
 0x26e   : > { %5006 = vmatpush1.bf16.msra.mxu0 %v5005_v1  ;;  %4556 = vmatprep.mubr.msk.f32.mxu0 %vm657_vm0, %v5802_v28  ;;  %v1214_v28 = vld [vmem:[%s7847_s4 + $0x68] sm:$0xff] }
 0x26f   : > { %5007 = vmatprep.subr.bf16.mxu0 %v5545_v6  ;;  %v5014_v19 = vpack.c.bf16 %v1214_v28, %v1213_v17 }
 0x272   : > { %5009 = vmatpush1.bf16.msra.mxu0 %v5008_v11  ;;  %v1062_v11 = vpop.permute.xlu1 %1061 }
 0x273   : > { %5010 = vmatprep.subr.bf16.mxu0 %v5545_v6 }
 0x276   : > { %5012 = vmatpush1.bf16.msra.mxu0 %v5011_v16 }
 0x277   : > { %5013 = vmatprep.subr.bf16.mxu0 %v5545_v6 }
 0x27a   : > { %5015 = vmatpush1.bf16.msra.mxu0 %v5014_v19 }
 0x27b   : > { %5016 = vmatprep.subr.bf16.mxu0 %v5545_v6 }
 0x27e   : > { %5018 = vmatpush1.bf16.msra.mxu0 %v5017_v24 }
 0x27f   : > { %5019 = vmatprep.subr.bf16.mxu0 %v5545_v6 }
 0x282   : > { %5021 = vmatpush1.bf16.msra.mxu0 %v5020_v30 }
 0x285   : > { %1284 = vmatmul.mubr.f32.vlgmr.msra.gmra.mrb[44].mxu0 %v5881_v63  ;;  %v1324_v63 = vld [vmem:[%s7848_s5] sm:$0xff] }
 0x286   : > { %4557 = vmatprep.mubr.msk.f32.mxu0 %vm657_vm0, %v5884_v3  ;;  %v6189_v3 = vpop.permute.xlu0 %1433 }
 0x289   : > { %1289 = vmatmul.mubr.f32.gmra.mrb[46].mxu0 %v5896_v7 }
 0x28a   : > { %4558 = vmatprep.mubr.msk.f32.mxu0 %vm657_vm0, %v5900_v8  ;;  %v6191_v7 = vpop.permute.xlu0 %1448 }
 0x28d   : > { %1294 = vmatmul.mubr.f32.gmra.mrb[48].mxu0 %v5912_v13 }
 0x28e   : > { %4559 = vmatprep.mubr.msk.f32.mxu0 %vm657_vm0, %v5918_v14  ;;  %v6193_v8 = vpop.permute.xlu0 %1815 }
 0x291   : > { %1299 = vmatmul.mubr.f32.gmra.mrb[50].mxu0 %v5935_v18 }
 0x292   : > { %4560 = vmatprep.mubr.msk.f32.mxu0 %vm657_vm0, %v5939_v20  ;;  %v6195_v32 = vpop.permute.xlu0 %2193 }
 0x295   : > { %1304 = vmatmul.mubr.f32.gmra.mrb[52].mxu0 %v5954_v23 }
 0x296   : > { %4561 = vmatprep.mubr.msk.f32.mxu0 %vm657_vm0, %v5958_v25  ;;  %v6197_v33 = vpop.permute.xlu0 %2208 }
 0x299   : > { %1309 = vmatmul.mubr.f32.gmra.mrb[54].mxu0 %v5971_v29 }
 0x29a   : > { %4562 = vmatprep.mubr.msk.f32.mxu0 %vm657_vm0, %v5975_v31  ;;  %v1047_v38 = vpop.permute.xlu0 %1046 }
 0x29d   : > { %1314 = vmatmul.mubr.f32.gmra.mrb[56].mxu0 %v5989_v34 }
 0x29e   : > { %4563 = vmatprep.mubr.msk.f32.mxu0 %vm657_vm0, %v5993_v36  ;;  %v1052_v46 = vpop.permute.xlu0 %1051 }
 0x2a1   : > { %1319 = vmatmul.mubr.f32.gmra.mrb[58].mxu0 %v6006_v39 }
 0x2a2   : > { %4866 = vmatprep.mubr.msk.f32.mxu0 %vm940_vm1, %v1324_v63 }
 0x334   : > { %v1143_v40 = vpop.f32.mrb[36].mxu0 }
 0x335   : > { %v1144_v41 = vadd.f32 %v1143_v40, %v1047_v38  ;;  %v1145_v0 = vpop.f32.mrb[37].mxu0 }
 0x336   : > { %v1146_v44 = vadd.f32 %v1145_v0, %v1047_v38  ;;  %v1426_v38 = vld [vmem:[%s7849_s6 + $0x8] sm:$0xff] }
 0x337   : > { %v1166_v48 = vmax.f32 %v1144_v41, 0.0  ;;  %1463 = vmatprep.subr.mxu1 %v1426_v38 }
 0x338   : > { %v1149_v47 = vpop.f32.mrb[38].mxu0  ;;  %v1167_v54 = vmax.f32 %v1146_v44, 0.0 }
 0x339   : > { %v1150_v51 = vadd.f32 %v1149_v47, %v1052_v46  ;;  %v1151_v52 = vpop.f32.mrb[39].mxu0  ;;  %v1185_v60 = vmul.f32 %v6202_v49, %v1166_v48 }
 0x33a   : > { %v1152_v56 = vadd.f32 %v1151_v52, %v1052_v46  ;;  %v1186_v4 = vmul.f32 %v6204_v55, %v1167_v54 }
 0x33b   : > { %v1168_v57 = vmax.f32 %v1150_v51, 0.0 }
 0x33c   : > { %v1169_v58 = vmax.f32 %v1152_v56, 0.0  ;;  %v1155_v59 = vpop.f32.mrb[40].mxu0 }
 0x33d   : > { %v1187_v61 = vmul.f32 %v6202_v49, %v1168_v57  ;;  %v1156_v62 = vadd.f32 %v1155_v59, %v1057_v53  ;;  %v1157_v2 = vpop.f32.mrb[41].mxu0 }
 0x33e   : > { %v1188_v5 = vmul.f32 %v6204_v55, %v1169_v58  ;;  %v1158_v1 = vadd.f32 %v1157_v2, %v1057_v53  ;;  %v1325_v2 = vld [vmem:[%s7848_s5 + $0x8] sm:$0xff] }
 0x33f   : > { %v1193_v9 = vpack.c.bf16 %v1187_v61, %v1185_v60  ;;  %v1170_v10 = vmax.f32 %v1156_v62, 0.0 }
 0x340   : > { %v1194_v12 = vpack.c.bf16 %v1188_v5, %v1186_v4  ;;  %v1171_v15 = vmax.f32 %v1158_v1, 0.0  ;;  %v1161_v16 = vpop.f32.mrb[42].mxu0  ;;  %v1326_v4 = vld [vmem:[%s7848_s5 + $0x10] sm:$0xff]  ;;  %v1327_v5 = vld [vmem:[%s7848_s5 + $0x18] sm:$0xff]  ;;  %v1425_v1 = vld [vmem:[%s7849_s6] sm:$0xff] }
 0x341   : > { %1197 = vst [vmem:[#allocation2 + $0x40] sm:$0xff] %v1193_v9  ;;  %v1162_v17 = vadd.f32 %v1161_v16, %v1062_v11  ;;  %v1163_v28 = vpop.f32.mrb[43].mxu0  ;;  %3021 = vrot.lane.b32.xlu1 %v1193_v9, %s7875_s2  ;;  %v1189_v21 = vmul.f32 %v6202_v49, %v1170_v10  ;;  %1464 = vmatpush1.msra.mxu1 %v1425_v1 }
 0x342   : > { %1198 = vst.msk [vmem:[#allocation2 + $0x48] sm:$0xff] %vm804_vm2, %v1194_v12  ;;  %v1164_v19 = vadd.f32 %v1163_v28, %v1062_v11  ;;  %v1190_v24 = vmul.f32 %v6204_v55, %v1171_v15  ;;  %5038 = vmatprep.subr.bf16.mxu1 %v5545_v6  ;;  %v6261_v28 = vpop.permute.xlu0 %3007 }
 0x343   : > { %v1172_v22 = vmax.f32 %v1162_v17, 0.0 }
 0x344   : > { %v1173_v26 = vmax.f32 %v1164_v19, 0.0 }
 0x345   : > { %v1191_v27 = vmul.f32 %v6202_v49, %v1172_v22  ;;  %3252 = vrot.lane.b32.xlu1 %v1193_v9, %s7873_s20  ;;  %v1577_v22 = vld [vmem:[%s7850_s7 + $0x8] sm:$0xff] }
 0x346   : > { %v1192_v30 = vmul.f32 %v6204_v55, %v1173_v26 }
 0x347   : > { %v1195_v63 = vpack.c.bf16 %v1191_v27, %v1189_v21  ;;  %v1576_v21 = vld [vmem:[%s7850_s7] sm:$0xff] }
 0x348   : > { %v1196_v35 = vpack.c.bf16 %v1192_v30, %v1190_v24  ;;  %v6271_v24 = vpop.permute.xlu0 %3238  ;;  %v5039_v26 = vpack.c.bf16 %v1577_v22, %v1576_v21  ;;  %v1578_v30 = vld [vmem:[%s7850_s7 + $0x10] sm:$0xff]  ;;  %v1591_v22 = vld [vmem:[%s7850_s7 + $0x78] sm:$0xff] }
 0x349   : > { %1199 = vst [vmem:[#allocation2 + $0x50] sm:$0xff] %v1195_v63  ;;  %v2346_v37 = vld [vmem:[#allocation2 + $0x48] sm:$0xff]  ;;  %3483 = vrot.lane.b32.xlu1 %v1193_v9, %s7899_s24  ;;  %v6247_v9 = vpop.permute.xlu1 %1438  ;;  %v1590_v21 = vld [vmem:[%s7850_s7 + $0x70] sm:$0xff] }
 0x34a   : > { %1200 = vst.msk [vmem:[#allocation2 + $0x58] sm:$0xff] %vm804_vm2, %v1196_v35  ;;  %3023 = vrot.lane.b32.xlu0 %v2346_v37, %s7875_s2 }
 0x34c   : > { %v6282_v38 = vpop.permute.xlu0 %3469 }
 0x34d   : > { %3025 = vrot.lane.b32.xlu1 %v1195_v63, %s7875_s2  ;;  %v6249_v10 = vpop.permute.xlu1 %1443 }
 0x34e   : > { %3254 = vrot.lane.b32.xlu0 %v2346_v37, %s7873_s20 }
 0x351   : > { %3256 = vrot.lane.b32.xlu1 %v1195_v63, %s7873_s20  ;;  %v2348_v40 = vld [vmem:[#allocation2 + $0x58] sm:$0xff]  ;;  %v6251_v11 = vpop.permute.xlu1 %1810 }
 0x352   : > { %3485 = vrot.lane.b32.xlu0 %v2346_v37, %s7899_s24 }
 0x355   : > { %3487 = vrot.lane.b32.xlu1 %v1195_v63, %s7899_s24  ;;  %v6253_v12 = vpop.permute.xlu1 %1820  ;;  %v1579_v63 = vld [vmem:[%s7850_s7 + $0x18] sm:$0xff] }
 0x356   : > { %3027 = vrot.lane.b32.xlu0 %v2348_v40, %s7875_s2 }
 0x358   : > { %v1285_v41 = vpop.f32.mrb[44].mxu0 }
 0x359   : > { %v1287_v42 = vpop.f32.mrb[45].mxu0  ;;  %v6255_v15 = vpop.permute.xlu1 %1825 }
 0x35a   : > { %3258 = vrot.lane.b32.xlu0 %v2348_v40, %s7873_s20  ;;  %v1581_v42 = vld [vmem:[%s7850_s7 + $0x28] sm:$0xff]  ;;  %s7907_s20 = smov 114  }
 0x35c   : > { %v1290_v0 = vpop.f32.mrb[46].mxu0 }
 0x35d   : > { %v5022_v43 = vpack.c.bf16 %v1290_v0, %v1285_v41  ;;  %v1292_v44 = vpop.f32.mrb[47].mxu0  ;;  %v6257_v16 = vpop.permute.xlu1 %2198  ;;  %v1580_v41 = vld [vmem:[%s7850_s7 + $0x20] sm:$0xff] }
 0x35e   : > { %3489 = vrot.lane.b32.xlu0 %v2348_v40, %s7899_s24  ;;  %v5042_v40 = vpack.c.bf16 %v1579_v63, %v1578_v30  ;;  %v5060_v30 = vpack.c.bf16 %v1591_v22, %v1590_v21  ;;  %v1592_v63 = vld [vmem:[%s7850_s7 + $0x80] sm:$0xff]  ;;  %v1959_v22 = vld [vmem:[%s7853_s10 + $0x30] sm:$0xff] }
 0x35f   : > { %5023 = vmatprep.subr.bf16.mxu0 %v5022_v43 }
 0x360   : > { %v1295_v45 = vpop.f32.mrb[48].mxu0  ;;  %5025 = vmatpush3.bf16.msra.mxu0 %v5022_v43 }
 0x361   : > { %v1297_v46 = vpop.f32.mrb[49].mxu0  ;;  %v6259_v17 = vpop.permute.xlu1 %2203 }
 0x362   : > { %v1582_v46 = vld [vmem:[%s7850_s7 + $0x30] sm:$0xff] }
 0x364   : > { %v1300_v47 = vpop.f32.mrb[50].mxu0 }
 0x365   : > { %v5026_v48 = vpack.c.bf16 %v1300_v47, %v1295_v45  ;;  %v1302_v51 = vpop.f32.mrb[51].mxu0  ;;  %v6263_v19 = vpop.permute.xlu1 %3005  ;;  %v5045_v45 = vpack.c.bf16 %v1581_v42, %v1580_v41  ;;  %v1583_v47 = vld [vmem:[%s7850_s7 + $0x38] sm:$0xff]  ;;  %v1953_v42 = vld [vmem:[%s7853_s10] sm:$0xff] }
 0x366   : > { %v5048_v51 = vpack.c.bf16 %v1583_v47, %v1582_v46  ;;  %v1955_v46 = vld [vmem:[%s7853_s10 + $0x10] sm:$0xff]  ;;  %v1956_v47 = vld [vmem:[%s7853_s10 + $0x18] sm:$0xff] }
 0x367   : > { %5027 = vmatprep.subr.bf16.mxu0 %v5026_v48 }
 0x368   : > { %v1305_v52 = vpop.f32.mrb[52].mxu0  ;;  %5029 = vmatpush3.bf16.msra.mxu0 %v5026_v48  ;;  %v6303_v48 = vpop.permute.xlu0 %2440 }
 0x369   : > { %v1307_v53 = vpop.f32.mrb[53].mxu0  ;;  %v6279_v35 = vpop.permute.xlu1 %3236 }
 0x36a   : > { %v1585_v53 = vld [vmem:[%s7850_s7 + $0x48] sm:$0xff] }
 0x36c   : > { %v1310_v54 = vpop.f32.mrb[54].mxu0 }
 0x36d   : > { %v5030_v56 = vpack.c.bf16 %v1310_v54, %v1305_v52  ;;  %v1312_v57 = vpop.f32.mrb[55].mxu0  ;;  %v6293_v44 = vpop.permute.xlu1 %3467  ;;  %v1584_v52 = vld [vmem:[%s7850_s7 + $0x40] sm:$0xff] }
 0x36e   : > { %v5051_v57 = vpack.c.bf16 %v1585_v53, %v1584_v52  ;;  %v6381_v52 = vld [vmem:[%s5793_s21] sm:$0xff] }
 0x36f   : > { %5031 = vmatprep.subr.bf16.mxu0 %v5030_v56 }
 0x370   : > { %v1315_v58 = vpop.f32.mrb[56].mxu0  ;;  %5033 = vmatpush3.bf16.msra.mxu0 %v5030_v56  ;;  %v6317_v56 = vpop.permute.xlu0 %3700 }
 0x371   : > { %v1317_v59 = vpop.f32.mrb[57].mxu0  ;;  %v6314_v54 = vpop.permute.xlu1 %2438  ;;  %7900 = vst [vmem:[#allocation9_spill] sm:$0xff] %v6317_v56 }
 0x372   : > { %v1586_v59 = vld [vmem:[%s7850_s7 + $0x50] sm:$0xff] }
 0x374   : > { %v1320_v60 = vpop.f32.mrb[58].mxu0 }
 0x375   : > { %v5034_v61 = vpack.c.bf16 %v1320_v60, %v1315_v58  ;;  %v1322_v62 = vpop.f32.mrb[59].mxu0  ;;  %v6320_v58 = vld [vmem:[%s5793_s21 + $0x8] sm:$0xff]  ;;  %v1587_v60 = vld [vmem:[%s7850_s7 + $0x58] sm:$0xff] }
 0x376   : > { %v5054_v62 = vpack.c.bf16 %v1587_v60, %v1586_v59  ;;  %v5089_v59 = vpack.c.bf16 %v1956_v47, %v1955_v46  ;;  %v1957_v60 = vld [vmem:[%s7853_s10 + $0x20] sm:$0xff]  ;;  %v1964_v46 = vld [vmem:[%s7853_s10 + $0x58] sm:$0xff] }
 0x377   : > { %5035 = vmatprep.subr.bf16.mxu0 %v5034_v61  ;;  %v1965_v47 = vld [vmem:[%s7853_s10 + $0x60] sm:$0xff] }
 0x378   : > { %5037 = vmatpush3.bf16.msra.mxu0 %v5034_v61  ;;  %v6331_v61 = vpop.permute.xlu1 %3698 }
 0x379   : > { %7901 = vst [vmem:[#allocation10_spill] sm:$0xff] %v6331_v61 }
 0x37b   : > { %4867 = vmatmul.mubr.msk.f32.vlgmr.msra.gmra.mrb[60].mxu0 %vm940_vm1, %v1325_v2  ;;  %v1588_v2 = vld [vmem:[%s7850_s7 + $0x60] sm:$0xff] }
 0x37c   : > { %4869 = vmatprep.mubr.msk.f32.mxu0 %vm940_vm1, %v1326_v4  ;;  %v1589_v4 = vld [vmem:[%s7850_s7 + $0x68] sm:$0xff] }
 0x37d   : > { %v5057_v1 = vpack.c.bf16 %v1589_v4, %v1588_v2  ;;  %v6399_v2 = vld [vmem:[%s5793_s21 + $0x10] sm:$0xff] }
 0x37f   : > { %4870 = vmatmul.mubr.msk.f32.gmra.mrb[62].mxu0 %vm940_vm1, %v1327_v5  ;;  %v6340_v5 = vpop.permute.xlu0 %3011 }
 0x44e   : > { %v4868_v27 = vpop.f32.mrb[60].mxu0 }
 0x44f   : > { %v1406_v37 = vpop.f32.mrb[61].mxu0 }
 0x450   : > { %4568 = vmatmul.mubr.msk.f32.vlgmr.msra.gmra.mrb[0].mxu1 %vm1064_vm3, %v1406_v37  ;;  %v1593_v37 = vld [vmem:[%s7850_s7 + $0x88] sm:$0xff] }
 0x451   : > { %5040 = vmatpush1.bf16.msra.mxu1 %v5039_v26  ;;  %1533 = vmatprep.mubr.f32.mxu1 %v5552_v50  ;;  %v6349_v26 = vpop.permute.xlu1 %3009  ;;  %v5063_v41 = vpack.c.bf16 %v1593_v37, %v1592_v63 }
 0x452   : > { %5041 = vmatprep.subr.bf16.mxu1 %v5545_v6  ;;  %v4871_v0 = vpop.f32.mrb[62].mxu0 }
 0x453   : > { %v1416_v43 = vpop.f32.mrb[63].mxu0 }
 0x454   : > { %4569 = vmatmul.mubr.msk.f32.gmra.mrb[2].mxu1 %vm1064_vm3, %v4868_v27  ;;  %v6351_v27 = vpop.permute.xlu0 %3242 }
 0x455   : > { %5043 = vmatpush1.bf16.msra.mxu1 %v5042_v40  ;;  %1539 = vmatprep.mubr.f32.mxu1 %v5552_v50  ;;  %v6360_v40 = vpop.permute.xlu1 %3240 }
 0x456   : > { %5044 = vmatprep.subr.bf16.mxu1 %v5545_v6 }
 0x458   : > { %4570 = vmatmul.mubr.msk.f32.gmra.mrb[4].mxu1 %vm1064_vm3, %v1416_v43  ;;  %v6369_v43 = vpop.permute.xlu0 %3473 }
 0x459   : > { %5046 = vmatpush1.bf16.msra.mxu1 %v5045_v45  ;;  %1545 = vmatprep.mubr.f32.mxu1 %v5552_v50 }
 0x45a   : > { %5047 = vmatprep.subr.bf16.mxu1 %v5545_v6 }
 0x45c   : > { %4571 = vmatmul.mubr.msk.f32.gmra.mrb[6].mxu1 %vm1064_vm3, %v4871_v0  ;;  %v1954_v0 = vld [vmem:[%s7853_s10 + $0x8] sm:$0xff]  ;;  %v6384_v53 = vpop.permute.xlu0 %3015 }
 0x45d   : > { %5049 = vmatpush1.bf16.msra.mxu1 %v5048_v51  ;;  %4572 = vmatprep.mubr.msk.f32.mxu1 %vm657_vm0, %v6320_v58  ;;  %v5086_v45 = vpack.c.bf16 %v1954_v0, %v1953_v42  ;;  %v6378_v51 = vpop.permute.xlu1 %3471  ;;  %v1962_v42 = vld [vmem:[%s7853_s10 + $0x48] sm:$0xff] }
 0x45e   : > { %5050 = vmatprep.subr.bf16.mxu1 %v5545_v6 }
 0x460   : > { %v6416_v63 = vpop.permute.xlu0 %3246 }
 0x461   : > { %5052 = vmatpush1.bf16.msra.mxu1 %v5051_v57  ;;  %v6387_v57 = vld [vmem:[%s5793_s21 + $0x18] sm:$0xff]  ;;  %v6402_v4 = vpop.permute.xlu1 %3013 }
 0x462   : > { %5053 = vmatprep.subr.bf16.mxu1 %v5545_v6 }
 0x465   : > { %5055 = vmatpush1.bf16.msra.mxu1 %v5054_v62  ;;  %v1958_v62 = vld [vmem:[%s7853_s10 + $0x28] sm:$0xff]  ;;  %v6428_v0 = vpop.permute.xlu1 %3244 }
 0x466   : > { %5056 = vmatprep.subr.bf16.mxu1 %v5545_v6  ;;  %v5092_v21 = vpack.c.bf16 %v1958_v62, %v1957_v60  ;;  %v1968_v62 = vld [vmem:[%s7853_s10 + $0x78] sm:$0xff] }
 0x469   : > { %5058 = vmatpush1.bf16.msra.mxu1 %v5057_v1  ;;  %v6405_v1 = vld [vmem:[%s5793_s21 + $0x28] sm:$0xff] }
 0x46a   : > { %5059 = vmatprep.subr.bf16.mxu1 %v5545_v6 }
 0x46d   : > { %5061 = vmatpush1.bf16.msra.mxu1 %v5060_v30  ;;  %v1960_v30 = vld [vmem:[%s7853_s10 + $0x38] sm:$0xff] }
 0x46e   : > { %5062 = vmatprep.subr.bf16.mxu1 %v5545_v6  ;;  %v5095_v37 = vpack.c.bf16 %v1960_v30, %v1959_v22  ;;  %v1970_v30 = vld [vmem:[%s7853_s10 + $0x88] sm:$0xff] }
 0x471   : > { %5064 = vmatpush1.bf16.msra.mxu1 %v5063_v41  ;;  %v1961_v41 = vld [vmem:[%s7853_s10 + $0x40] sm:$0xff] }
 0x472   : > { %5085 = vmatprep.subr.bf16.mxu1 %v5545_v6 }
 0x474   : > { %1659 = vmatmul.mubr.f32.vlgmr.msra.gmra.mrb[8].mxu1 %v6381_v52 }
 0x475   : > { %5087 = vmatpush1.bf16.msra.mxu1 %v5086_v45  ;;  %4573 = vmatprep.mubr.msk.f32.mxu1 %vm657_vm0, %v6387_v57  ;;  %v1963_v45 = vld [vmem:[%s7853_s10 + $0x50] sm:$0xff] }
 0x476   : > { %5088 = vmatprep.subr.bf16.mxu1 %v5545_v6 }
 0x478   : > { %1664 = vmatmul.mubr.f32.gmra.mrb[10].mxu1 %v6399_v2 }
 0x479   : > { %5090 = vmatpush1.bf16.msra.mxu1 %v5089_v59  ;;  %4574 = vmatprep.mubr.msk.f32.mxu1 %vm657_vm0, %v6405_v1  ;;  %v1966_v59 = vld [vmem:[%s7853_s10 + $0x68] sm:$0xff] }
 0x47a   : > { %5091 = vmatprep.subr.bf16.mxu1 %v5545_v6 }
 0x47c   : > { %1669 = vmatmul.mubr.f32.gmra.mrb[12].mxu1 %v5912_v13  ;;  %v6431_v13 = vpop.permute.xlu0 %3477 }
 0x47d   : > { %5093 = vmatpush1.bf16.msra.mxu1 %v5092_v21  ;;  %4575 = vmatprep.mubr.msk.f32.mxu1 %vm657_vm0, %v5918_v14  ;;  %v5098_v14 = vpack.c.bf16 %v1962_v42, %v1961_v41 }
 0x47e   : > { %5094 = vmatprep.subr.bf16.mxu1 %v5545_v6 }
 0x480   : > { %1674 = vmatmul.mubr.f32.gmra.mrb[14].mxu1 %v5935_v18  ;;  %v6443_v18 = vpop.permute.xlu1 %3475  ;;  %v3020_v60 = vpop.permute.xlu0 %3019 }
 0x481   : > { %5096 = vmatpush1.bf16.msra.mxu1 %v5095_v37  ;;  %4576 = vmatprep.mubr.msk.f32.mxu1 %vm657_vm0, %v5939_v20  ;;  %v5101_v20 = vpack.c.bf16 %v1964_v46, %v1963_v45  ;;  %v5435_v45 = vld [vmem:[%s5793_s21 + $0x40] sm:$0xff] }
 0x482   : > { %5097 = vmatprep.subr.bf16.mxu1 %v5545_v6 }
 0x484   : > { %1679 = vmatmul.mubr.f32.gmra.mrb[16].mxu1 %v5954_v23  ;;  %v5104_v23 = vpack.c.bf16 %v1966_v59, %v1965_v47  ;;  %v3018_v21 = vpop.permute.xlu1 %3017  ;;  %v6465_v22 = vpop.permute.xlu0 %3250 }
 0x485   : > { %5099 = vmatpush1.bf16.msra.mxu1 %v5098_v14  ;;  %4577 = vmatprep.mubr.msk.f32.mxu1 %vm657_vm0, %v5958_v25  ;;  %v1967_v25 = vld [vmem:[%s7853_s10 + $0x70] sm:$0xff] }
 0x486   : > { %5100 = vmatprep.subr.bf16.mxu1 %v5545_v6 }
 0x488   : > { %1684 = vmatmul.mubr.f32.gmra.mrb[18].mxu1 %v5971_v29  ;;  %v5107_v29 = vpack.c.bf16 %v1968_v62, %v1967_v25  ;;  %v5439_v25 = vld [vmem:[%s5793_s21 + $0x60] sm:$0xff]  ;;  %v5440_v62 = vld [vmem:[%s5793_s21 + $0x78] sm:$0xff] }
 0x489   : > { %5102 = vmatpush1.bf16.msra.mxu1 %v5101_v20  ;;  %4578 = vmatprep.mubr.msk.f32.mxu1 %vm657_vm0, %v5975_v31  ;;  %v1969_v31 = vld [vmem:[%s7853_s10 + $0x80] sm:$0xff]  ;;  %v5436_v20 = vld [vmem:[%s5793_s21 + $0x58] sm:$0xff] }
 0x48a   : > { %5103 = vmatprep.subr.bf16.mxu1 %v5545_v6  ;;  %v5110_v37 = vpack.c.bf16 %v1970_v30, %v1969_v31 }
 0x48c   : > { %1689 = vmatmul.mubr.f32.gmra.mrb[20].mxu1 %v5989_v34  ;;  %v6477_v34 = vpop.permute.xlu1 %3248 }
 0x48d   : > { %5105 = vmatpush1.bf16.msra.mxu1 %v5104_v23  ;;  %4579 = vmatprep.mubr.msk.f32.mxu1 %vm657_vm0, %v5993_v36  ;;  %v6482_v36 = vpop.permute.xlu0 %3481  ;;  %v5438_v23 = vld [vmem:[%s5793_s21 + $0x68] sm:$0xff] }
 0x48e   : > { %5106 = vmatprep.subr.bf16.mxu1 %v5545_v6 }
 0x490   : > { %1694 = vmatmul.mubr.f32.gmra.mrb[22].mxu1 %v6006_v39  ;;  %v6485_v41 = vpop.permute.xlu1 %3479  ;;  %v3054_v39 = vsel %vm3053_vm4, %v6263_v19, %v6261_v28  ;;  %v5431_v19 = vld [vmem:[%s5793_s21 + $0x20] sm:$0xff] }
 0x491   : > { %5108 = vmatpush1.bf16.msra.mxu1 %v5107_v29  ;;  %4588 = vmatprep.mubr.msk.f32.mxu1 %vm657_vm0, %v6320_v58  ;;  %v3024_v42 = vpop.permute.xlu0 %3023  ;;  %v3055_v58 = vsel %vm3053_vm4, %v6349_v26, %v6340_v5  ;;  %v5432_v26 = vld [vmem:[%s5793_s21 + $0x38] sm:$0xff]  ;;  %v1699_v29 = vld [vmem:[%s7851_s8] sm:$0xff] }
 0x492   : > { %5109 = vmatprep.subr.bf16.mxu1 %v5545_v6  ;;  %4888 = vmatprep.mubr.msk.f32.mxu0 %vm940_vm1, %v1699_v29 }
 0x494   : > { %v3022_v6 = vpop.permute.xlu1 %3021 }
 0x495   : > { %5111 = vmatpush1.bf16.msra.mxu1 %v5110_v37  ;;  %v3058_v14 = vsel %vm3053_vm4, %v3022_v6, %v3024_v42 }
 0x496   : > { %3102 = vmatprep.subr.bf16.mxu1 %v6261_v28  ;;  %v3056_v28 = vsel %vm3053_vm4, %v6402_v4, %v6384_v53 }
 0x498   : > { %2036 = vmatmul.mubr.f32.vlgmr.msra.gmra.mrb[24].mxu1 %v6381_v52  ;;  %v6498_v52 = vpop.permute.xlu0 %3254 }
 0x499   : > { %3103 = vmatpush1.bf16.msra.mxu1 %v3054_v39  ;;  %4589 = vmatprep.mubr.msk.f32.mxu1 %vm657_vm0, %v6387_v57 }
 0x49a   : > { %3104 = vmatprep.subr.bf16.mxu1 %v6340_v5  ;;  %v6507_v5 = vpop.permute.xlu1 %3252 }
 0x49c   : > { %2041 = vmatmul.mubr.f32.gmra.mrb[26].mxu1 %v6399_v2  ;;  %v6511_v57 = vpop.permute.xlu0 %3485  ;;  %v3057_v2 = vsel %vm3053_vm4, %v3018_v21, %v3020_v60  ;;  %v5441_v21 = vld [vmem:[%s5793_s21 + $0x70] sm:$0xff] }
 0x49d   : > { %3105 = vmatpush1.bf16.msra.mxu1 %v3055_v58  ;;  %4590 = vmatprep.mubr.msk.f32.mxu1 %vm657_vm0, %v6405_v1  ;;  %v5433_v1 = vld [vmem:[%s5793_s21 + $0x30] sm:$0xff] }
 0x49e   : > { %3106 = vmatprep.subr.bf16.mxu1 %v6384_v53  ;;  %v5434_v53 = vld [vmem:[%s5793_s21 + $0x48] sm:$0xff]  ;;  %v6517_v4 = vpop.permute.xlu1 %3483 }
 0x4a0   : > { %2046 = vmatmul.mubr.f32.gmra.mrb[28].mxu1 %v5431_v19  ;;  %v3028_v46 = vpop.permute.xlu0 %3027 }
 0x4a1   : > { %3107 = vmatpush1.bf16.msra.mxu1 %v3056_v28  ;;  %4591 = vmatprep.mubr.msk.f32.mxu1 %vm657_vm0, %v5432_v26 }
 0x4a2   : > { %3108 = vmatprep.subr.bf16.mxu1 %v3020_v60  ;;  %v3026_v47 = vpop.permute.xlu1 %3025  ;;  %v5437_v60 = vld [vmem:[%s5793_s21 + $0x50] sm:$0xff]  ;;  %s7902_s21 = smov 113  }
 0x4a3   : > { %v3059_v59 = vsel %vm3053_vm4, %v3026_v47, %v3028_v46 }
 0x4a4   : > { %2051 = vmatmul.mubr.f32.gmra.mrb[30].mxu1 %v5433_v1 }
 0x4a5   : > { %3109 = vmatpush1.bf16.msra.mxu1 %v3057_v2  ;;  %4592 = vmatprep.mubr.msk.f32.mxu1 %vm657_vm0, %v5434_v53 }
 0x4a6   : > { %3110 = vmatprep.subr.bf16.mxu1 %v3024_v42 }
 0x4a8   : > { %2056 = vmatmul.mubr.f32.gmra.mrb[32].mxu1 %v5435_v45 }
 0x4a9   : > { %3111 = vmatpush1.bf16.msra.mxu1 %v3058_v14  ;;  %4593 = vmatprep.mubr.msk.f32.mxu1 %vm657_vm0, %v5436_v20 }
 0x4aa   : > { %3112 = vmatprep.subr.bf16.mxu1 %v3028_v46 }
 0x4ac   : > { %2061 = vmatmul.mubr.f32.gmra.mrb[34].mxu1 %v5437_v60 }
 0x4ad   : > { %3113 = vmatpush1.bf16.msra.mxu1 %v3059_v59  ;;  %4594 = vmatprep.mubr.msk.f32.mxu1 %vm657_vm0, %v5438_v23 }
 0x4b0   : > { %2066 = vmatmul.mubr.f32.gmra.mrb[36].mxu1 %v5439_v25 }
 0x4b1   : > { %4595 = vmatprep.mubr.msk.f32.mxu1 %vm657_vm0, %v5440_v62 }
 0x4b4   : > { %2071 = vmatmul.mubr.f32.gmra.mrb[38].mxu1 %v5441_v21 }
 0x523   : > { %v1529_v31 = vpop.f32.mrb[0].mxu1 }
 0x524   : > { %v1530_v30 = vadd.f32 %v1529_v31, %v6189_v3  ;;  %v1531_v37 = vpop.f32.mrb[1].mxu1 }
 0x525   : > { %v1532_v42 = vadd.f32 %v1531_v37, %v6189_v3 }
 0x526   : > { %v1552_v6 = vmax.f32 %v1530_v30, 0.0 }
 0x527   : > { %v1535_v39 = vpop.f32.mrb[2].mxu1  ;;  %v1553_v19 = vmax.f32 %v1532_v42, 0.0 }
 0x528   : > { %v1536_v58 = vadd.f32 %v1535_v39, %v6247_v9  ;;  %v1537_v28 = vpop.f32.mrb[3].mxu1  ;;  %v1560_v14 = vmul.f32 %v1552_v6, %v6202_v49 }
 0x529   : > { %v1538_v26 = vadd.f32 %v1537_v28, %v6247_v9  ;;  %v1561_v3 = vmul.f32 %v1553_v19, %v6204_v55 }
 0x52a   : > { %v1554_v2 = vmax.f32 %v1536_v58, 0.0 }
 0x52b   : > { %v1555_v1 = vmax.f32 %v1538_v26, 0.0  ;;  %v1541_v53 = vpop.f32.mrb[4].mxu1 }
 0x52c   : > { %v1562_v45 = vmul.f32 %v1554_v2, %v6202_v49  ;;  %v1542_v46 = vadd.f32 %v1541_v53, %v6249_v10  ;;  %v1543_v20 = vpop.f32.mrb[5].mxu1 }
 0x52d   : > { %v1563_v47 = vmul.f32 %v1555_v1, %v6204_v55  ;;  %v1544_v59 = vadd.f32 %v1543_v20, %v6249_v10 }
 0x52e   : > { %v6545_v60 = vpack.c.bf16 %v1562_v45, %v1560_v14  ;;  %v1556_v23 = vmax.f32 %v1542_v46, 0.0 }
 0x52f   : > { %v1569_v9 = vpack.c.bf16 %v1563_v47, %v1561_v3  ;;  %v1557_v25 = vmax.f32 %v1544_v59, 0.0  ;;  %v1547_v62 = vpop.f32.mrb[6].mxu1 }
 0x530   : > { %1572 = vst [vmem:[#allocation2 + $0x60] sm:$0xff] %v6545_v60  ;;  %3029 = vrot.lane.b32.xlu1 %v6545_v60, %s7875_s2  ;;  %v1548_v21 = vadd.f32 %v1547_v62, %v6191_v7  ;;  %v1549_v29 = vpop.f32.mrb[7].mxu1  ;;  %v1564_v10 = vmul.f32 %v1556_v23, %v6202_v49 }
 0x531   : > { %1573 = vst.msk [vmem:[#allocation2 + $0x68] sm:$0xff] %vm804_vm2, %v1569_v9  ;;  %v1550_v31 = vadd.f32 %v1549_v29, %v6191_v7  ;;  %v1565_v37 = vmul.f32 %v1557_v25, %v6204_v55 }
 0x532   : > { %v1558_v30 = vmax.f32 %v1548_v21, 0.0 }
 0x533   : > { %v1559_v42 = vmax.f32 %v1550_v31, 0.0  ;;  %v1801_v31 = vld [vmem:[%s7852_s9 + $0x8] sm:$0xff] }
 0x534   : > { %v1566_v39 = vmul.f32 %v1558_v30, %v6202_v49  ;;  %3260 = vrot.lane.b32.xlu1 %v6545_v60, %s7902_s21 }
 0x535   : > { %v1567_v6 = vmul.f32 %v1559_v42, %v6204_v55 }
 0x536   : > { %v6559_v58 = vpack.c.bf16 %v1566_v39, %v1564_v10  ;;  %v1803_v10 = vld [vmem:[%s7852_s9 + $0x18] sm:$0xff] }
 0x537   : > { %v1571_v28 = vpack.c.bf16 %v1567_v6, %v1565_v37  ;;  %v5081_v39 = vpack.c.bf16 %v1803_v10, %v1801_v31  ;;  %v1800_v6 = vld [vmem:[%s7852_s9] sm:$0xff] }
 0x538   : > { %1574 = vst [vmem:[#allocation2 + $0x70] sm:$0xff] %v6559_v58  ;;  %v6562_v19 = vld [vmem:[#allocation2 + $0x68] sm:$0xff]  ;;  %3491 = vrot.lane.b32.xlu1 %v6545_v60, %s7899_s24 }
 0x539   : > { %3031 = vrot.lane.b32.xlu0 %v6562_v19, %s7875_s2  ;;  %1575 = vst.msk [vmem:[#allocation2 + $0x78] sm:$0xff] %vm804_vm2, %v1571_v28  ;;  %v1802_v28 = vld [vmem:[%s7852_s9 + $0x10] sm:$0xff] }
 0x53c   : > { %3033 = vrot.lane.b32.xlu1 %v6559_v58, %s7875_s2 }
 0x53d   : > { %3262 = vrot.lane.b32.xlu0 %v6562_v19, %s7902_s21 }
 0x540   : > { %3264 = vrot.lane.b32.xlu1 %v6559_v58, %s7902_s21  ;;  %v6577_v7 = vld [vmem:[#allocation2 + $0x78] sm:$0xff] }
 0x541   : > { %3493 = vrot.lane.b32.xlu0 %v6562_v19, %s7899_s24 }
 0x544   : > { %3495 = vrot.lane.b32.xlu1 %v6559_v58, %s7899_s24 }
 0x545   : > { %3035 = vrot.lane.b32.xlu0 %v6577_v7, %s7875_s2  ;;  %s7912_s2 = smov 127  }
 0x547   : > { %v1660_v26 = vpop.f32.mrb[8].mxu1 }
 0x548   : > { %v1662_v2 = vpop.f32.mrb[9].mxu1 }
 0x549   : > { %3266 = vrot.lane.b32.xlu0 %v6577_v7, %s7902_s21  ;;  %v5083_v2 = vpack.c.bf16 %v1802_v28, %v1800_v6 }
 0x54b   : > { %v1665_v1 = vpop.f32.mrb[10].mxu1 }
 0x54c   : > { %v5065_v53 = vpack.c.bf16 %v1665_v1, %v1660_v26  ;;  %v1667_v14 = vpop.f32.mrb[11].mxu1  ;;  %v1700_v26 = vld [vmem:[%s7851_s8 + $0x8] sm:$0xff]  ;;  %v1701_v1 = vld [vmem:[%s7851_s8 + $0x10] sm:$0xff] }
 0x54d   : > { %3497 = vrot.lane.b32.xlu0 %v6577_v7, %s7899_s24 }
 0x54e   : > { %5066 = vmatprep.subr.bf16.mxu0 %v5065_v53 }
 0x54f   : > { %5068 = vmatpush3.bf16.msra.mxu0 %v5065_v53  ;;  %v1670_v45 = vpop.f32.mrb[12].mxu1  ;;  %v1702_v53 = vld [vmem:[%s7851_s8 + $0x18] sm:$0xff] }
 0x550   : > { %v1672_v46 = vpop.f32.mrb[13].mxu1 }
 0x553   : > { %v1675_v20 = vpop.f32.mrb[14].mxu1 }
 0x554   : > { %v5069_v3 = vpack.c.bf16 %v1675_v20, %v1670_v45  ;;  %v1677_v47 = vpop.f32.mrb[15].mxu1 }
 0x556   : > { %5070 = vmatprep.subr.bf16.mxu0 %v5069_v3 }
 0x557   : > { %5072 = vmatpush3.bf16.msra.mxu0 %v5069_v3  ;;  %v1680_v59 = vpop.f32.mrb[16].mxu1 }
 0x558   : > { %v1682_v23 = vpop.f32.mrb[17].mxu1 }
 0x55b   : > { %v1685_v9 = vpop.f32.mrb[18].mxu1 }
 0x55c   : > { %v5073_v25 = vpack.c.bf16 %v1685_v9, %v1680_v59  ;;  %v1687_v62 = vpop.f32.mrb[19].mxu1 }
 0x55d   : > { %v6612_v62 = vpop.permute.xlu1 %3256 }
 0x55e   : > { %5074 = vmatprep.subr.bf16.mxu0 %v5073_v25 }
 0x55f   : > { %5076 = vmatpush3.bf16.msra.mxu0 %v5073_v25  ;;  %v1690_v21 = vpop.f32.mrb[20].mxu1 }
 0x560   : > { %v1692_v29 = vpop.f32.mrb[21].mxu1 }
 0x561   : > { %v6616_v29 = vpop.permute.xlu1 %3487 }
 0x562   : > { %7903 = vst [vmem:[#allocation11_spill] sm:$0xff] %v6616_v29  ;;  %v5318_v29 = vld [vmem:[%s7859_s16 + $0xc0] ss:$8 sps:$4 sm:$0xff]  }
 0x563   : > { %v1695_v30 = vpop.f32.mrb[22].mxu1 }
 0x564   : > { %v5077_v37 = vpack.c.bf16 %v1695_v30, %v1690_v21  ;;  %v1697_v42 = vpop.f32.mrb[23].mxu1  ;;  %v6614_v21 = vpop.permute.xlu0 %3258 }
 0x566   : > { %5078 = vmatprep.subr.bf16.mxu0 %v5077_v37 }
 0x567   : > { %5080 = vmatpush3.bf16.msra.mxu0 %v5077_v37 }
 0x568   : > { %5082 = vmatprep.subr.bf16.mxu0 %v5081_v39  ;;  %v6618_v31 = vpop.permute.xlu0 %3489 }
 0x569   : > { %7904 = vst [vmem:[#allocation12_spill] sm:$0xff] %v6618_v31 }
 0x56a   : > { %4889 = vmatmul.mubr.msk.f32.vlgmr.msra.gmra.mrb[64].mxu0 %vm940_vm1, %v1700_v26 }
 0x56b   : > { %4891 = vmatprep.mubr.msk.f32.mxu0 %vm940_vm1, %v1701_v1  ;;  %v2037_v14 = vpop.f32.mrb[24].mxu1  ;;  %5084 = vmatpush1.bf16.msra.mxu0 %v5083_v2 }
 0x56c   : > { %v2039_v45 = vpop.f32.mrb[25].mxu1 }
 0x56e   : > { %4892 = vmatmul.mubr.msk.f32.gmra.mrb[66].mxu0 %vm940_vm1, %v1702_v53 }
 0x56f   : > { %v2042_v46 = vpop.f32.mrb[26].mxu1  ;;  %1904 = vmatprep.mubr.f32.mxu0 %v5552_v50 }
 0x570   : > { %v5112_v20 = vpack.c.bf16 %v2042_v46, %v2037_v14  ;;  %v2044_v3 = vpop.f32.mrb[27].mxu1 }
 0x572   : > { %5113 = vmatprep.subr.bf16.mxu0 %v5112_v20 }
 0x573   : > { %v2047_v47 = vpop.f32.mrb[28].mxu1 }
 0x574   : > { %v2049_v59 = vpop.f32.mrb[29].mxu1 }
 0x577   : > { %v2052_v23 = vpop.f32.mrb[30].mxu1 }
 0x578   : > { %v5116_v9 = vpack.c.bf16 %v2052_v23, %v2047_v47  ;;  %v2054_v25 = vpop.f32.mrb[31].mxu1 }
 0x57b   : > { %v2057_v53 = vpop.f32.mrb[32].mxu1 }
 0x57c   : > { %v2059_v14 = vpop.f32.mrb[33].mxu1 }
 0x57d   : > { %v2177_v14 = vld [vmem:[%s7855_s12] sm:$0xff] }
 0x57f   : > { %v2062_v45 = vpop.f32.mrb[34].mxu1 }
 0x580   : > { %v5120_v46 = vpack.c.bf16 %v2062_v45, %v2057_v53  ;;  %v2064_v3 = vpop.f32.mrb[35].mxu1  ;;  %v2180_v53 = vld [vmem:[%s7855_s12 + $0x18] sm:$0xff]  ;;  %v2179_v45 = vld [vmem:[%s7855_s12 + $0x10] sm:$0xff] }
 0x581   : > { %v2184_v3 = vld [vmem:[%s7855_s12 + $0x38] sm:$0xff] }
 0x583   : > { %v2067_v47 = vpop.f32.mrb[36].mxu1 }
 0x584   : > { %v2069_v59 = vpop.f32.mrb[37].mxu1 }
 0x585   : > { %v5130_v59 = vpack.c.bf16 %v2179_v45, %v2177_v14 }
 0x587   : > { %v2072_v23 = vpop.f32.mrb[38].mxu1 }
 0x588   : > { %v5124_v25 = vpack.c.bf16 %v2072_v23, %v2067_v47  ;;  %v2077_v47 = vld [vmem:[%s7854_s11 + $0x8] sm:$0xff] }
 0x5a2   : > { %v3030_v10 = vpop.permute.xlu1 %3029 }
 0x5a6   : > { %v6621_v42 = vpop.permute.xlu1 %3260 }
 0x5aa   : > { %v6625_v6 = vpop.permute.xlu1 %3491 }
 0x5ab   : > { %v3032_v30 = vpop.permute.xlu0 %3031  ;;  %7905 = vst [vmem:[#allocation13_spill] sm:$0xff] %v6625_v6 }
 0x5ac   : > { %3114 = vmatprep.subr.bf16.mxu1 %v3032_v30  ;;  %v3060_v37 = vsel %vm3053_vm4, %v3030_v10, %v3032_v30  ;;  %v2074_v10 = vpop.f32.mrb[39].mxu1 }
 0x5ad   : > { %3115 = vmatpush1.bf16.msra.mxu1 %v3060_v37  ;;  %v2181_v10 = vld [vmem:[%s7855_s12 + $0x20] sm:$0xff] }
 0x5ae   : > { %v3034_v26 = vpop.permute.xlu1 %3033 }
 0x5af   : > { %v6623_v39 = vpop.permute.xlu0 %3262 }
 0x5b3   : > { %v6627_v28 = vpop.permute.xlu0 %3493 }
 0x5b4   : > { %7906 = vst [vmem:[#allocation14_spill] sm:$0xff] %v6627_v28 }
 0x5b7   : > { %v3036_v2 = vpop.permute.xlu0 %3035 }
 0x5b8   : > { %3116 = vmatprep.subr.bf16.mxu1 %v3036_v2  ;;  %v3061_v1 = vsel %vm3053_vm4, %v3034_v26, %v3036_v2 }
 0x5b9   : > { %3117 = vmatpush1.bf16.msra.mxu1 %v3061_v1  ;;  %v2178_v1 = vld [vmem:[%s7855_s12 + $0x8] sm:$0xff] }
 0x63d   : > { %v4890_v30 = vpop.f32.mrb[64].mxu0 }
 0x63e   : > { %v1781_v37 = vpop.f32.mrb[65].mxu0 }
 0x63f   : > { %4584 = vmatmul.mubr.msk.f32.vlgmr.msra.gmra.mrb[68].mxu0 %vm657_vm0, %v1781_v37 }
 0x640   : > { %5115 = vmatpush3.bf16.msra.mxu0 %v5112_v20  ;;  %1910 = vmatprep.mubr.f32.mxu0 %v5552_v50  ;;  %v2076_v20 = vld [vmem:[%s7854_s11] sm:$0xff] }
 0x641   : > { %5117 = vmatprep.subr.bf16.mxu0 %v5116_v9  ;;  %v4893_v26 = vpop.f32.mrb[66].mxu0 }
 0x642   : > { %v1791_v2 = vpop.f32.mrb[67].mxu0 }
 0x643   : > { %4585 = vmatmul.mubr.msk.f32.gmra.mrb[70].mxu0 %vm657_vm0, %v4890_v30  ;;  %v2183_v30 = vld [vmem:[%s7855_s12 + $0x30] sm:$0xff] }
 0x644   : > { %5119 = vmatpush3.bf16.msra.mxu0 %v5116_v9  ;;  %1916 = vmatprep.mubr.f32.mxu0 %v5552_v50  ;;  %v5128_v9 = vpack.c.bf16 %v2180_v53, %v2178_v1  ;;  %v5134_v37 = vpack.c.bf16 %v2183_v30, %v2181_v10  ;;  %v2185_v1 = vld [vmem:[%s7855_s12 + $0x40] sm:$0xff] }
 0x645   : > { %5121 = vmatprep.subr.bf16.mxu0 %v5120_v46 }
 0x647   : > { %4586 = vmatmul.mubr.msk.f32.gmra.mrb[72].mxu0 %vm657_vm0, %v1791_v2  ;;  %v2186_v2 = vld [vmem:[%s7855_s12 + $0x48] sm:$0xff] }
 0x648   : > { %5123 = vmatpush3.bf16.msra.mxu0 %v5120_v46  ;;  %1922 = vmatprep.mubr.f32.mxu0 %v5552_v50  ;;  %v2182_v46 = vld [vmem:[%s7855_s12 + $0x28] sm:$0xff] }
 0x649   : > { %5125 = vmatprep.subr.bf16.mxu0 %v5124_v25  ;;  %v5132_v23 = vpack.c.bf16 %v2184_v3, %v2182_v46 }
 0x64b   : > { %4587 = vmatmul.mubr.msk.f32.gmra.mrb[74].mxu0 %vm657_vm0, %v4893_v26  ;;  %v2079_v26 = vld [vmem:[%s7854_s11 + $0x18] sm:$0xff] }
 0x64c   : > { %5127 = vmatpush3.bf16.msra.mxu0 %v5124_v25  ;;  %4910 = vmatprep.mubr.msk.f32.mxu0 %vm940_vm1, %v2076_v20  ;;  %v2078_v25 = vld [vmem:[%s7854_s11 + $0x10] sm:$0xff] }
 0x64d   : > { %5129 = vmatprep.subr.bf16.mxu0 %v5128_v9 }
 0x64f   : > { %4911 = vmatmul.mubr.msk.f32.vlgmr.msra.gmra.mrb[76].mxu0 %vm940_vm1, %v2077_v47 }
 0x650   : > { %5131 = vmatpush1.bf16.msra.mxu0 %v5130_v59  ;;  %4913 = vmatprep.mubr.msk.f32.mxu0 %vm940_vm1, %v2078_v25 }
 0x651   : > { %5133 = vmatprep.subr.bf16.mxu0 %v5132_v23 }
 0x653   : > { %4914 = vmatmul.mubr.msk.f32.gmra.mrb[78].mxu0 %vm940_vm1, %v2079_v26 }
 0x654   : > { %5135 = vmatpush1.bf16.msra.mxu0 %v5134_v37  ;;  %2288 = vmatprep.mubr.f32.mxu0 %v5552_v50 }
 0x655   : > { %2232 = vmatprep.subr.mxu0 %v2186_v2 }
 0x658   : > { %2233 = vmatpush1.msra.mxu0 %v2185_v1 }
 0x659   : > { %2535 = vmatprep.subr.bf16.mxu0 %v6303_v48 }
 0x712   : > { %v1906_v53 = vpop.f32.mrb[68].mxu0 }
 0x713   : > { %v1907_v20 = vadd.f32 %v1906_v53, %v6251_v11  ;;  %v1908_v9 = vpop.f32.mrb[69].mxu0 }
 0x714   : > { %v1909_v14 = vadd.f32 %v1908_v9, %v6251_v11 }
 0x715   : > { %v1929_v46 = vmax.f32 %v1907_v20, 0.0 }
 0x716   : > { %v1912_v45 = vpop.f32.mrb[70].mxu0  ;;  %v1930_v59 = vmax.f32 %v1909_v14, 0.0 }
 0x717   : > { %v1913_v3 = vadd.f32 %v1912_v45, %v6193_v8  ;;  %v1914_v47 = vpop.f32.mrb[71].mxu0  ;;  %v1937_v37 = vmul.f32 %v1929_v46, %v6202_v49 }
 0x718   : > { %v1915_v23 = vadd.f32 %v1914_v47, %v6193_v8  ;;  %v1938_v11 = vmul.f32 %v1930_v59, %v6204_v55 }
 0x719   : > { %v1931_v10 = vmax.f32 %v1913_v3, 0.0 }
 0x71a   : > { %v1932_v30 = vmax.f32 %v1915_v23, 0.0  ;;  %v1918_v25 = vpop.f32.mrb[72].mxu0 }
 0x71b   : > { %v1939_v26 = vmul.f32 %v1931_v10, %v6202_v49  ;;  %v1919_v2 = vadd.f32 %v1918_v25, %v6253_v12  ;;  %v1920_v1 = vpop.f32.mrb[73].mxu0 }
 0x71c   : > { %v1940_v53 = vmul.f32 %v1932_v30, %v6204_v55  ;;  %v1921_v20 = vadd.f32 %v1920_v1, %v6253_v12 }
 0x71d   : > { %v6695_v9 = vpack.c.bf16 %v1939_v26, %v1937_v37  ;;  %v1933_v45 = vmax.f32 %v1919_v2, 0.0 }
 0x71e   : > { %v1946_v14 = vpack.c.bf16 %v1940_v53, %v1938_v11  ;;  %v1924_v8 = vpop.f32.mrb[74].mxu0  ;;  %v1934_v47 = vmax.f32 %v1921_v20, 0.0 }
 0x71f   : > { %1949 = vst [vmem:[#allocation2 + $0x80] sm:$0xff] %v6695_v9  ;;  %v1925_v46 = vadd.f32 %v1924_v8, %v6255_v15  ;;  %v1926_v3 = vpop.f32.mrb[75].mxu0  ;;  %3037 = vrot.lane.b32.xlu1 %v6695_v9, %s7907_s20  ;;  %v1941_v30 = vmul.f32 %v1933_v45, %v6202_v49 }
 0x720   : > { %1950 = vst.msk [vmem:[#allocation2 + $0x88] sm:$0xff] %vm804_vm2, %v1946_v14  ;;  %v1927_v59 = vadd.f32 %v1926_v3, %v6255_v15  ;;  %v1942_v26 = vmul.f32 %v1934_v47, %v6204_v55  ;;  %v2487_v15 = vsel %vm2486_vm6, %v6314_v54, %v6303_v48  ;;  %v6749_v54 = vpop.permute.xlu0 %3266 }
 0x721   : > { %v1935_v23 = vmax.f32 %v1925_v46, 0.0 }
 0x722   : > { %v1936_v12 = vmax.f32 %v1927_v59, 0.0  ;;  %v4912_v10 = vpop.f32.mrb[76].mxu0 }
 0x723   : > { %v1943_v25 = vmul.f32 %v1935_v23, %v6202_v49  ;;  %v2158_v37 = vpop.f32.mrb[77].mxu0  ;;  %3268 = vrot.lane.b32.xlu1 %v6695_v9, %s7902_s21 }
 0x724   : > { %v1944_v2 = vmul.f32 %v1936_v12, %v6204_v55  ;;  %4600 = vmatmul.mubr.msk.f32.vlgmr.msra.gmra.mrb[80].mxu0 %vm2211_vm5, %v2158_v37  ;;  %v6753_v46 = vpop.permute.xlu0 %3497 }
 0x725   : > { %v6713_v1 = vpack.c.bf16 %v1943_v25, %v1941_v30  ;;  %2536 = vmatpush1.bf16.msra.mxu0 %v2487_v15  ;;  %2294 = vmatprep.mubr.f32.mxu0 %v5552_v50  ;;  %7909 = vst [vmem:[#allocation16_spill] sm:$0xff] %v6753_v46 }
 0x726   : > { %v1948_v11 = vpack.c.bf16 %v1944_v2, %v1942_v26  ;;  %v4915_v53 = vpop.f32.mrb[78].mxu0 }
 0x727   : > { %1951 = vst [vmem:[#allocation2 + $0x90] sm:$0xff] %v6713_v1  ;;  %v6717_v20 = vld [vmem:[#allocation2 + $0x88] sm:$0xff]  ;;  %v2168_v14 = vpop.f32.mrb[79].mxu0  ;;  %3499 = vrot.lane.b32.xlu1 %v6695_v9, %s7899_s24 }
 0x728   : > { %1952 = vst.msk [vmem:[#allocation2 + $0x98] sm:$0xff] %vm804_vm2, %v1948_v11  ;;  %4601 = vmatmul.mubr.msk.f32.gmra.mrb[82].mxu0 %vm2211_vm5, %v4912_v10  ;;  %3039 = vrot.lane.b32.xlu0 %v6717_v20, %s7907_s20 }
 0x729   : > { %2300 = vmatprep.mubr.f32.mxu0 %v5552_v50 }
 0x72b   : > { %3041 = vrot.lane.b32.xlu1 %v6713_v1, %s7907_s20 }
 0x72c   : > { %4602 = vmatmul.mubr.msk.f32.gmra.mrb[84].mxu0 %vm2211_vm5, %v2168_v14  ;;  %3270 = vrot.lane.b32.xlu0 %v6717_v20, %s7902_s21 }
 0x72d   : > { %2306 = vmatprep.mubr.f32.mxu0 %v5552_v50  ;;  %v6747_v50 = vpop.permute.xlu1 %3264 }
 0x72f   : > { %3272 = vrot.lane.b32.xlu1 %v6713_v1, %s7902_s21  ;;  %v6737_v48 = vld [vmem:[#allocation2 + $0x98] sm:$0xff] }
 0x730   : > { %4603 = vmatmul.mubr.msk.f32.gmra.mrb[86].mxu0 %vm2211_vm5, %v4915_v53  ;;  %3501 = vrot.lane.b32.xlu0 %v6717_v20, %s7899_s24 }
 0x731   : > { %v6751_v8 = vpop.permute.xlu1 %3495 }
 0x732   : > { %7908 = vst [vmem:[#allocation15_spill] sm:$0xff] %v6751_v8 }
 0x733   : > { %3503 = vrot.lane.b32.xlu1 %v6713_v1, %s7899_s24 }
 0x734   : > { %3043 = vrot.lane.b32.xlu0 %v6737_v48, %s7907_s20 }
 0x738   : > { %3274 = vrot.lane.b32.xlu0 %v6737_v48, %s7902_s21 }
 0x73c   : > { %3505 = vrot.lane.b32.xlu0 %v6737_v48, %s7899_s24 }
 0x791   : > { %v3038_v45 = vpop.permute.xlu1 %3037 }
 0x795   : > { %v6755_v47 = vpop.permute.xlu1 %3268 }
 0x799   : > { %v6760_v12 = vpop.permute.xlu1 %3499 }
 0x79a   : > { %v3040_v3 = vpop.permute.xlu0 %3039  ;;  %7910 = vst [vmem:[#allocation17_spill] sm:$0xff] %v6760_v12 }
 0x79b   : > { %3118 = vmatprep.subr.bf16.mxu1 %v3040_v3  ;;  %v3062_v59 = vsel %vm3053_vm4, %v3038_v45, %v3040_v3 }
 0x79c   : > { %3119 = vmatpush1.bf16.msra.mxu1 %v3062_v59 }
 0x79d   : > { %v3042_v30 = vpop.permute.xlu1 %3041 }
 0x79e   : > { %v6758_v23 = vpop.permute.xlu0 %3270 }
 0x7a2   : > { %v6762_v10 = vpop.permute.xlu0 %3501 }
 0x7a3   : > { %7911 = vst [vmem:[#allocation18_spill] sm:$0xff] %v6762_v10 }
 0x7a6   : > { %v3044_v25 = vpop.permute.xlu0 %3043 }
 0x7a7   : > { %3120 = vmatprep.subr.bf16.mxu1 %v3044_v25  ;;  %v3063_v37 = vsel %vm3053_vm4, %v3042_v30, %v3044_v25 }
 0x7a8   : > { %3121 = vmatpush1.bf16.msra.mxu1 %v3063_v37 }
 0x7f7   : > { %v2290_v26 = vpop.f32.mrb[80].mxu0 }
 0x7f8   : > { %v2291_v2 = vadd.f32 %v2290_v26, %v6195_v32  ;;  %v2292_v15 = vpop.f32.mrb[81].mxu0 }
 0x7f9   : > { %v2293_v11 = vadd.f32 %v2292_v15, %v6195_v32 }
 0x7fa   : > { %v2313_v14 = vmax.f32 %v2291_v2, 0.0 }
 0x7fb   : > { %v2296_v53 = vpop.f32.mrb[82].mxu0  ;;  %v2314_v59 = vmax.f32 %v2293_v11, 0.0 }
 0x7fc   : > { %v2297_v45 = vadd.f32 %v2296_v53, %v6257_v16  ;;  %v2298_v3 = vpop.f32.mrb[83].mxu0  ;;  %v2321_v30 = vmul.f32 %v2313_v14, %v6202_v49 }
 0x7fd   : > { %v2299_v61 = vadd.f32 %v2298_v3, %v6257_v16  ;;  %v2322_v32 = vmul.f32 %v2314_v59, %v6204_v55 }
 0x7fe   : > { %v2315_v56 = vmax.f32 %v2297_v45, 0.0 }
 0x7ff   : > { %v2316_v12 = vmax.f32 %v2299_v61, 0.0  ;;  %v2302_v10 = vpop.f32.mrb[84].mxu0 }
 0x800   : > { %v2323_v25 = vmul.f32 %v2315_v56, %v6202_v49  ;;  %v2303_v37 = vadd.f32 %v2302_v10, %v6259_v17  ;;  %v2304_v26 = vpop.f32.mrb[85].mxu0 }
 0x801   : > { %v2324_v2 = vmul.f32 %v2316_v12, %v6204_v55  ;;  %v2305_v15 = vadd.f32 %v2304_v26, %v6259_v17 }
 0x802   : > { %v6775_v53 = vpack.c.bf16 %v2323_v25, %v2321_v30  ;;  %v2317_v61 = vmax.f32 %v2303_v37, 0.0 }
 0x803   : > { %v2330_v11 = vpack.c.bf16 %v2324_v2, %v2322_v32  ;;  %v2308_v16 = vpop.f32.mrb[86].mxu0  ;;  %v2318_v56 = vmax.f32 %v2305_v15, 0.0  ;;  %v6821_v2 = vld [vmem:[#allocation2 + $0x18] sm:$0xff]  ;;  %v6829_v15 = vld [vmem:[#allocation2 + $0x20] sm:$0xff] }
 0x804   : > { %2333 = vst [vmem:[#allocation2 + $0xa0] sm:$0xff] %v6775_v53  ;;  %v2309_v14 = vadd.f32 %v2308_v16, %v6197_v33  ;;  %v2310_v45 = vpop.f32.mrb[87].mxu0  ;;  %3045 = vrot.lane.b32.xlu1 %v6775_v53, %s7907_s20  ;;  %v2325_v3 = vmul.f32 %v2317_v61, %v6202_v49  ;;  %v6841_v16 = vld [vmem:[#allocation2 + $0x30] sm:$0xff]  ;;  %v6845_v61 = vld [vmem:[#allocation2 + $0x38] sm:$0xff] }
 0x805   : > { %2334 = vst.msk [vmem:[#allocation2 + $0xa8] sm:$0xff] %vm804_vm2, %v2330_v11  ;;  %v2311_v12 = vadd.f32 %v2310_v45, %v6197_v33  ;;  %v2326_v30 = vmul.f32 %v2318_v56, %v6204_v55  ;;  %v5320_v33 = vld [vmem:[%s7859_s16 + $0xc4] ss:$8 sps:$4 sm:$0xff]   ;;  %v6865_v56 = vld [vmem:[#allocation2 + $0x50] sm:$0xff] }
 0x806   : > { %v2319_v10 = vmax.f32 %v2309_v14, 0.0  ;;  %4672 = vmatprep.mubr.msk.bf16.mxu1 %vm940_vm1, %v5320_v33  ;;  %v6833_v11 = vld [vmem:[#allocation2 + $0x28] sm:$0xff]  ;;  %v6853_v14 = vld [vmem:[#allocation2 + $0x40] sm:$0xff] }
 0x807   : > { %v2320_v17 = vmax.f32 %v2311_v12, 0.0  ;;  %v6857_v45 = vld [vmem:[#allocation2 + $0x48] sm:$0xff]  ;;  %v6869_v12 = vld [vmem:[#allocation2 + $0x58] sm:$0xff] }
 0x808   : > { %v2327_v59 = vmul.f32 %v2319_v10, %v6202_v49  ;;  %3276 = vrot.lane.b32.xlu1 %v6775_v53, %s7902_s21  ;;  %v6807_v49 = vld [vmem:[#allocation2 + $0x10] sm:$0xff]  ;;  %v6917_v10 = vpop.permute.xlu1 %3272 }
 0x809   : > { %v2328_v25 = vmul.f32 %v2320_v17, %v6204_v55  ;;  %v6925_v17 = vld [vmem:[#allocation2 + $0x8] sm:$0xff] }
 0x80a   : > { %v6789_v37 = vpack.c.bf16 %v2327_v59, %v2325_v3  ;;  %v6931_v59 = vld [vmem:[#allocation2] sm:$0xff] }
 0x80b   : > { %v2332_v26 = vpack.c.bf16 %v2328_v25, %v2326_v30  ;;  %v6935_v30 = vpop.permute.xlu0 %3274 }
 0x80c   : > { %2335 = vst [vmem:[#allocation2 + $0xb0] sm:$0xff] %v6789_v37  ;;  %v6792_v32 = vld [vmem:[#allocation2 + $0xa8] sm:$0xff]  ;;  %3507 = vrot.lane.b32.xlu1 %v6775_v53, %s7899_s24  ;;  %v6929_v3 = vpop.permute.xlu1 %3503 }
 0x80d   : > { %2336 = vst.msk [vmem:[#allocation2 + $0xb8] sm:$0xff] %vm804_vm2, %v2332_v26  ;;  %3047 = vrot.lane.b32.xlu0 %v6792_v32, %s7907_s20  ;;  %7914 = vst [vmem:[#allocation19_spill] sm:$0xff] %v6929_v3 }
 0x80f   : > { %v6945_v33 = vpop.permute.xlu0 %3505 }
 0x810   : > { %3049 = vrot.lane.b32.xlu1 %v6789_v37, %s7907_s20  ;;  %7915 = vst [vmem:[#allocation20_spill] sm:$0xff] %v6945_v33 }
 0x811   : > { %3278 = vrot.lane.b32.xlu0 %v6792_v32, %s7902_s21 }
 0x814   : > { %2442 = vrot.lane.b32.xlu1 %v6807_v49, %s7912_s2  ;;  %v6813_v55 = vld [vmem:[#allocation2 + $0xb8] sm:$0xff] }
 0x815   : > { %3509 = vrot.lane.b32.xlu0 %v6792_v32, %s7899_s24 }
 0x818   : > { %3280 = vrot.lane.b32.xlu1 %v6789_v37, %s7902_s21 }
 0x819   : > { %3051 = vrot.lane.b32.xlu0 %v6813_v55, %s7907_s20 }
 0x81c   : > { %3511 = vrot.lane.b32.xlu1 %v6789_v37, %s7899_s24 }
 0x81d   : > { %2444 = vrot.lane.b32.xlu0 %v6821_v2, %s7912_s2 }
 0x820   : > { %3702 = vrot.lane.b32.xlu1 %v6807_v49, %s7913_s0 }
 0x821   : > { %3704 = vrot.lane.b32.xlu0 %v6821_v2, %s7913_s0 }
 0x824   : > { %2446 = vrot.lane.b32.xlu1 %v6829_v15, %s7912_s2 }
 0x825   : > { %2448 = vrot.lane.b32.xlu0 %v6833_v11, %s7912_s2 }
 0x828   : > { %3706 = vrot.lane.b32.xlu1 %v6829_v15, %s7913_s0 }
 0x829   : > { %3708 = vrot.lane.b32.xlu0 %v6833_v11, %s7913_s0 }
 0x82c   : > { %2450 = vrot.lane.b32.xlu1 %v6841_v16, %s7912_s2 }
 0x82d   : > { %2452 = vrot.lane.b32.xlu0 %v6845_v61, %s7912_s2 }
 0x830   : > { %3710 = vrot.lane.b32.xlu1 %v6841_v16, %s7913_s0 }
 0x831   : > { %3712 = vrot.lane.b32.xlu0 %v6845_v61, %s7913_s0 }
 0x834   : > { %2454 = vrot.lane.b32.xlu1 %v6853_v14, %s7912_s2 }
 0x835   : > { %2456 = vrot.lane.b32.xlu0 %v6857_v45, %s7912_s2 }
 0x838   : > { %3714 = vrot.lane.b32.xlu1 %v6853_v14, %s7913_s0 }
 0x839   : > { %3716 = vrot.lane.b32.xlu0 %v6857_v45, %s7913_s0 }
 0x83c   : > { %2458 = vrot.lane.b32.xlu1 %v6865_v56, %s7912_s2 }
 0x83d   : > { %2460 = vrot.lane.b32.xlu0 %v6869_v12, %s7912_s2 }
 0x840   : > { %3718 = vrot.lane.b32.xlu1 %v6865_v56, %s7913_s0 }
 0x841   : > { %3720 = vrot.lane.b32.xlu0 %v6869_v12, %s7913_s0 }
 0x844   : > { %2462 = vrot.lane.b32.xlu1 %v6545_v60, %s7912_s2 }
 0x845   : > { %2464 = vrot.lane.b32.xlu0 %v6562_v19, %s7912_s2 }
 0x848   : > { %3722 = vrot.lane.b32.xlu1 %v6545_v60, %s7913_s0 }
 0x849   : > { %3282 = vrot.lane.b32.xlu0 %v6813_v55, %s7902_s21  ;;  %s5553_s21 = smov 99  }
 0x84c   : > { %2466 = vrot.lane.b32.xlu1 %v6559_v58, %s7912_s2 }
 0x84d   : > { %3724 = vrot.lane.b32.xlu0 %v6562_v19, %s7913_s0 }
 0x850   : > { %3726 = vrot.lane.b32.xlu1 %v6559_v58, %s7913_s0 }
 0x851   : > { %2468 = vrot.lane.b32.xlu0 %v6577_v7, %s7912_s2 }
 0x854   : > { %2470 = vrot.lane.b32.xlu1 %v6695_v9, %s7912_s2 }
 0x855   : > { %3728 = vrot.lane.b32.xlu0 %v6577_v7, %s7913_s0 }
 0x858   : > { %3730 = vrot.lane.b32.xlu1 %v6695_v9, %s7913_s0 }
 0x859   : > { %2472 = vrot.lane.b32.xlu0 %v6717_v20, %s7912_s2 }
 0x85c   : > { %2474 = vrot.lane.b32.xlu1 %v6713_v1, %s7912_s2 }
 0x85d   : > { %3732 = vrot.lane.b32.xlu0 %v6717_v20, %s7913_s0 }
 0x860   : > { %3734 = vrot.lane.b32.xlu1 %v6713_v1, %s7913_s0 }
 0x861   : > { %2476 = vrot.lane.b32.xlu0 %v6737_v48, %s7912_s2 }
 0x864   : > { %2478 = vrot.lane.b32.xlu1 %v6775_v53, %s7912_s2 }
 0x865   : > { %3736 = vrot.lane.b32.xlu0 %v6737_v48, %s7913_s0 }
 0x868   : > { %3738 = vrot.lane.b32.xlu1 %v6775_v53, %s7913_s0 }
 0x869   : > { %2480 = vrot.lane.b32.xlu0 %v6792_v32, %s7912_s2 }
 0x86c   : > { %2482 = vrot.lane.b32.xlu1 %v6789_v37, %s7912_s2 }
 0x86d   : > { %3740 = vrot.lane.b32.xlu0 %v6792_v32, %s7913_s0 }
 0x870   : > { %3742 = vrot.lane.b32.xlu1 %v6789_v37, %s7913_s0 }
 0x871   : > { %3931 = vrot.lane.b32.xlu0 %v6925_v17, %s5553_s21 }
 0x874   : > { %3929 = vrot.lane.b32.xlu1 %v6931_v59, %s5553_s21 }
 0x875   : > { %3935 = vrot.lane.b32.xlu0 %v6821_v2, %s5553_s21 }
 0x876   : > { %v3046_v25 = vpop.permute.xlu1 %3045 }
 0x878   : > { %3933 = vrot.lane.b32.xlu1 %v6807_v49, %s5553_s21 }
 0x879   : > { %3513 = vrot.lane.b32.xlu0 %v6813_v55, %s7899_s24 }
 0x87a   : > { %v6943_v26 = vpop.permute.xlu1 %3276 }
 0x87c   : > { %3937 = vrot.lane.b32.xlu1 %v6829_v15, %s5553_s21 }
 0x87d   : > { %3939 = vrot.lane.b32.xlu0 %v6833_v11, %s5553_s21 }
 0x87e   : > { %v6951_v3 = vpop.permute.xlu1 %3507 }
 0x87f   : > { %7916 = vst [vmem:[#allocation21_spill] sm:$0xff] %v6951_v3  ;;  %v3048_v8 = vpop.permute.xlu0 %3047 }
 0x880   : > { %3122 = vmatprep.subr.bf16.mxu1 %v3048_v8  ;;  %v3064_v46 = vsel %vm3053_vm4, %v3046_v25, %v3048_v8  ;;  %3941 = vrot.lane.b32.xlu1 %v6841_v16, %s5553_s21 }
 0x881   : > { %3943 = vrot.lane.b32.xlu0 %v6845_v61, %s5553_s21  ;;  %3123 = vmatpush1.bf16.msra.mxu1 %v3064_v46 }
 0x882   : > { %v3050_v33 = vpop.permute.xlu1 %3049 }
 0x883   : > { %v6958_v6 = vpop.permute.xlu0 %3278 }
 0x884   : > { %3945 = vrot.lane.b32.xlu1 %v6853_v14, %s5553_s21 }
 0x885   : > { %3947 = vrot.lane.b32.xlu0 %v6857_v45, %s5553_s21 }
 0x886   : > { %v2443_v3 = vpop.permute.xlu1 %2442 }
 0x887   : > { %v6964_v28 = vpop.permute.xlu0 %3509 }
 0x888   : > { %7917 = vst [vmem:[#allocation22_spill] sm:$0xff] %v6964_v28  ;;  %3949 = vrot.lane.b32.xlu1 %v6865_v56, %s5553_s21 }
 0x889   : > { %3951 = vrot.lane.b32.xlu0 %v6869_v12, %s5553_s21 }
 0x88a   : > { %v6970_v8 = vpop.permute.xlu1 %3280 }
 0x88b   : > { %v3052_v46 = vpop.permute.xlu0 %3051 }
 0x88c   : > { %3124 = vmatprep.subr.bf16.mxu1 %v3052_v46  ;;  %v3065_v25 = vsel %vm3053_vm4, %v3050_v33, %v3052_v46  ;;  %3953 = vrot.lane.b32.xlu1 %v6545_v60, %s5553_s21  ;;  %v5321_v33 = vld [vmem:[%s7859_s16 + $0xd4] ss:$8 sps:$4 sm:$0xff]   ;;  %v3285_v60 = vsel %vm3284_vm7, %v6279_v35, %v6271_v24 }
 0x88d   : > { %3955 = vrot.lane.b32.xlu0 %v6562_v19, %s5553_s21  ;;  %3125 = vmatpush1.bf16.msra.mxu1 %v3065_v25 }
 0x88e   : > { %3333 = vmatprep.subr.bf16.mxu1 %v6271_v24  ;;  %v6981_v28 = vpop.permute.xlu1 %3511  ;;  %v3286_v24 = vsel %vm3284_vm7, %v6360_v40, %v6351_v27 }
 0x88f   : > { %v2445_v31 = vpop.permute.xlu0 %2444 }
 0x890   : > { %2537 = vmatprep.subr.bf16.mxu0 %v2445_v31  ;;  %v2488_v46 = vsel %vm2486_vm6, %v2443_v3, %v2445_v31  ;;  %3135 = vmatmul.mubr.bf16.vlgmr.msra.gmra.mrb[40].mxu1 %v5318_v29  ;;  %v5324_v29 = vld [vmem:[%s7859_s16 + $0xe4] ss:$8 sps:$4 sm:$0xff]  }
 0x891   : > { %3959 = vrot.lane.b32.xlu0 %v6577_v7, %s5553_s21  ;;  %2538 = vmatpush1.bf16.msra.mxu0 %v2488_v46  ;;  %v5323_v7 = vld [vmem:[%s7859_s16 + $0xd0] ss:$8 sps:$4 sm:$0xff]  }
 0x892   : > { %3334 = vmatpush1.bf16.msra.mxu1 %v3285_v60  ;;  %3957 = vrot.lane.b32.xlu1 %v6559_v58, %s5553_s21  ;;  %v6994_v19 = vpop.permute.xlu1 %3702 }
 0x893   : > { %3335 = vmatprep.subr.bf16.mxu1 %v6351_v27  ;;  %v6997_v25 = vpop.permute.xlu0 %3704  ;;  %4673 = vmatprep.mubr.msk.bf16.mxu1 %vm940_vm1, %v5321_v33  ;;  %v3287_v27 = vsel %vm3284_vm7, %v6428_v0, %v6416_v63  ;;  %v5326_v33 = vld [vmem:[%s7859_s16 + $0xe0] ss:$8 sps:$4 sm:$0xff]   ;;  %v3288_v0 = vsel %vm3284_vm7, %v6477_v34, %v6465_v22 }
 0x895   : > { %3963 = vrot.lane.b32.xlu0 %v6717_v20, %s5553_s21 }
 0x896   : > { %3336 = vmatpush1.bf16.msra.mxu1 %v3286_v24  ;;  %3961 = vrot.lane.b32.xlu1 %v6695_v9, %s5553_s21  ;;  %v2447_v35 = vpop.permute.xlu1 %2446 }
 0x897   : > { %3337 = vmatprep.subr.bf16.mxu1 %v6416_v63  ;;  %v2449_v58 = vpop.permute.xlu0 %2448  ;;  %v5356_v63 = vld [vmem:[%s7859_s16 + $0x44] ss:$8 sps:$4 sm:$0xff]  }
 0x898   : > { %2539 = vmatprep.subr.bf16.mxu0 %v2449_v58  ;;  %v2489_v31 = vsel %vm2486_vm6, %v2447_v35, %v2449_v58  ;;  %3145 = vmatmul.mubr.bf16.gmra.mrb[44].mxu1 %v5323_v7  ;;  %v5327_v7 = vld [vmem:[%s7859_s16 + $0xf4] ss:$8 sps:$4 sm:$0xff]   ;;  %v5329_v58 = vld [vmem:[%s7859_s16 + $0xf0] ss:$8 sps:$4 sm:$0xff]  }
 0x899   : > { %3967 = vrot.lane.b32.xlu0 %v6737_v48, %s5553_s21  ;;  %2540 = vmatpush1.bf16.msra.mxu0 %v2489_v31  ;;  %v5332_v31 = vld [vmem:[%s7859_s16 + $0x104] ss:$8 sps:$4 sm:$0xff]  }
 0x89a   : > { %3338 = vmatpush1.bf16.msra.mxu1 %v3287_v27  ;;  %3965 = vrot.lane.b32.xlu1 %v6713_v1, %s5553_s21  ;;  %v7022_v40 = vpop.permute.xlu1 %3706 }
 0x89b   : > { %3339 = vmatprep.subr.bf16.mxu1 %v6465_v22  ;;  %v7025_v3 = vpop.permute.xlu0 %3708  ;;  %4674 = vmatprep.mubr.msk.bf16.mxu1 %vm940_vm1, %v5324_v29  ;;  %v3289_v22 = vsel %vm3284_vm7, %v6507_v5, %v6498_v52 }
 0x89c   : > { %4620 = vmatprep.mubr.msk.bf16.mxu0 %vm940_vm1, %v5356_v63 }
 0x89d   : > { %3971 = vrot.lane.b32.xlu0 %v6792_v32, %s5553_s21 }
 0x89e   : > { %3340 = vmatpush1.bf16.msra.mxu1 %v3288_v0  ;;  %3969 = vrot.lane.b32.xlu1 %v6775_v53, %s5553_s21  ;;  %v2451_v46 = vpop.permute.xlu1 %2450 }
 0x89f   : > { %3341 = vmatprep.subr.bf16.mxu1 %v6498_v52  ;;  %v2453_v60 = vpop.permute.xlu0 %2452  ;;  %v3290_v52 = vsel %vm3284_vm7, %v6612_v62, %v6614_v21  ;;  %v3291_v62 = vsel %vm3284_vm7, %v6621_v42, %v6623_v39  ;;  %v3292_v42 = vsel %vm3284_vm7, %v6747_v50, %v6749_v54 }
 0x8a0   : > { %2541 = vmatprep.subr.bf16.mxu0 %v2453_v60  ;;  %v2490_v24 = vsel %vm2486_vm6, %v2451_v46, %v2453_v60  ;;  %3155 = vmatmul.mubr.bf16.gmra.mrb[48].mxu1 %v5326_v33  ;;  %v3293_v46 = vsel %vm3284_vm7, %v6755_v47, %v6758_v23  ;;  %v3294_v60 = vsel %vm3284_vm7, %v6917_v10, %v6935_v30 }
 0x8a1   : > { %2776 = vrot.lane.b32.xlu0 %v6925_v17, %s5554_s29  ;;  %2542 = vmatpush1.bf16.msra.mxu0 %v2490_v24  ;;  %v3295_v24 = vsel %vm3284_vm7, %v6943_v26, %v6958_v6 }
 0x8a2   : > { %3342 = vmatpush1.bf16.msra.mxu1 %v3289_v22  ;;  %3973 = vrot.lane.b32.xlu1 %v6789_v37, %s5553_s21  ;;  %v7054_v34 = vpop.permute.xlu1 %3710 }
 0x8a3   : > { %3343 = vmatprep.subr.bf16.mxu1 %v6614_v21  ;;  %v7057_v35 = vpop.permute.xlu0 %3712  ;;  %4675 = vmatprep.mubr.msk.bf16.mxu1 %vm940_vm1, %v5327_v7 }
 0x8a5   : > { %2484 = vrot.lane.b32.xlu0 %v6813_v55, %s7912_s2  ;;  %s5555_s2 = smov 98  }
 0x8a6   : > { %3344 = vmatpush1.bf16.msra.mxu1 %v3290_v52  ;;  %2774 = vrot.lane.b32.xlu1 %v6931_v59, %s5554_s29  ;;  %v2455_v5 = vpop.permute.xlu1 %2454  ;;  %v3516_v52 = vsel %vm3515_vm8, %v6293_v44, %v6282_v38  ;;  %v5335_v44 = vld [vmem:[%s7859_s16 + $0x110] ss:$8 sps:$4 sm:$0xff]  }
 0x8a7   : > { %3345 = vmatprep.subr.bf16.mxu1 %v6623_v39  ;;  %v2457_v29 = vpop.permute.xlu0 %2456 }
 0x8a8   : > { %2543 = vmatprep.subr.bf16.mxu0 %v2457_v29  ;;  %v2491_v27 = vsel %vm2486_vm6, %v2455_v5, %v2457_v29  ;;  %3165 = vmatmul.mubr.bf16.gmra.mrb[52].mxu1 %v5329_v58  ;;  %v5330_v58 = vld [vmem:[%s7859_s16 + $0x100] ss:$8 sps:$4 sm:$0xff]  }
 0x8a9   : > { %3744 = vrot.lane.b32.xlu0 %v6813_v55, %s7913_s0  ;;  %2544 = vmatpush1.bf16.msra.mxu0 %v2491_v27 }
 0x8aa   : > { %3346 = vmatpush1.bf16.msra.mxu1 %v3291_v62  ;;  %4160 = vrot.lane.b32.xlu1 %v6931_v59, %s5555_s2  ;;  %v7082_v21 = vpop.permute.xlu1 %3714 }
 0x8ab   : > { %3347 = vmatprep.subr.bf16.mxu1 %v6749_v54  ;;  %v7085_v33 = vpop.permute.xlu0 %3716  ;;  %4692 = vmatprep.mubr.msk.bf16.mxu1 %vm940_vm1, %v5332_v31 }
 0x8ad   : > { %4162 = vrot.lane.b32.xlu0 %v6925_v17, %s5555_s2 }
 0x8ae   : > { %3348 = vmatpush1.bf16.msra.mxu1 %v3292_v42  ;;  %2778 = vrot.lane.b32.xlu1 %v6807_v49, %s5554_s29  ;;  %v2459_v39 = vpop.permute.xlu1 %2458  ;;  %v5336_v42 = vld [vmem:[%s7859_s16 + $0x124] ss:$8 sps:$4 sm:$0xff]  }
 0x8af   : > { %3349 = vmatprep.subr.bf16.mxu1 %v6758_v23  ;;  %v2461_v63 = vpop.permute.xlu0 %2460 }
 0x8b0   : > { %2545 = vmatprep.subr.bf16.mxu0 %v2461_v63  ;;  %v2492_v0 = vsel %vm2486_vm6, %v2459_v39, %v2461_v63 }
 0x8b1   : > { %2780 = vrot.lane.b32.xlu0 %v6821_v2, %s5554_s29  ;;  %2546 = vmatpush1.bf16.msra.mxu0 %v2492_v0 }
 0x8b2   : > { %3350 = vmatpush1.bf16.msra.mxu1 %v3293_v46  ;;  %4164 = vrot.lane.b32.xlu1 %v6807_v49, %s5555_s2  ;;  %v7104_v50 = vpop.permute.xlu1 %3718 }
 0x8b3   : > { %3351 = vmatprep.subr.bf16.mxu1 %v6935_v30  ;;  %v7107_v54 = vpop.permute.xlu0 %3720 }
 0x8b5   : > { %4166 = vrot.lane.b32.xlu0 %v6821_v2, %s5555_s2 }
 0x8b6   : > { %3352 = vmatpush1.bf16.msra.mxu1 %v3294_v60  ;;  %2782 = vrot.lane.b32.xlu1 %v6829_v15, %s5554_s29  ;;  %v2463_v47 = vpop.permute.xlu1 %2462  ;;  %v5339_v60 = vld [vmem:[%s7859_s16 + $0x134] ss:$8 sps:$4 sm:$0xff]  }
 0x8b7   : > { %3353 = vmatprep.subr.bf16.mxu1 %v6958_v6  ;;  %v2465_v23 = vpop.permute.xlu0 %2464 }
 0x8b8   : > { %2547 = vmatprep.subr.bf16.mxu0 %v2465_v23  ;;  %v2493_v7 = vsel %vm2486_vm6, %v2463_v47, %v2465_v23  ;;  %v7918_v23 = vld [vmem:[#allocation12_spill] sm:$0xff] }
 0x8b9   : > { %2784 = vrot.lane.b32.xlu0 %v6833_v11, %s5554_s29  ;;  %2548 = vmatpush1.bf16.msra.mxu0 %v2493_v7 }
 0x8ba   : > { %3354 = vmatpush1.bf16.msra.mxu1 %v3295_v24  ;;  %4168 = vrot.lane.b32.xlu1 %v6829_v15, %s5555_s2  ;;  %v7125_v10 = vpop.permute.xlu1 %3722 }
 0x8bb   : > { %v3283_v30 = vpop.permute.xlu0 %3282 }
 0x8bc   : > { %3355 = vmatprep.subr.bf16.mxu1 %v3283_v30  ;;  %v3296_v22 = vsel %vm3284_vm7, %v6970_v8, %v3283_v30  ;;  %v5333_v8 = vld [vmem:[%s7859_s16 + $0x114] ss:$8 sps:$4 sm:$0xff]   ;;  %v5341_v30 = vld [vmem:[%s7859_s16 + $0x130] ss:$8 sps:$4 sm:$0xff]  }
 0x8bd   : > { %4170 = vrot.lane.b32.xlu0 %v6833_v11, %s5555_s2 }
 0x8be   : > { %3356 = vmatpush1.bf16.msra.mxu1 %v3296_v22  ;;  %2786 = vrot.lane.b32.xlu1 %v6841_v16, %s5554_s29  ;;  %v2467_v6 = vpop.permute.xlu1 %2466  ;;  %v7220_v22 = vld [vmem:[#allocation2 + $0x60] sm:$0xff] }
 0x8bf   : > { %3564 = vmatprep.subr.bf16.mxu1 %v6282_v38  ;;  %v7137_v26 = vpop.permute.xlu0 %3724  ;;  %v3517_v38 = vsel %vm3515_vm8, %v6378_v51, %v6369_v43 }
 0x8c1   : > { %2788 = vrot.lane.b32.xlu0 %v6845_v61, %s5554_s29  ;;  %3366 = vmatmul.mubr.bf16.vlgmr.msra.gmra.mrb[40].mxu1 %v5330_v58 }
 0x8c2   : > { %3565 = vmatpush1.bf16.msra.mxu1 %v3516_v52  ;;  %4172 = vrot.lane.b32.xlu1 %v6841_v16, %s5555_s2  ;;  %v7149_v5 = vpop.permute.xlu1 %3726  ;;  %v5344_v52 = vld [vmem:[%s7859_s16 + $0x144] ss:$8 sps:$4 sm:$0xff]  }
 0x8c3   : > { %3566 = vmatprep.subr.bf16.mxu1 %v6369_v43  ;;  %v2469_v29 = vpop.permute.xlu0 %2468  ;;  %4693 = vmatprep.mubr.msk.bf16.mxu1 %vm940_vm1, %v5333_v8  ;;  %v3518_v43 = vsel %vm3515_vm8, %v6443_v18, %v6431_v13  ;;  %v5338_v18 = vld [vmem:[%s7859_s16 + $0x120] ss:$8 sps:$4 sm:$0xff]  }
 0x8c4   : > { %2549 = vmatprep.subr.bf16.mxu0 %v2469_v29  ;;  %v2494_v31 = vsel %vm2486_vm6, %v2467_v6, %v2469_v29  ;;  %v7920_v6 = vld [vmem:[#allocation14_spill] sm:$0xff]  ;;  %v7921_v29 = vld [vmem:[#allocation13_spill] sm:$0xff] }
 0x8c5   : > { %4174 = vrot.lane.b32.xlu0 %v6845_v61, %s5555_s2  ;;  %2550 = vmatpush1.bf16.msra.mxu0 %v2494_v31  ;;  %v3522_v31 = vsel %vm3515_vm8, %v7921_v29, %v7920_v6  ;;  %v7929_v29 = vld [vmem:[#allocation21_spill] sm:$0xff] }
 0x8c6   : > { %3567 = vmatpush1.bf16.msra.mxu1 %v3517_v38  ;;  %2790 = vrot.lane.b32.xlu1 %v6853_v14, %s5554_s29  ;;  %v2471_v27 = vpop.permute.xlu1 %2470 }
 0x8c7   : > { %3568 = vmatprep.subr.bf16.mxu1 %v6431_v13  ;;  %v7165_v62 = vpop.permute.xlu0 %3728  ;;  %v3519_v13 = vsel %vm3515_vm8, %v6485_v41, %v6482_v36  ;;  %v3520_v41 = vsel %vm3515_vm8, %v6517_v4, %v6511_v57 }
 0x8c9   : > { %2792 = vrot.lane.b32.xlu0 %v6857_v45, %s5554_s29  ;;  %3376 = vmatmul.mubr.bf16.gmra.mrb[44].mxu1 %v5335_v44  ;;  %v7922_v44 = vld [vmem:[#allocation16_spill] sm:$0xff] }
 0x8ca   : > { %3569 = vmatpush1.bf16.msra.mxu1 %v3518_v43  ;;  %4176 = vrot.lane.b32.xlu1 %v6853_v14, %s5555_s2  ;;  %v3731_v51 = vpop.permute.xlu1 %3730  ;;  %v7242_v43 = vld [vmem:[#allocation2 + $0x68] sm:$0xff] }
 0x8cb   : > { %3570 = vmatprep.subr.bf16.mxu1 %v6482_v36  ;;  %v2473_v39 = vpop.permute.xlu0 %2472  ;;  %4694 = vmatprep.mubr.msk.bf16.mxu1 %vm940_vm1, %v5336_v42 }
 0x8cc   : > { %2551 = vmatprep.subr.bf16.mxu0 %v2473_v39  ;;  %v2495_v63 = vsel %vm2486_vm6, %v2471_v27, %v2473_v39 }
 0x8cd   : > { %4178 = vrot.lane.b32.xlu0 %v6857_v45, %s5555_s2  ;;  %2552 = vmatpush1.bf16.msra.mxu0 %v2495_v63  ;;  %v7249_v63 = vld [vmem:[#allocation2 + $0x70] sm:$0xff] }
 0x8ce   : > { %3571 = vmatpush1.bf16.msra.mxu1 %v3519_v13  ;;  %2794 = vrot.lane.b32.xlu1 %v6865_v56, %s5554_s29  ;;  %v2475_v0 = vpop.permute.xlu1 %2474 }
 0x8cf   : > { %3572 = vmatprep.subr.bf16.mxu1 %v6511_v57  ;;  %v7191_v46 = vpop.permute.xlu0 %3732  ;;  %v7919_v57 = vld [vmem:[#allocation11_spill] sm:$0xff] }
 0x8d0   : > { %v7198_v36 = vsel %vm3746_vm9, %v3731_v51, %v7191_v46  ;;  %v3521_v4 = vsel %vm3515_vm8, %v7919_v57, %v7918_v23  ;;  %v7923_v51 = vld [vmem:[#allocation15_spill] sm:$0xff]  ;;  %v7270_v57 = vld [vmem:[#allocation2 + $0x78] sm:$0xff] }
 0x8d1   : > { %2796 = vrot.lane.b32.xlu0 %v6869_v12, %s5554_s29  ;;  %3386 = vmatmul.mubr.bf16.gmra.mrb[48].mxu1 %v5338_v18  ;;  %v3523_v39 = vsel %vm3515_vm8, %v7923_v51, %v7922_v44  ;;  %v7924_v18 = vld [vmem:[#allocation18_spill] sm:$0xff]  ;;  %v5342_v51 = vld [vmem:[%s7859_s16 + $0x140] ss:$8 sps:$4 sm:$0xff]  }
 0x8d2   : > { %3573 = vmatpush1.bf16.msra.mxu1 %v3520_v41  ;;  %4180 = vrot.lane.b32.xlu1 %v6865_v56, %s5555_s2  ;;  %v7207_v47 = vpop.permute.xlu1 %3734 }
 0x8d3   : > { %3574 = vmatprep.subr.bf16.mxu1 %v7918_v23  ;;  %v2477_v7 = vpop.permute.xlu0 %2476  ;;  %4695 = vmatprep.mubr.msk.bf16.mxu1 %vm940_vm1, %v5339_v60  ;;  %v7925_v60 = vld [vmem:[#allocation17_spill] sm:$0xff] }
 0x8d4   : > { %2553 = vmatprep.subr.bf16.mxu0 %v2477_v7  ;;  %v2496_v24 = vsel %vm2486_vm6, %v2475_v0, %v2477_v7  ;;  %v3524_v41 = vsel %vm3515_vm8, %v7925_v60, %v7924_v18  ;;  %v7926_v7 = vld [vmem:[#allocation20_spill] sm:$0xff]  ;;  %v7931_v60 = vld [vmem:[#allocation10_spill] sm:$0xff] }
 0x8d5   : > { %4182 = vrot.lane.b32.xlu0 %v6869_v12, %s5555_s2  ;;  %2554 = vmatpush1.bf16.msra.mxu0 %v2496_v24 }
 0x8d6   : > { %3575 = vmatpush1.bf16.msra.mxu1 %v3521_v4  ;;  %2798 = vrot.lane.b32.xlu1 %v7220_v22, %s5554_s29  ;;  %v2479_v58 = vpop.permute.xlu1 %2478  ;;  %v7927_v4 = vld [vmem:[#allocation19_spill] sm:$0xff] }
 0x8d7   : > { %3576 = vmatprep.subr.bf16.mxu1 %v7920_v6  ;;  %v7225_v8 = vpop.permute.xlu0 %3736  ;;  %v7928_v6 = vld [vmem:[#allocation22_spill] sm:$0xff] }
 0x8d9   : > { %3975 = vrot.lane.b32.xlu0 %v6813_v55, %s5553_s21  ;;  %3396 = vmatmul.mubr.bf16.gmra.mrb[52].mxu1 %v5341_v30  ;;  %v3525_v30 = vsel %vm3515_vm8, %v7927_v4, %v7926_v7 }
 0x8da   : > { %3577 = vmatpush1.bf16.msra.mxu1 %v3522_v31  ;;  %4184 = vrot.lane.b32.xlu1 %v7220_v22, %s5555_s2  ;;  %v7237_v38 = vpop.permute.xlu1 %3738  ;;  %v3526_v31 = vsel %vm3515_vm8, %v7929_v29, %v7928_v6 }
 0x8db   : > { %3578 = vmatprep.subr.bf16.mxu1 %v7922_v44  ;;  %v2481_v27 = vpop.permute.xlu0 %2480  ;;  %4712 = vmatprep.mubr.msk.bf16.mxu1 %vm940_vm1, %v5344_v52 }
 0x8dc   : > { %2555 = vmatprep.subr.bf16.mxu0 %v2481_v27  ;;  %v2497_v42 = vsel %vm2486_vm6, %v2479_v58, %v2481_v27 }
 0x8dd   : > { %2800 = vrot.lane.b32.xlu0 %v7242_v43, %s5554_s29  ;;  %2556 = vmatpush1.bf16.msra.mxu0 %v2497_v42 }
 0x8de   : > { %3579 = vmatpush1.bf16.msra.mxu1 %v3523_v39  ;;  %2802 = vrot.lane.b32.xlu1 %v7249_v63, %s5554_s29  ;;  %v7253_v13 = vpop.permute.xlu1 %2482 }
 0x8df   : > { %3580 = vmatprep.subr.bf16.mxu1 %v7924_v18  ;;  %v7256_v0 = vpop.permute.xlu0 %3740 }
 0x8e1   : > { %4186 = vrot.lane.b32.xlu0 %v7242_v43, %s5555_s2 }
 0x8e2   : > { %3581 = vmatpush1.bf16.msra.mxu1 %v3524_v41  ;;  %4188 = vrot.lane.b32.xlu1 %v7249_v63, %s5555_s2  ;;  %v7265_v23 = vpop.permute.xlu1 %3742 }
 0x8e3   : > { %3582 = vmatprep.subr.bf16.mxu1 %v7926_v7  ;;  %v7268_v24 = vpop.permute.xlu0 %3931 }
 0x8e5   : > { %2804 = vrot.lane.b32.xlu0 %v7270_v57, %s5554_s29 }
 0x8e6   : > { %3583 = vmatpush1.bf16.msra.mxu1 %v3525_v30  ;;  %2806 = vrot.lane.b32.xlu1 %v6695_v9, %s5554_s29  ;;  %v7279_v58 = vpop.permute.xlu1 %3929  ;;  %v5347_v30 = vld [vmem:[%s7859_s16 + $0x150] ss:$8 sps:$4 sm:$0xff]  }
 0x8e7   : > { %3584 = vmatprep.subr.bf16.mxu1 %v7928_v6  ;;  %v7282_v52 = vpop.permute.xlu0 %3935 }
 0x8e9   : > { %4190 = vrot.lane.b32.xlu0 %v7270_v57, %s5555_s2 }
 0x8ea   : > { %3585 = vmatpush1.bf16.msra.mxu1 %v3526_v31  ;;  %4192 = vrot.lane.b32.xlu1 %v6695_v9, %s5555_s2  ;;  %v7291_v44 = vpop.permute.xlu1 %3933  ;;  %v7930_v9 = vld [vmem:[#allocation9_spill] sm:$0xff] }
 0x8eb   : > { %v3514_v27 = vpop.permute.xlu0 %3513  ;;  %v3747_v41 = vsel %vm3746_vm9, %v7931_v60, %v7930_v9 }
 0x8ec   : > { %v3527_v42 = vsel %vm3515_vm8, %v6981_v28, %v3514_v27  ;;  %3586 = vmatprep.subr.bf16.mxu1 %v3514_v27  ;;  %v5345_v28 = vld [vmem:[%s7859_s16 + $0x154] ss:$8 sps:$4 sm:$0xff]  }
 0x8ed   : > { %2808 = vrot.lane.b32.xlu0 %v6717_v20, %s5554_s29 }
 0x8ee   : > { %3587 = vmatpush1.bf16.msra.mxu1 %v3527_v42  ;;  %2810 = vrot.lane.b32.xlu1 %v6713_v1, %s5554_s29  ;;  %v7302_v39 = vpop.permute.xlu1 %3937 }
 0x8ef   : > { %3795 = vmatprep.subr.bf16.mxu1 %v7930_v9  ;;  %v7305_v18 = vpop.permute.xlu0 %3939 }
 0x8f1   : > { %4194 = vrot.lane.b32.xlu0 %v6717_v20, %s5555_s2  ;;  %3597 = vmatmul.mubr.bf16.vlgmr.msra.gmra.mrb[40].mxu1 %v5342_v51  ;;  %v3748_v20 = vsel %vm3746_vm9, %v6994_v19, %v6997_v25  ;;  %v5348_v19 = vld [vmem:[%s7859_s16 + $0x164] ss:$8 sps:$4 sm:$0xff]  }
 0x8f2   : > { %3796 = vmatpush1.bf16.msra.mxu1 %v3747_v41  ;;  %4196 = vrot.lane.b32.xlu1 %v6713_v1, %s5555_s2  ;;  %v7317_v7 = vpop.permute.xlu1 %3941  ;;  %v4352_v41 = vld [vmem:[%s7860_s17 + $0x30] sm:$0xff] }
 0x8f3   : > { %3797 = vmatprep.subr.bf16.mxu1 %v6997_v25  ;;  %v7320_v4 = vpop.permute.xlu0 %3943  ;;  %4713 = vmatprep.mubr.msk.bf16.mxu1 %vm940_vm1, %v5345_v28  ;;  %v3749_v25 = vsel %vm3746_vm9, %v7022_v40, %v7025_v3  ;;  %v3750_v40 = vsel %vm3746_vm9, %v7054_v34, %v7057_v35  ;;  %v5351_v34 = vld [vmem:[%s7859_s16 + $0x174] ss:$8 sps:$4 sm:$0xff]  }
 0x8f5   : > { %2812 = vrot.lane.b32.xlu0 %v6737_v48, %s5554_s29 }
 0x8f6   : > { %3798 = vmatpush1.bf16.msra.mxu1 %v3748_v20  ;;  %2814 = vrot.lane.b32.xlu1 %v6775_v53, %s5554_s29  ;;  %v7333_v1 = vpop.permute.xlu1 %3945 }
 0x8f7   : > { %3799 = vmatprep.subr.bf16.mxu1 %v7025_v3  ;;  %v7336_v6 = vpop.permute.xlu0 %3947 }
 0x8f9   : > { %4198 = vrot.lane.b32.xlu0 %v6737_v48, %s5555_s2  ;;  %3607 = vmatmul.mubr.bf16.gmra.mrb[44].mxu1 %v5347_v30  ;;  %v5350_v48 = vld [vmem:[%s7859_s16 + $0x160] ss:$8 sps:$4 sm:$0xff]  }
 0x8fa   : > { %3800 = vmatpush1.bf16.msra.mxu1 %v3749_v25  ;;  %4200 = vrot.lane.b32.xlu1 %v6775_v53, %s5555_s2  ;;  %v7348_v29 = vpop.permute.xlu1 %3949  ;;  %v5354_v30 = vld [vmem:[%s7859_s16 + $0x40] ss:$8 sps:$4 sm:$0xff]   ;;  %v3757_v25 = vsel %vm3746_vm9, %v7237_v38, %v7256_v0 }
 0x8fb   : > { %3801 = vmatprep.subr.bf16.mxu1 %v7057_v35  ;;  %v7351_v31 = vpop.permute.xlu0 %3951  ;;  %4714 = vmatprep.mubr.msk.bf16.mxu1 %vm940_vm1, %v5348_v19  ;;  %v3751_v35 = vsel %vm3746_vm9, %v7082_v21, %v7085_v33  ;;  %v3752_v21 = vsel %vm3746_vm9, %v7104_v50, %v7107_v54  ;;  %v3753_v50 = vsel %vm3746_vm9, %v7125_v10, %v7137_v26 }
 0x8fc   : > { %v3754_v10 = vsel %vm3746_vm9, %v7149_v5, %v7165_v62 }
 0x8fd   : > { %2816 = vrot.lane.b32.xlu0 %v6792_v32, %s5554_s29 }
 0x8fe   : > { %3802 = vmatpush1.bf16.msra.mxu1 %v3750_v40  ;;  %2818 = vrot.lane.b32.xlu1 %v6789_v37, %s5554_s29  ;;  %v7364_v53 = vpop.permute.xlu1 %3953 }
 0x8ff   : > { %3803 = vmatprep.subr.bf16.mxu1 %v7085_v33  ;;  %v7367_v3 = vpop.permute.xlu0 %3955 }
 0x901   : > { %4202 = vrot.lane.b32.xlu0 %v6792_v32, %s5555_s2  ;;  %3617 = vmatmul.mubr.bf16.gmra.mrb[48].mxu1 %v5350_v48  ;;  %v5353_v32 = vld [vmem:[%s7859_s16 + $0x170] ss:$8 sps:$4 sm:$0xff]   ;;  %v5357_v48 = vld [vmem:[%s7859_s16 + $0x180] ss:$8 sps:$4 sm:$0xff]  }
 0x902   : > { %3804 = vmatpush1.bf16.msra.mxu1 %v3751_v35  ;;  %4204 = vrot.lane.b32.xlu1 %v6789_v37, %s5555_s2  ;;  %v5359_v37 = vld [vmem:[%s7859_s16 + $0x184] ss:$8 sps:$4 sm:$0xff]   ;;  %v3978_v35 = vsel %vm3977_vm10, %v7279_v58, %v7268_v24 }
 0x903   : > { %3805 = vmatprep.subr.bf16.mxu1 %v7107_v54  ;;  %v7380_v27 = vpop.permute.xlu0 %3959  ;;  %4715 = vmatprep.mubr.msk.bf16.mxu1 %vm940_vm1, %v5351_v34  ;;  %v4347_v54 = vld [vmem:[%s7860_s17 + $0x8] sm:$0xff]  ;;  %v5362_v34 = vld [vmem:[%s7859_s16 + $0x50] ss:$8 sps:$4 sm:$0xff]  }
 0x904   : > { %v7383_v42 = vpop.permute.xlu1 %3957  ;;  %v4351_v58 = vld [vmem:[%s7860_s17 + $0x28] sm:$0xff] }
 0x905   : > { %2820 = vrot.lane.b32.xlu0 %v6813_v55, %s5554_s29  ;;  %s7932_s29 = sshll.u32 %s7934_s28, 7 }
 0x906   : > { %3806 = vmatpush1.bf16.msra.mxu1 %v3752_v21  ;;  %v4349_v21 = vld [vmem:[%s7860_s17 + $0x18] sm:$0xff]  ;;  %s7814_s25 = scalar_lea.vmem %s7861_s18, %s7932_s29 }
 0x907   : > { %3807 = vmatprep.subr.bf16.mxu1 %v7137_v26  ;;  %v7397_v33 = vpop.permute.xlu0 %3963 }
 0x908   : > { %v7399_v51 = vpop.permute.xlu1 %3961 }
 0x909   : > { %4206 = vrot.lane.b32.xlu0 %v6813_v55, %s5555_s2  ;;  %3627 = vmatmul.mubr.bf16.gmra.mrb[52].mxu1 %v5353_v32  ;;  %v4350_v55 = vld [vmem:[%s7860_s17 + $0x20] sm:$0xff] }
 0x90a   : > { %3808 = vmatpush1.bf16.msra.mxu1 %v3753_v50  ;;  %4732 = vmatprep.mubr.msk.bf16.mxu1 %vm940_vm1, %v5359_v37  ;;  %v3980_v50 = vsel %vm3977_vm10, %v7302_v39, %v7305_v18 }
 0x90b   : > { %3809 = vmatprep.subr.bf16.mxu1 %v7165_v62  ;;  %v7411_v9 = vpop.permute.xlu0 %3967 }
 0x90c   : > { %v7413_v28 = vpop.permute.xlu1 %3965 }
 0x90d   : > { %4361 = vperm.xlu0 %5316, %v4347_v54   ;;  %v4353_v54 = vld [vmem:[%s7860_s17 + $0x38] sm:$0xff] }
 0x90e   : > { %3810 = vmatpush1.bf16.msra.mxu1 %v3754_v10 }
 0x90f   : > { %3811 = vmatprep.subr.bf16.mxu1 %v7191_v46  ;;  %v7422_v26 = vpop.permute.xlu0 %3971  ;;  %v3756_v46 = vsel %vm3746_vm9, %v7207_v47, %v7225_v8  ;;  %v5360_v47 = vld [vmem:[%s7859_s16 + $0x54] ss:$8 sps:$4 sm:$0xff]  }
 0x910   : > { %v7424_v60 = vpop.permute.xlu1 %3969 }
 0x911   : > { %4376 = vperm.xlu0 %5316, %v4350_v55   ;;  %v5375_v55 = vld [vmem:[%s7859_s16 + $0x1b4] ss:$8 sps:$4 sm:$0xff]  }
 0x912   : > { %3812 = vmatpush1.bf16.msra.mxu1 %v7198_v36 }
 0x913   : > { %3813 = vmatprep.subr.bf16.mxu1 %v7225_v8  ;;  %v7431_v5 = vpop.permute.xlu0 %2776  ;;  %v4346_v8 = vld [vmem:[%s7860_s17] sm:$0xff] }
 0x914   : > { %v7433_v62 = vpop.permute.xlu1 %3973  ;;  %4356 = vperm.xlu1 %5317, %v4346_v8   ;;  %v5462_v8 = vld [vmem:[#allocation2 + $0xa8] sm:$0xff] }
 0x915   : > { %4386 = vperm.xlu0 %5316, %v4352_v41  }
 0x916   : > { %3814 = vmatpush1.bf16.msra.mxu1 %v3756_v46 }
 0x917   : > { %3815 = vmatprep.subr.bf16.mxu1 %v7256_v0  ;;  %v2485_v20 = vpop.permute.xlu0 %2484  ;;  %v4348_v0 = vld [vmem:[%s7860_s17 + $0x10] sm:$0xff] }
 0x918   : > { %v2498_v36 = vsel %vm2486_vm6, %v7253_v13, %v2485_v20  ;;  %2557 = vmatprep.subr.bf16.mxu0 %v2485_v20  ;;  %v7444_v19 = vpop.permute.xlu1 %2774  ;;  %4366 = vperm.xlu1 %5317, %v4348_v0   ;;  %v5464_v0 = vld [vmem:[#allocation2 + $0xb8] sm:$0xff] }
 0x919   : > { %2558 = vmatpush1.bf16.msra.mxu0 %v2498_v36  ;;  %v3985_v36 = vsel %vm3977_vm10, %v7383_v42, %v7380_v27 }
 0x91a   : > { %3816 = vmatpush1.bf16.msra.mxu1 %v3757_v25  ;;  %2656 = vmatprep.subr.bf16.mxu0 %v6925_v17  ;;  %v3986_v25 = vsel %vm3977_vm10, %v7399_v51, %v7397_v33  ;;  %v5378_v51 = vld [vmem:[%s7859_s16] ss:$8 sps:$4 sm:$0xff]  }
 0x91b   : > { %v3745_v13 = vpop.permute.xlu0 %3744 }
 0x91c   : > { %v3758_v40 = vsel %vm3746_vm9, %v7265_v23, %v3745_v13  ;;  %3817 = vmatprep.subr.bf16.mxu1 %v3745_v13  ;;  %2568 = vmatmul.mubr.bf16.vlgmr.msra.gmra.mrb[88].mxu0 %v5354_v30  ;;  %v7458_v38 = vpop.permute.xlu1 %4160  ;;  %v5363_v23 = vld [vmem:[%s7859_s16 + $0x194] ss:$8 sps:$4 sm:$0xff]   ;;  %v5459_v30 = vld [vmem:[#allocation2 + $0x80] sm:$0xff]  ;;  %v3987_v13 = vsel %vm3977_vm10, %v7413_v28, %v7411_v9 }
 0x91d   : > { %2657 = vmatpush1.bf16.msra.mxu0 %v6931_v59  ;;  %4621 = vmatprep.mubr.msk.bf16.mxu0 %vm940_vm1, %v5360_v47  ;;  %v5461_v47 = vld [vmem:[#allocation2 + $0x90] sm:$0xff] }
 0x91e   : > { %3818 = vmatpush1.bf16.msra.mxu1 %v3758_v40  ;;  %2658 = vmatprep.subr.bf16.mxu0 %v6821_v2  ;;  %v5366_v2 = vld [vmem:[%s7859_s16 + $0x64] ss:$8 sps:$4 sm:$0xff]   ;;  %v5384_v28 = vld [vmem:[%s7859_s16 + $0x14] ss:$8 sps:$4 sm:$0xff]  }
 0x91f   : > { %4026 = vmatprep.subr.bf16.mxu1 %v7268_v24  ;;  %v7470_v17 = vpop.permute.xlu0 %4162  ;;  %4371 = vperm.xlu1 %5317, %v4349_v21   ;;  %v5463_v40 = vld [vmem:[#allocation2 + $0xa0] sm:$0xff] }
 0x920   : > { %v7475_v59 = vpop.permute.xlu1 %2778 }
 0x921   : > { %2659 = vmatpush1.bf16.msra.mxu0 %v6807_v49  ;;  %3828 = vmatmul.mubr.bf16.vlgmr.msra.gmra.mrb[40].mxu1 %v5357_v48  ;;  %v3979_v49 = vsel %vm3977_vm10, %v7291_v44, %v7282_v52  ;;  %v5368_v44 = vld [vmem:[%s7859_s16 + $0x60] ss:$8 sps:$4 sm:$0xff]  }
 0x922   : > { %4027 = vmatpush1.bf16.msra.mxu1 %v3978_v35  ;;  %2660 = vmatprep.subr.bf16.mxu0 %v6833_v11  ;;  %v5365_v11 = vld [vmem:[%s7859_s16 + $0x190] ss:$8 sps:$4 sm:$0xff]   ;;  %v2823_v35 = vsel %vm2822_vm11, %v7444_v19, %v7431_v5 }
 0x923   : > { %4028 = vmatprep.subr.bf16.mxu1 %v7282_v52  ;;  %v7492_v32 = vpop.permute.xlu0 %2780  ;;  %4733 = vmatprep.mubr.msk.bf16.mxu1 %vm940_vm1, %v5363_v23  ;;  %v3988_v23 = vsel %vm3977_vm10, %v7424_v60, %v7422_v26  ;;  %v5381_v60 = vld [vmem:[%s7859_s16 + $0x1c0] ss:$8 sps:$4 sm:$0xff]  }
 0x924   : > { %v7495_v24 = vpop.permute.xlu1 %4164  ;;  %2578 = vmatmul.mubr.bf16.gmra.mrb[92].mxu0 %v5362_v34  ;;  %4381 = vperm.xlu1 %5317, %v4351_v58   ;;  %v2824_v19 = vsel %vm2822_vm11, %v7475_v59, %v7492_v32  ;;  %v5390_v58 = vld [vmem:[%s7859_s16 + $0x24] ss:$8 sps:$4 sm:$0xff]  }
 0x925   : > { %2661 = vmatpush1.bf16.msra.mxu0 %v6829_v15  ;;  %4622 = vmatprep.mubr.msk.bf16.mxu0 %vm940_vm1, %v5366_v2  ;;  %v5369_v15 = vld [vmem:[%s7859_s16 + $0x1a4] ss:$8 sps:$4 sm:$0xff]  }
 0x926   : > { %4029 = vmatpush1.bf16.msra.mxu1 %v3979_v49  ;;  %2662 = vmatprep.subr.bf16.mxu0 %v6845_v61  ;;  %v5372_v61 = vld [vmem:[%s7859_s16 + $0x74] ss:$8 sps:$4 sm:$0xff]   ;;  %v5386_v49 = vld [vmem:[%s7859_s16 + $0x10] ss:$8 sps:$4 sm:$0xff]  }
 0x927   : > { %4030 = vmatprep.subr.bf16.mxu1 %v7305_v18  ;;  %v7510_v37 = vpop.permute.xlu0 %4166 }
 0x928   : > { %v7515_v52 = vpop.permute.xlu1 %2782  ;;  %4391 = vperm.xlu1 %5317, %v4353_v54   ;;  %v5396_v54 = vld [vmem:[%s7859_s16 + $0x34] ss:$8 sps:$4 sm:$0xff]  }
 0x929   : > { %2663 = vmatpush1.bf16.msra.mxu0 %v6841_v16  ;;  %3838 = vmatmul.mubr.bf16.gmra.mrb[44].mxu1 %v5365_v11  ;;  %v3981_v16 = vsel %vm3977_vm10, %v7317_v7, %v7320_v4  ;;  %v4209_v11 = vsel %vm4208_vm12, %v7458_v38, %v7470_v17 }
 0x92a   : > { %4031 = vmatpush1.bf16.msra.mxu1 %v3980_v50  ;;  %2664 = vmatprep.subr.bf16.mxu0 %v6857_v45  ;;  %v5371_v45 = vld [vmem:[%s7859_s16 + $0x1a0] ss:$8 sps:$4 sm:$0xff]  }
 0x92b   : > { %4032 = vmatprep.subr.bf16.mxu1 %v7320_v4  ;;  %v7532_v10 = vpop.permute.xlu0 %2784  ;;  %4734 = vmatprep.mubr.msk.bf16.mxu1 %vm940_vm1, %v5369_v15  ;;  %v3982_v4 = vsel %vm3977_vm10, %v7333_v1, %v7336_v6  ;;  %v5377_v1 = vld [vmem:[%s7859_s16 + $0x1b0] ss:$8 sps:$4 sm:$0xff]   ;;  %v5392_v50 = vld [vmem:[%s7859_s16 + $0x20] ss:$8 sps:$4 sm:$0xff]  }
 0x92c   : > { %v7535_v39 = vpop.permute.xlu1 %4168  ;;  %2588 = vmatmul.mubr.bf16.gmra.mrb[96].mxu0 %v5368_v44  ;;  %v5389_v15 = vld [vmem:[%s7859_s16 + $0x1d0] ss:$8 sps:$4 sm:$0xff]   ;;  %v5393_v44 = vld [vmem:[%s7859_s16 + $0x1e4] ss:$8 sps:$4 sm:$0xff]  }
 0x92d   : > { %2665 = vmatpush1.bf16.msra.mxu0 %v6853_v14  ;;  %4623 = vmatprep.mubr.msk.bf16.mxu0 %vm940_vm1, %v5372_v61  ;;  %v5374_v14 = vld [vmem:[%s7859_s16 + $0x70] ss:$8 sps:$4 sm:$0xff]  }
 0x92e   : > { %4033 = vmatpush1.bf16.msra.mxu1 %v3981_v16  ;;  %2666 = vmatprep.subr.bf16.mxu0 %v6869_v12  ;;  %v5380_v12 = vld [vmem:[%s7859_s16 + $0x4] ss:$8 sps:$4 sm:$0xff]  }
 0x92f   : > { %4034 = vmatprep.subr.bf16.mxu1 %v7336_v6  ;;  %v7547_v18 = vpop.permute.xlu0 %4170  ;;  %v5383_v6 = vld [vmem:[%s7859_s16 + $0x1c4] ss:$8 sps:$4 sm:$0xff]  }
 0x930   : > { %v7552_v7 = vpop.permute.xlu1 %2786  ;;  %v4211_v61 = vsel %vm4208_vm12, %v7535_v39, %v7547_v18 }
 0x931   : > { %2667 = vmatpush1.bf16.msra.mxu0 %v6865_v56  ;;  %3848 = vmatmul.mubr.bf16.gmra.mrb[48].mxu1 %v5371_v45  ;;  %v3983_v56 = vsel %vm3977_vm10, %v7348_v29, %v7351_v31 }
 0x932   : > { %4035 = vmatpush1.bf16.msra.mxu1 %v3982_v4  ;;  %2668 = vmatprep.subr.bf16.mxu0 %v7242_v43 }
 0x933   : > { %4036 = vmatprep.subr.bf16.mxu1 %v7351_v31  ;;  %v7566_v41 = vpop.permute.xlu0 %2788  ;;  %4735 = vmatprep.mubr.msk.bf16.mxu1 %vm940_vm1, %v5375_v55  ;;  %v5458_v31 = vld [vmem:[#allocation2 + $0x88] sm:$0xff] }
 0x934   : > { %v7569_v46 = vpop.permute.xlu1 %4172  ;;  %2598 = vmatmul.mubr.bf16.gmra.mrb[100].mxu0 %v5374_v14 }
 0x935   : > { %2669 = vmatpush1.bf16.msra.mxu0 %v7220_v22  ;;  %4632 = vmatprep.mubr.msk.bf16.mxu0 %vm940_vm1, %v5380_v12  ;;  %v3984_v22 = vsel %vm3977_vm10, %v7364_v53, %v7367_v3  ;;  %v5398_v12 = vld [vmem:[%s7859_s16 + $0x30] ss:$8 sps:$4 sm:$0xff]  }
 0x936   : > { %4037 = vmatpush1.bf16.msra.mxu1 %v3983_v56  ;;  %2670 = vmatprep.subr.bf16.mxu0 %v7270_v57 }
 0x937   : > { %4038 = vmatprep.subr.bf16.mxu1 %v7367_v3  ;;  %v7581_v43 = vpop.permute.xlu0 %4174 }
 0x938   : > { %v7586_v29 = vpop.permute.xlu1 %2790  ;;  %v4212_v39 = vsel %vm4208_vm12, %v7569_v46, %v7581_v43  ;;  %v5404_v46 = vld [vmem:[%s7859_s16 + $0x84] ss:$8 sps:$4 sm:$0xff]  }
 0x939   : > { %2671 = vmatpush1.bf16.msra.mxu0 %v7249_v63  ;;  %3858 = vmatmul.mubr.bf16.gmra.mrb[52].mxu1 %v5377_v1  ;;  %v5460_v63 = vld [vmem:[#allocation2 + $0x98] sm:$0xff] }
 0x93a   : > { %4039 = vmatpush1.bf16.msra.mxu1 %v3984_v22  ;;  %2672 = vmatprep.subr.bf16.mxu0 %v5458_v31  ;;  %v5407_v31 = vld [vmem:[%s7859_s16 + $0x204] ss:$8 sps:$4 sm:$0xff]  }
 0x93b   : > { %4040 = vmatprep.subr.bf16.mxu1 %v7380_v27  ;;  %v7593_v57 = vpop.permute.xlu0 %2792  ;;  %4752 = vmatprep.mubr.msk.bf16.mxu1 %vm940_vm1, %v5383_v6 }
 0x93c   : > { %v7596_v20 = vpop.permute.xlu1 %4176  ;;  %v2827_v16 = vsel %vm2822_vm11, %v7586_v29, %v7593_v57  ;;  %v5401_v29 = vld [vmem:[%s7859_s16 + $0x1f0] ss:$8 sps:$4 sm:$0xff]  }
 0x93d   : > { %2673 = vmatpush1.bf16.msra.mxu0 %v5459_v30 }
 0x93e   : > { %4041 = vmatpush1.bf16.msra.mxu1 %v3985_v36  ;;  %2674 = vmatprep.subr.bf16.mxu0 %v5460_v63 }
 0x93f   : > { %4042 = vmatprep.subr.bf16.mxu1 %v7397_v33  ;;  %v7602_v53 = vpop.permute.xlu0 %4178 }
 0x940   : > { %v7604_v3 = vpop.permute.xlu1 %2794 }
 0x941   : > { %2675 = vmatpush1.bf16.msra.mxu0 %v5461_v47 }
 0x942   : > { %4043 = vmatpush1.bf16.msra.mxu1 %v3986_v25  ;;  %2676 = vmatprep.subr.bf16.mxu0 %v5462_v8 }
 0x943   : > { %4044 = vmatprep.subr.bf16.mxu1 %v7411_v9  ;;  %v7610_v27 = vpop.permute.xlu0 %2796  ;;  %v5465_v9 = vld [vmem:[#allocation2 + $0xb0] sm:$0xff] }
 0x944   : > { %v7612_v42 = vpop.permute.xlu1 %4180  ;;  %v2828_v14 = vsel %vm2822_vm11, %v7604_v3, %v7610_v27 }
 0x945   : > { %2677 = vmatpush1.bf16.msra.mxu0 %v5463_v40 }
 0x946   : > { %4045 = vmatpush1.bf16.msra.mxu1 %v3987_v13  ;;  %2678 = vmatprep.subr.bf16.mxu0 %v5464_v0 }
 0x947   : > { %4046 = vmatprep.subr.bf16.mxu1 %v7422_v26  ;;  %v7618_v33 = vpop.permute.xlu0 %4182 }
 0x948   : > { %v7623_v48 = vpop.permute.xlu1 %2798  ;;  %v4214_v6 = vsel %vm4208_vm12, %v7612_v42, %v7618_v33 }
 0x949   : > { %2679 = vmatpush1.bf16.msra.mxu0 %v5465_v9 }
 0x94a   : > { %4047 = vmatpush1.bf16.msra.mxu1 %v3988_v23  ;;  %2871 = vmatprep.subr.bf16.mxu0 %v7431_v5  ;;  %v5408_v23 = vld [vmem:[%s7859_s16 + $0x94] ss:$8 sps:$4 sm:$0xff]  }
 0x94b   : > { %v3976_v34 = vpop.permute.xlu0 %3975 }
 0x94c   : > { %v3989_v2 = vsel %vm3977_vm10, %v7433_v62, %v3976_v34  ;;  %4048 = vmatprep.subr.bf16.mxu1 %v3976_v34  ;;  %2689 = vmatmul.mubr.bf16.vlgmr.msra.gmra.mrb[88].mxu0 %v5378_v51  ;;  %v7637_v26 = vpop.permute.xlu1 %4184  ;;  %v5387_v62 = vld [vmem:[%s7859_s16 + $0x1d4] ss:$8 sps:$4 sm:$0xff]   ;;  %v5402_v51 = vld [vmem:[%s7859_s16 + $0x80] ss:$8 sps:$4 sm:$0xff]  }
 0x94d   : > { %2872 = vmatpush1.bf16.msra.mxu0 %v2823_v35  ;;  %4633 = vmatprep.mubr.msk.bf16.mxu0 %vm940_vm1, %v5384_v28  ;;  %v5405_v35 = vld [vmem:[%s7859_s16 + $0x200] ss:$8 sps:$4 sm:$0xff]  }
 0x94e   : > { %4049 = vmatpush1.bf16.msra.mxu1 %v3989_v2  ;;  %2873 = vmatprep.subr.bf16.mxu0 %v7492_v32  ;;  %v2825_v32 = vsel %vm2822_vm11, %v7515_v52, %v7532_v10  ;;  %v5411_v2 = vld [vmem:[%s7859_s16 + $0x214] ss:$8 sps:$4 sm:$0xff]  }
 0x94f   : > { %4257 = vmatprep.subr.bf16.mxu1 %v7470_v17  ;;  %v7645_v5 = vpop.permute.xlu0 %2800  ;;  %v4210_v17 = vsel %vm4208_vm12, %v7495_v24, %v7510_v37  ;;  %v2826_v24 = vsel %vm2822_vm11, %v7552_v7, %v7566_v41  ;;  %v5399_v7 = vld [vmem:[%s7859_s16 + $0x1f4] ss:$8 sps:$4 sm:$0xff]  }
 0x950   : > { %v7653_v21 = vpop.permute.xlu1 %2802  ;;  %v2829_v1 = vsel %vm2822_vm11, %v7623_v48, %v7645_v5 }
 0x951   : > { %2874 = vmatpush1.bf16.msra.mxu0 %v2824_v19  ;;  %4059 = vmatmul.mubr.bf16.vlgmr.msra.gmra.mrb[40].mxu1 %v5381_v60  ;;  %v5414_v60 = vld [vmem:[%s7859_s16 + $0xa4] ss:$8 sps:$4 sm:$0xff]   ;;  %v5416_v19 = vld [vmem:[%s7859_s16 + $0xa0] ss:$8 sps:$4 sm:$0xff]  }
 0x952   : > { %4258 = vmatpush1.bf16.msra.mxu1 %v4209_v11  ;;  %2875 = vmatprep.subr.bf16.mxu0 %v7532_v10  ;;  %v5423_v11 = vld [vmem:[%s7859_s16 + $0x234] ss:$8 sps:$4 sm:$0xff]  }
 0x953   : > { %4259 = vmatprep.subr.bf16.mxu1 %v7510_v37  ;;  %v7666_v59 = vpop.permute.xlu0 %4186  ;;  %4753 = vmatprep.mubr.msk.bf16.mxu1 %vm940_vm1, %v5387_v62  ;;  %v5417_v62 = vld [vmem:[%s7859_s16 + $0x224] ss:$8 sps:$4 sm:$0xff]  }
 0x954   : > { %v7672_v38 = vpop.permute.xlu1 %4188  ;;  %2699 = vmatmul.mubr.bf16.gmra.mrb[92].mxu0 %v5386_v49  ;;  %v5419_v49 = vld [vmem:[%s7859_s16 + $0x220] ss:$8 sps:$4 sm:$0xff]  }
 0x955   : > { %2876 = vmatpush1.bf16.msra.mxu0 %v2825_v32  ;;  %4634 = vmatprep.mubr.msk.bf16.mxu0 %vm940_vm1, %v5390_v58  ;;  %v5422_v58 = vld [vmem:[%s7859_s16 + $0xb0] ss:$8 sps:$4 sm:$0xff]  }
 0x956   : > { %4260 = vmatpush1.bf16.msra.mxu1 %v4210_v17  ;;  %2877 = vmatprep.subr.bf16.mxu0 %v7566_v41  ;;  %v4213_v41 = vsel %vm4208_vm12, %v7596_v20, %v7602_v53  ;;  %v4215_v20 = vsel %vm4208_vm12, %v7637_v26, %v7666_v59  ;;  %v5410_v26 = vld [vmem:[%s7859_s16 + $0x90] ss:$8 sps:$4 sm:$0xff]  }
 0x957   : > { %4261 = vmatprep.subr.bf16.mxu1 %v7547_v18  ;;  %v2805_v52 = vpop.permute.xlu0 %2804  ;;  %v5395_v18 = vld [vmem:[%s7859_s16 + $0x1e0] ss:$8 sps:$4 sm:$0xff]  }
 0x958   : > { %v2807_v37 = vpop.permute.xlu1 %2806 }
 0x959   : > { %2878 = vmatpush1.bf16.msra.mxu0 %v2826_v24  ;;  %4069 = vmatmul.mubr.bf16.gmra.mrb[44].mxu1 %v5389_v15 }
 0x95a   : > { %4262 = vmatpush1.bf16.msra.mxu1 %v4211_v61  ;;  %2879 = vmatprep.subr.bf16.mxu0 %v7593_v57  ;;  %v2830_v57 = vsel %vm2822_vm11, %v7653_v21, %v2805_v52  ;;  %v5420_v21 = vld [vmem:[%s7859_s16 + $0xb4] ss:$8 sps:$4 sm:$0xff]  }
 0x95b   : > { %4263 = vmatprep.subr.bf16.mxu1 %v7581_v43  ;;  %v4191_v10 = vpop.permute.xlu0 %4190  ;;  %4754 = vmatprep.mubr.msk.bf16.mxu1 %vm940_vm1, %v5393_v44 }
 0x95c   : > { %v4193_v45 = vpop.permute.xlu1 %4192  ;;  %2709 = vmatmul.mubr.bf16.gmra.mrb[96].mxu0 %v5392_v50 }
 0x95d   : > { %2880 = vmatpush1.bf16.msra.mxu0 %v2827_v16  ;;  %4635 = vmatprep.mubr.msk.bf16.mxu0 %vm940_vm1, %v5396_v54 }
 0x95e   : > { %4264 = vmatpush1.bf16.msra.mxu1 %v4212_v39  ;;  %2881 = vmatprep.subr.bf16.mxu0 %v7610_v27 }
 0x95f   : > { %4265 = vmatprep.subr.bf16.mxu1 %v7602_v53  ;;  %v2809_v55 = vpop.permute.xlu0 %2808  ;;  %v4216_v53 = vsel %vm4208_vm12, %v7672_v38, %v4191_v10 }
 0x960   : > { %v2811_v4 = vpop.permute.xlu1 %2810  ;;  %v2831_v63 = vsel %vm2822_vm11, %v2807_v37, %v2809_v55 }
 0x961   : > { %2882 = vmatpush1.bf16.msra.mxu0 %v2828_v14  ;;  %4079 = vmatmul.mubr.bf16.gmra.mrb[48].mxu1 %v5395_v18 }
 0x962   : > { %4266 = vmatpush1.bf16.msra.mxu1 %v4213_v41  ;;  %2883 = vmatprep.subr.bf16.mxu0 %v7645_v5  ;;  %v5413_v5 = vld [vmem:[%s7859_s16 + $0x210] ss:$8 sps:$4 sm:$0xff]  }
 0x963   : > { %4267 = vmatprep.subr.bf16.mxu1 %v7618_v33  ;;  %v4195_v56 = vpop.permute.xlu0 %4194  ;;  %4755 = vmatprep.mubr.msk.bf16.mxu1 %vm940_vm1, %v5399_v7 }
 0x964   : > { %v4197_v43 = vpop.permute.xlu1 %4196  ;;  %2719 = vmatmul.mubr.bf16.gmra.mrb[100].mxu0 %v5398_v12  ;;  %v4217_v8 = vsel %vm4208_vm12, %v4193_v45, %v4195_v56 }
 0x965   : > { %2884 = vmatpush1.bf16.msra.mxu0 %v2829_v1  ;;  %4652 = vmatprep.mubr.msk.bf16.mxu0 %vm940_vm1, %v5404_v46 }
 0x966   : > { %4268 = vmatpush1.bf16.msra.mxu1 %v4214_v6  ;;  %2885 = vmatprep.subr.bf16.mxu0 %v2805_v52 }
 0x967   : > { %4269 = vmatprep.subr.bf16.mxu1 %v7666_v59  ;;  %v2813_v22 = vpop.permute.xlu0 %2812  ;;  %v5425_v59 = vld [vmem:[%s7859_s16 + $0x230] ss:$8 sps:$4 sm:$0xff]  }
 0x968   : > { %v2815_v36 = vpop.permute.xlu1 %2814  ;;  %v2832_v47 = vsel %vm2822_vm11, %v2811_v4, %v2813_v22 }
 0x969   : > { %2886 = vmatpush1.bf16.msra.mxu0 %v2830_v57  ;;  %4089 = vmatmul.mubr.bf16.gmra.mrb[52].mxu1 %v5401_v29 }
 0x96a   : > { %4270 = vmatpush1.bf16.msra.mxu1 %v4215_v20  ;;  %2887 = vmatprep.subr.bf16.mxu0 %v2809_v55 }
 0x96b   : > { %4271 = vmatprep.subr.bf16.mxu1 %v4191_v10  ;;  %v4199_v30 = vpop.permute.xlu0 %4198  ;;  %4772 = vmatprep.mubr.msk.bf16.mxu1 %vm940_vm1, %v5407_v31 }
 0x96c   : > { %v4201_v25 = vpop.permute.xlu1 %4200  ;;  %v4218_v13 = vsel %vm4208_vm12, %v4197_v43, %v4199_v30 }
 0x96d   : > { %2888 = vmatpush1.bf16.msra.mxu0 %v2831_v63 }
 0x96e   : > { %4272 = vmatpush1.bf16.msra.mxu1 %v4216_v53  ;;  %2889 = vmatprep.subr.bf16.mxu0 %v2813_v22 }
 0x96f   : > { %4273 = vmatprep.subr.bf16.mxu1 %v4195_v56  ;;  %v2817_v3 = vpop.permute.xlu0 %2816 }
 0x970   : > { %v2833_v42 = vsel %vm2822_vm11, %v2815_v36, %v2817_v3  ;;  %v2819_v40 = vpop.permute.xlu1 %2818 }
 0x971   : > { %2890 = vmatpush1.bf16.msra.mxu0 %v2832_v47 }
 0x972   : > { %4274 = vmatpush1.bf16.msra.mxu1 %v4217_v8  ;;  %2891 = vmatprep.subr.bf16.mxu0 %v2817_v3 }
 0x973   : > { %4275 = vmatprep.subr.bf16.mxu1 %v4199_v30  ;;  %v4203_v27 = vpop.permute.xlu0 %4202 }
 0x974   : > { %v4219_v48 = vsel %vm4208_vm12, %v4201_v25, %v4203_v27  ;;  %v4205_v9 = vpop.permute.xlu1 %4204 }
 0x975   : > { %2892 = vmatpush1.bf16.msra.mxu0 %v2833_v42 }
 0x976   : > { %4276 = vmatpush1.bf16.msra.mxu1 %v4218_v13 }
 0x977   : > { %4277 = vmatprep.subr.bf16.mxu1 %v4203_v27  ;;  %v2821_v0 = vpop.permute.xlu0 %2820 }
 0x978   : > { %v2834_v33 = vsel %vm2822_vm11, %v2819_v40, %v2821_v0  ;;  %2893 = vmatprep.subr.bf16.mxu0 %v2821_v0 }
 0x979   : > { %2894 = vmatpush1.bf16.msra.mxu0 %v2834_v33 }
 0x97a   : > { %4278 = vmatpush1.bf16.msra.mxu1 %v4219_v48 }
 0x97b   : > { %v4207_v28 = vpop.permute.xlu0 %4206 }
 0x97c   : > { %v4220_v34 = vsel %vm4208_vm12, %v4205_v9, %v4207_v28  ;;  %2904 = vmatmul.mubr.bf16.vlgmr.msra.gmra.mrb[88].mxu0 %v5402_v51  ;;  %4279 = vmatprep.subr.bf16.mxu1 %v4207_v28 }
 0x97d   : > { %4653 = vmatprep.mubr.msk.bf16.mxu0 %vm940_vm1, %v5408_v23 }
 0x97e   : > { %4280 = vmatpush1.bf16.msra.mxu1 %v4220_v34 }
 0x981   : > { %4290 = vmatmul.mubr.bf16.vlgmr.msra.gmra.mrb[40].mxu1 %v5405_v35 }
 0x982   : > { %4773 = vmatprep.mubr.msk.bf16.mxu1 %vm940_vm1, %v5411_v2 }
 0x984   : > { %2914 = vmatmul.mubr.bf16.gmra.mrb[92].mxu0 %v5410_v26 }
 0x985   : > { %4654 = vmatprep.mubr.msk.bf16.mxu0 %vm940_vm1, %v5414_v60 }
 0x989   : > { %4300 = vmatmul.mubr.bf16.gmra.mrb[44].mxu1 %v5413_v5 }
 0x98a   : > { %4774 = vmatprep.mubr.msk.bf16.mxu1 %vm940_vm1, %v5417_v62 }
 0x98c   : > { %2924 = vmatmul.mubr.bf16.gmra.mrb[96].mxu0 %v5416_v19  ;;  %v4362_v39 = vpop.permute.xlu0 %4361 }
 0x98d   : > { %4655 = vmatprep.mubr.msk.bf16.mxu0 %vm940_vm1, %v5420_v21 }
 0x990   : > { %v4377_v34 = vpop.permute.xlu0 %4376 }
 0x991   : > { %4310 = vmatmul.mubr.bf16.gmra.mrb[48].mxu1 %v5419_v49 }
 0x992   : > { %4775 = vmatprep.mubr.msk.bf16.mxu1 %vm940_vm1, %v5423_v11 }
 0x993   : > { %v4357_v44 = vpop.permute.xlu1 %4356 }
 0x994   : > { %2934 = vmatmul.mubr.bf16.gmra.mrb[100].mxu0 %v5422_v58 }
 0x997   : > { %v4367_v56 = vpop.permute.xlu1 %4366 }
 0x999   : > { %4320 = vmatmul.mubr.bf16.gmra.mrb[52].mxu1 %v5425_v59 }
 0x99e   : > { %v4372_v25 = vpop.permute.xlu1 %4371 }
 0x9a3   : > { %v4382_v19 = vpop.permute.xlu1 %4381 }
 0xa4f   : > { %v2905_v32 = vpop.f32.mrb[88].mxu0 }
 0xa50   : > { %v2907_v38 = vpop.f32.mrb[89].mxu0 }
 0xa51   : > { %v2909_v17 = vpop.f32.mrb[90].mxu0 }
 0xa52   : > { %v2911_v15 = vpop.f32.mrb[91].mxu0 }
 0xa54   : > { %v4291_v52 = vpop.f32.mrb[40].mxu1 }
 0xa55   : > { %v5136_v24 = vadd.f32 %v4291_v52, %v2905_v32  ;;  %v4293_v37 = vpop.f32.mrb[41].mxu1 }
 0xa56   : > { %v5137_v50 = vadd.f32 %v4293_v37, %v2907_v38  ;;  %v4295_v61 = vpop.f32.mrb[42].mxu1 }
 0xa57   : > { %v4394_v54 = vadd.f32 %v5136_v24, %v4357_v44  ;;  %v5138_v10 = vadd.f32 %v4295_v61, %v2909_v17  ;;  %v4297_v16 = vpop.f32.mrb[43].mxu1  ;;  %v2915_v45 = vpop.f32.mrb[92].mxu0 }
 0xa58   : > { %v4395_v18 = vadd.f32 %v5137_v50, %v4357_v44  ;;  %v5139_v55 = vadd.f32 %v4297_v16, %v2911_v15  ;;  %v2917_v7 = vpop.f32.mrb[93].mxu0  ;;  %v4387_v61 = vpop.permute.xlu0 %4386 }
 0xa59   : > { %v4410_v14 = vmax.f32 %v4394_v54, 0.0  ;;  %v4396_v4 = vadd.f32 %v5138_v10, %v4362_v39  ;;  %v2919_v12 = vpop.f32.mrb[94].mxu0 }
 0xa5a   : > { %v4411_v41 = vmax.f32 %v4395_v18, 0.0  ;;  %v4397_v46 = vadd.f32 %v5139_v55, %v4362_v39  ;;  %v2921_v1 = vpop.f32.mrb[95].mxu0  ;;  %v4392_v18 = vpop.permute.xlu1 %4391 }
 0xa5b   : > { %4426 = vst [vmem:[%s7814_s25] sm:$0xff] %v4410_v14  ;;  %v4412_v43 = vmax.f32 %v4396_v4, 0.0 }
 0xa5c   : > { %4427 = vst.msk [vmem:[%s7814_s25 + $0x8] sm:$0xff] %vm2211_vm5, %v4411_v41  ;;  %v4413_v6 = vmax.f32 %v4397_v46, 0.0  ;;  %v4301_v29 = vpop.f32.mrb[44].mxu1 }
 0xa5d   : > { %4428 = vst [vmem:[%s7814_s25 + $0x10] sm:$0xff] %v4412_v43  ;;  %v5140_v22 = vadd.f32 %v4301_v29, %v2915_v45  ;;  %v4303_v31 = vpop.f32.mrb[45].mxu1 }
 0xa5e   : > { %4429 = vst.msk [vmem:[%s7814_s25 + $0x18] sm:$0xff] %vm2211_vm5, %v4413_v6  ;;  %v5141_v57 = vadd.f32 %v4303_v31, %v2917_v7  ;;  %v4305_v20 = vpop.f32.mrb[46].mxu1 }
 0xa5f   : > { %v4398_v36 = vadd.f32 %v5140_v22, %v4367_v56  ;;  %v5142_v30 = vadd.f32 %v4305_v20, %v2919_v12  ;;  %v4307_v63 = vpop.f32.mrb[47].mxu1  ;;  %v2925_v53 = vpop.f32.mrb[96].mxu0 }
 0xa60   : > { %v4399_v3 = vadd.f32 %v5141_v57, %v4367_v56  ;;  %v5143_v47 = vadd.f32 %v4307_v63, %v2921_v1  ;;  %v2927_v8 = vpop.f32.mrb[97].mxu0 }
 0xa61   : > { %v4414_v27 = vmax.f32 %v4398_v36, 0.0  ;;  %v4400_v42 = vadd.f32 %v5142_v30, %v4372_v25  ;;  %v2929_v13 = vpop.f32.mrb[98].mxu0 }
 0xa62   : > { %v4415_v40 = vmax.f32 %v4399_v3, 0.0  ;;  %v4401_v0 = vadd.f32 %v5143_v47, %v4372_v25  ;;  %v2931_v33 = vpop.f32.mrb[99].mxu0 }
 0xa63   : > { %4430 = vst [vmem:[%s7814_s25 + $0x20] sm:$0xff] %v4414_v27  ;;  %v4416_v51 = vmax.f32 %v4400_v42, 0.0 }
 0xa64   : > { %4431 = vst.msk [vmem:[%s7814_s25 + $0x28] sm:$0xff] %vm2211_vm5, %v4415_v40  ;;  %v4417_v48 = vmax.f32 %v4401_v0, 0.0  ;;  %v4311_v23 = vpop.f32.mrb[48].mxu1 }
 0xa65   : > { %4432 = vst [vmem:[%s7814_s25 + $0x30] sm:$0xff] %v4416_v51  ;;  %v5144_v9 = vadd.f32 %v4311_v23, %v2925_v53  ;;  %v4313_v28 = vpop.f32.mrb[49].mxu1 }
 0xa66   : > { %4433 = vst.msk [vmem:[%s7814_s25 + $0x38] sm:$0xff] %vm2211_vm5, %v4417_v48  ;;  %v5145_v35 = vadd.f32 %v4313_v28, %v2927_v8  ;;  %v4315_v2 = vpop.f32.mrb[50].mxu1 }
 0xa67   : > { %v4402_v26 = vadd.f32 %v5144_v9, %v4377_v34  ;;  %v5146_v60 = vadd.f32 %v4315_v2, %v2929_v13  ;;  %v4317_v5 = vpop.f32.mrb[51].mxu1  ;;  %v2935_v62 = vpop.f32.mrb[100].mxu0 }
 0xa68   : > { %v4403_v21 = vadd.f32 %v5145_v35, %v4377_v34  ;;  %v5147_v49 = vadd.f32 %v4317_v5, %v2931_v33  ;;  %v2937_v11 = vpop.f32.mrb[101].mxu0 }
 0xa69   : > { %v4418_v58 = vmax.f32 %v4402_v26, 0.0  ;;  %v4404_v59 = vadd.f32 %v5146_v60, %v4382_v19  ;;  %v2939_v32 = vpop.f32.mrb[102].mxu0 }
 0xa6a   : > { %v4419_v38 = vmax.f32 %v4403_v21, 0.0  ;;  %v4405_v17 = vadd.f32 %v5147_v49, %v4382_v19  ;;  %v2941_v15 = vpop.f32.mrb[103].mxu0 }
 0xa6b   : > { %4434 = vst [vmem:[%s7814_s25 + $0x40] sm:$0xff] %v4418_v58  ;;  %v4420_v52 = vmax.f32 %v4404_v59, 0.0 }
 0xa6c   : > { %4435 = vst.msk [vmem:[%s7814_s25 + $0x48] sm:$0xff] %vm2211_vm5, %v4419_v38  ;;  %v4421_v44 = vmax.f32 %v4405_v17, 0.0  ;;  %v4321_v24 = vpop.f32.mrb[52].mxu1 }
 0xa6d   : > { %4436 = vst [vmem:[%s7814_s25 + $0x50] sm:$0xff] %v4420_v52  ;;  %v5148_v37 = vadd.f32 %v4321_v24, %v2935_v62  ;;  %v4323_v50 = vpop.f32.mrb[53].mxu1 }
 0xa6e   : > { %4437 = vst.msk [vmem:[%s7814_s25 + $0x58] sm:$0xff] %vm2211_vm5, %v4421_v44  ;;  %v5149_v54 = vadd.f32 %v4323_v50, %v2937_v11  ;;  %v4325_v10 = vpop.f32.mrb[54].mxu1 }
 0xa6f   : > { %v4406_v16 = vadd.f32 %v5148_v37, %v4387_v61  ;;  %v5150_v45 = vadd.f32 %v4325_v10, %v2939_v32  ;;  %v4327_v39 = vpop.f32.mrb[55].mxu1 }
 0xa70   : > { %v4407_v55 = vadd.f32 %v5149_v54, %v4387_v61  ;;  %v5151_v7 = vadd.f32 %v4327_v39, %v2941_v15 }
 0xa71   : > { %v4422_v14 = vmax.f32 %v4406_v16, 0.0  ;;  %v4408_v4 = vadd.f32 %v5150_v45, %v4392_v18 }
 0xa72   : > { %v4423_v12 = vmax.f32 %v4407_v55, 0.0  ;;  %v4409_v41 = vadd.f32 %v5151_v7, %v4392_v18 }
 0xa73   : > { %4438 = vst [vmem:[%s7814_s25 + $0x60] sm:$0xff] %v4422_v14  ;;  %v4424_v46 = vmax.f32 %v4408_v4, 0.0 }
 0xa74   : > { %4439 = vst.msk [vmem:[%s7814_s25 + $0x68] sm:$0xff] %vm2211_vm5, %v4423_v12  ;;  %v4425_v56 = vmax.f32 %v4409_v41, 0.0 }
 0xa75   : > { %4440 = vst [vmem:[%s7814_s25 + $0x70] sm:$0xff] %v4424_v46 }
 0xa76   : > { %4441 = vst.msk [vmem:[%s7814_s25 + $0x78] sm:$0xff] %vm2211_vm5, %v4425_v56 }
 0xa77 PF: > { %s30_s27 = sadd.s32 1, %s5536_s27  }
 0xa78   : > { %p27_p9 = scmp.ge.s32.totalorder %s30_s27, 4  }
 0xa7a   :  { %29 = sbr.rel (!%p27_p9) target bundleno = 7 (0x7), region = 139 }
 0xa81   :  { %4463 = vsyncpa [#allocation4], 1 }
 0xa82   :  { %4465 = vsyncpa [#allocation4 + $0x1], 1 }
 0xa83   :  { %4466 = vsyncpa [#allocation6], 1 }

</bundles_post_ra>
